<compile_context>
chip_gen: v6e
topology: v6e:2x2x1
jax: 0.10.0
libtpu: 0.0.40
codegen_flags: <defaults>
</compile_context>

<pallas_src>
import functools

import jax
import jax.numpy as jnp
from jax import lax
from jax.experimental import pallas as pl
from jax.experimental.pallas import tpu as pltpu

C = 128          # lane-dense padded channel count
KSZ = 3          # conv kernel size
NTAPS = KSZ * KSZ
OFF = 8          # sublane-aligned column offset of the interior inside abuf
OUTR = 8         # sublane-aligned row count of the final 1x1-conv weights/output


def _fused_fcn_kernel(x_ref, w_ref, wout_ref, bout_ref, s_ref, b_ref, o_ref,
                      abuf, *, H, W, n_layers, rpc):
    """Whole SimpleFCN forward for one image (all layers fused).

    x_ref   : (1, H, W, C)             bf16  channel-padded NHWC input
    w_ref   : (n_layers, 9*C, C)       bf16  3x3 conv weights, tap-major layout
    wout_ref: (OUTR, C)                bf16  final 1x1 conv weights (row=output)
    bout_ref: (OUTR, 1)                f32   final 1x1 conv bias
    s_ref   : (n_layers, 1, C)         f32   folded BN scales
    b_ref   : (n_layers, 1, C)         f32   folded BN biases
    o_ref   : (1, OUTR, H*W)           f32   lane-dense output (row 0 is real)
    abuf    : (2, H+2, W+2*OFF, C)     bf16  ping-pong padded activations (VMEM)
    """
    WP = W + 2 * OFF
    nchunks = H // rpc
    M = rpc * W

    # ---- halo init (every step; megacore-safe, interiors rewritten later) ----
    zrow = jnp.zeros((1, WP, C), jnp.bfloat16)
    zcol = jnp.zeros((H, OFF, C), jnp.bfloat16)
    for slot in range(2):
        abuf[slot, 0:1, :, :] = zrow                      # top halo row
        abuf[slot, H + 1:H + 2, :, :] = zrow              # bottom halo row
        abuf[slot, 1:H + 1, 0:OFF, :] = zcol              # left pad columns
        abuf[slot, 1:H + 1, OFF + W:WP, :] = zcol         # right pad columns

    # Land the input in the sublane-aligned interior of ping-pong slot 0.
    abuf[0, 1:H + 1, OFF:OFF + W, :] = x_ref[0]

    # ---- conv3x3 + folded-BN + ReLU stack (fori_loop over layers) ----------
    def layer_body(layer, carry):
        src = lax.rem(layer, 2)
        dst = 1 - src
        s_row = s_ref[layer]                               # (1, C) f32
        b_row = b_ref[layer]                               # (1, C) f32
        for rc in range(nchunks):                          # static: H // rpc
            r0 = rc * rpc
            acc = jnp.zeros((M, C), jnp.float32)
            for dy in range(KSZ):
                # Aligned full-width row slab read; the +/-1 dx shifts below
                # are value slices resolved in registers (no VMEM staging).
                slab = abuf[src, r0 + dy:r0 + dy + rpc, :, :]   # (rpc, WP, C)
                for dx in range(KSZ):
                    t = dy * KSZ + dx
                    xs = slab[:, OFF - 1 + dx:OFF - 1 + dx + W, :].reshape(M, C)
                    wt = w_ref[layer, t * C:(t + 1) * C, :]     # (C, C) bf16
                    acc += jnp.dot(xs, wt,
                                   preferred_element_type=jnp.float32)
            y = jnp.maximum(acc * s_row + b_row, 0.0)           # BN + ReLU
            abuf[dst, 1 + r0:1 + r0 + rpc, OFF:OFF + W, :] = (
                y.reshape(rpc, W, C).astype(abuf.dtype))
        return carry

    lax.fori_loop(0, n_layers, layer_body, 0)

    # ---- final 1x1 conv (+ bias): lane-dense (OUTR, H*W) output ------------
    src_f = n_layers % 2
    wrow = wout_ref[...]                                   # (OUTR, C) bf16
    bias = bout_ref[...]                                   # (OUTR, 1) f32
    for rc in range(nchunks):
        r0 = rc * rpc
        xin = abuf[src_f, 1 + r0:1 + r0 + rpc, OFF:OFF + W, :].reshape(M, C)
        out = jnp.dot(wrow, xin.T,
                      preferred_element_type=jnp.float32)  # (OUTR, M)
        o_ref[0, :, r0 * W:r0 * W + M] = out + bias


def fused_forward(x_nhwc_padded, params):
    """x_nhwc_padded: (N, H, W, 128) bf16. Returns (N, OUTR, H*W) f32."""
    N, H, W, Cin = x_nhwc_padded.shape
    assert Cin == C, "input must be channel-padded to 128 lanes"
    assert W % 8 == 0, "W must be a multiple of 8 (sublane-aligned interior)"
    n_layers = params["w_stack"].shape[0]
    # Pixel rows per M-chunk so the per-chunk accumulator is <= (128, 128).
    rpc = min(H, max(1, 128 // W))
    while H % rpc:
        rpc -= 1
    kernel = functools.partial(_fused_fcn_kernel, H=H, W=W,
                               n_layers=n_layers, rpc=rpc)
    return pl.pallas_call(
        kernel,
        out_shape=jax.ShapeDtypeStruct((N, OUTR, H * W), jnp.float32),
        grid=(N,),
        in_specs=[
            pl.BlockSpec((1, H, W, C), lambda n: (n, 0, 0, 0)),
            pl.BlockSpec((n_layers, NTAPS * C, C), lambda n: (0, 0, 0)),
            pl.BlockSpec((OUTR, C), lambda n: (0, 0)),
            pl.BlockSpec((OUTR, 1), lambda n: (0, 0)),
            pl.BlockSpec((n_layers, 1, C), lambda n: (0, 0, 0)),
            pl.BlockSpec((n_layers, 1, C), lambda n: (0, 0, 0)),
        ],
        out_specs=pl.BlockSpec((1, OUTR, H * W), lambda n: (n, 0, 0)),
        scratch_shapes=[
            pltpu.VMEM((2, H + 2, W + 2 * OFF, C), jnp.bfloat16),
        ],
        compiler_params=pltpu.CompilerParams(
            dimension_semantics=("parallel",)),
    )(x_nhwc_padded, params["w_stack"], params["w_out"], params["b_out"],
      params["scales"], params["biases"])


@jax.jit
def simple_fcn_forward(x_nchw, params):
    """Forward matching SimpleFCN.forward (num_outputs=1). NCHW in / NCHW out."""
    N, Cin, H, W = x_nchw.shape
    x = jnp.transpose(x_nchw, (0, 2, 3, 1))                     # NCHW -> NHWC
    x = jnp.pad(x, ((0, 0), (0, 0), (0, 0), (0, C - Cin)))      # lane-pad Cin
    out = fused_forward(x.astype(jnp.bfloat16), params)         # (N, 8, H*W)
    return out[:, :1, :].reshape(N, 1, H, W)                    # row 0 = output


def init_params(key, in_features=18,
                channel_dims=(16, 32, 64, 128, 64, 32, 16),
                num_outputs=1):
    """Deterministic synthetic parameters. Conv bias + eval-mode BatchNorm are
    folded to per-channel scale/bias; everything is zero-padded to C=128
    channels so the fused kernel is fully lane-dense (padded channels get
    zero weights / scale=0 / bias=0 and stay exactly zero)."""
    assert num_outputs <= OUTR
    eps = 1e-5
    w_rows, s_rows, b_rows = [], [], []
    cin = in_features
    for cout in channel_dims:
        key, k1, k2, k3, k4, k5, k6 = jax.random.split(key, 7)
        w = jax.random.normal(k1, (KSZ, KSZ, cin, cout), jnp.float32) * 0.1
        cb = jax.random.normal(k2, (cout,), jnp.float32) * 0.1
        gamma = 1.0 + 0.1 * jax.random.normal(k3, (cout,), jnp.float32)
        beta = 0.1 * jax.random.normal(k4, (cout,), jnp.float32)
        rmean = 0.1 * jax.random.normal(k5, (cout,), jnp.float32)
        rvar = jnp.abs(1.0 + 0.1 * jax.random.normal(k6, (cout,), jnp.float32))
        scale = gamma / jnp.sqrt(rvar + eps)
        bias = scale * (cb - rmean) + beta
        wp = jnp.zeros((KSZ, KSZ, C, C), jnp.float32)
        wp = wp.at[:, :, :cin, :cout].set(w)
        w_rows.append(wp.reshape(NTAPS * C, C))
        s_rows.append(jnp.zeros((C,), jnp.float32).at[:cout].set(scale))
        b_rows.append(jnp.zeros((C,), jnp.float32).at[:cout].set(bias))
        cin = cout
    key, k1, k2 = jax.random.split(key, 3)
    wout = jax.random.normal(k1, (cin, num_outputs), jnp.float32) * 0.1
    bout = jax.random.normal(k2, (num_outputs,), jnp.float32) * 0.1
    wout_rows = jnp.zeros((OUTR, C), jnp.float32).at[:num_outputs, :cin].set(wout.T)
    bout_col = jnp.zeros((OUTR, 1), jnp.float32).at[:num_outputs, 0].set(bout)
    return dict(
        w_stack=jnp.stack(w_rows).astype(jnp.bfloat16),        # (7, 9*128, 128)
        w_out=wout_rows.astype(jnp.bfloat16),                  # (8, 128)
        b_out=bout_col,                                        # (8, 1) f32
        scales=jnp.stack(s_rows)[:, None, :],                  # (7, 1, 128) f32
        biases=jnp.stack(b_rows)[:, None, :],                  # (7, 1, 128) f32
    )


@jax.jit
def _reference_forward(x_nchw, params):
    """Pure-JAX reference with the same folded weights, the same bf16 storage
    precision, and the same per-tap f32 accumulation order as the kernel."""
    n_layers = params["w_stack"].shape[0]
    s, b = params["scales"], params["biases"]
    N, Cin, H, W = x_nchw.shape
    x = jnp.transpose(x_nchw, (0, 2, 3, 1))
    a = jnp.pad(x, ((0, 0), (0, 0), (0, 0), (0, C - Cin))).astype(jnp.bfloat16)
    for layer in range(n_layers):
        ap = jnp.pad(a, ((0, 0), (1, 1), (1, 1), (0, 0)))
        acc = jnp.zeros((N, H, W, C), jnp.float32)
        for dy in range(KSZ):
            for dx in range(KSZ):
                t = dy * KSZ + dx
                xs = ap[:, dy:dy + H, dx:dx + W, :].reshape(N * H * W, C)
                wt = params["w_stack"][layer, t * C:(t + 1) * C, :]
                acc += jnp.dot(xs, wt, preferred_element_type=jnp.float32
                               ).reshape(N, H, W, C)
        y = jnp.maximum(acc * s[layer] + b[layer], 0.0)
        a = y.astype(jnp.bfloat16)
    xin = a.reshape(N * H * W, C)
    out = jnp.dot(xin, params["w_out"].T, preferred_element_type=jnp.float32)
    out = out + params["b_out"][:, 0][None, :]
    out = out.reshape(N, H, W, OUTR)[..., :1]
    return jnp.transpose(out, (0, 3, 1, 2))


if __name__ == "__main__":
    key = jax.random.PRNGKey(0)
    kx, kp = jax.random.split(key)

    N, Cin, H, W = 2, 18, 16, 16   # in_features=18 per module default
    x = jax.random.normal(kx, (N, Cin, H, W), jnp.float32)
    params = init_params(kp, in_features=Cin)

    out = simple_fcn_forward(x, params)
    jax.block_until_ready(out)
    assert out.shape == (N, 1, H, W), out.shape

    ref = _reference_forward(x, params)
    err = float(jnp.max(jnp.abs(out - ref)) / (jnp.max(jnp.abs(ref)) + 1e-6))
    assert err < 2e-2, f"kernel mismatch vs reference: normalized max err {err}"
    print("KERNEL_OK")
</pallas_src>

<mosaic_0001>
module attributes {stable_mosaic.version = 11 : i64} {
  func.func @_fused_fcn_kernel(%arg0: i32, %arg1: memref<1x16x16x128xbf16, #tpu.memory_space<vmem>>, %arg2: memref<7x1152x128xbf16, #tpu.memory_space<vmem>>, %arg3: memref<8x128xbf16, #tpu.memory_space<vmem>>, %arg4: memref<8x1xf32, #tpu.memory_space<vmem>>, %arg5: memref<7x1x128xf32, #tpu.memory_space<vmem>>, %arg6: memref<7x1x128xf32, #tpu.memory_space<vmem>>, %arg7: memref<1x8x256xf32, #tpu.memory_space<vmem>>, %arg8: memref<2x18x32x128xbf16, #tpu.memory_space<vmem>>) attributes {dimension_semantics = [#tpu.dimension_semantics<parallel>], iteration_bounds = array<i64: 2>, scalar_prefetch = 0 : i64, scratch_operands = 1 : i64, tpu.core_type = #tpu.core_type<tc>, window_params = [{transform_indices = @transform_0, window_bounds = array<i64: 1, 16, 16, 128>}, {pipeline_mode = #tpu.pipeline_mode<synchronous>, transform_indices = @transform_1, window_bounds = array<i64: 7, 1152, 128>}, {pipeline_mode = #tpu.pipeline_mode<synchronous>, transform_indices = @transform_2, window_bounds = array<i64: 8, 128>}, {pipeline_mode = #tpu.pipeline_mode<synchronous>, transform_indices = @transform_3, window_bounds = array<i64: 8, 1>}, {pipeline_mode = #tpu.pipeline_mode<synchronous>, transform_indices = @transform_4, window_bounds = array<i64: 7, 1, 128>}, {pipeline_mode = #tpu.pipeline_mode<synchronous>, transform_indices = @transform_5, window_bounds = array<i64: 7, 1, 128>}, {transform_indices = @transform_6, window_bounds = array<i64: 1, 8, 256>}]} {
    %cst = arith.constant 0.000000e+00 : bf16
    %0 = vector.broadcast %cst : bf16 to vector<1x32x128xbf16>
    %cst_0 = arith.constant 0.000000e+00 : bf16
    %1 = vector.broadcast %cst_0 : bf16 to vector<16x8x128xbf16>
    %c0 = arith.constant 0 : index
    %c0_1 = arith.constant 0 : index
    %c0_2 = arith.constant 0 : index
    %c0_3 = arith.constant 0 : index
    %2 = vector.load %arg8[%c0, %c0_1, %c0_2, %c0_3] : memref<2x18x32x128xbf16, #tpu.memory_space<vmem>>, vector<1x1x32x128xbf16>
    %3 = vector.shape_cast %2 : vector<1x1x32x128xbf16> to vector<1x32x128xbf16>
    %4 = vector.shape_cast %0 : vector<1x32x128xbf16> to vector<1x1x32x128xbf16>
    tpu.vector_store %arg8[%c0, %c0_1, %c0_2, %c0_3], %4 {strides = array<i32>} : memref<2x18x32x128xbf16, #tpu.memory_space<vmem>>, vector<1x1x32x128xbf16>,
    %c0_4 = arith.constant 0 : index
    %c17 = arith.constant 17 : index
    %c0_5 = arith.constant 0 : index
    %c0_6 = arith.constant 0 : index
    %5 = vector.load %arg8[%c0_4, %c17, %c0_5, %c0_6] : memref<2x18x32x128xbf16, #tpu.memory_space<vmem>>, vector<1x1x32x128xbf16>
    %6 = vector.shape_cast %5 : vector<1x1x32x128xbf16> to vector<1x32x128xbf16>
    %7 = vector.shape_cast %0 : vector<1x32x128xbf16> to vector<1x1x32x128xbf16>
    tpu.vector_store %arg8[%c0_4, %c17, %c0_5, %c0_6], %7 {strides = array<i32>} : memref<2x18x32x128xbf16, #tpu.memory_space<vmem>>, vector<1x1x32x128xbf16>,
    %c0_7 = arith.constant 0 : index
    %c1 = arith.constant 1 : index
    %c0_8 = arith.constant 0 : index
    %c0_9 = arith.constant 0 : index
    %8 = vector.load %arg8[%c0_7, %c1, %c0_8, %c0_9] : memref<2x18x32x128xbf16, #tpu.memory_space<vmem>>, vector<1x16x8x128xbf16>
    %9 = vector.shape_cast %8 : vector<1x16x8x128xbf16> to vector<16x8x128xbf16>
    %10 = vector.shape_cast %1 : vector<16x8x128xbf16> to vector<1x16x8x128xbf16>
    tpu.vector_store %arg8[%c0_7, %c1, %c0_8, %c0_9], %10 {strides = array<i32>} : memref<2x18x32x128xbf16, #tpu.memory_space<vmem>>, vector<1x16x8x128xbf16>,
    %c0_10 = arith.constant 0 : index
    %c1_11 = arith.constant 1 : index
    %c24 = arith.constant 24 : index
    %c0_12 = arith.constant 0 : index
    %11 = vector.load %arg8[%c0_10, %c1_11, %c24, %c0_12] : memref<2x18x32x128xbf16, #tpu.memory_space<vmem>>, vector<1x16x8x128xbf16>
    %12 = vector.shape_cast %11 : vector<1x16x8x128xbf16> to vector<16x8x128xbf16>
    %13 = vector.shape_cast %1 : vector<16x8x128xbf16> to vector<1x16x8x128xbf16>
    tpu.vector_store %arg8[%c0_10, %c1_11, %c24, %c0_12], %13 {strides = array<i32>} : memref<2x18x32x128xbf16, #tpu.memory_space<vmem>>, vector<1x16x8x128xbf16>,
    %c1_13 = arith.constant 1 : index
    %c0_14 = arith.constant 0 : index
    %c0_15 = arith.constant 0 : index
    %c0_16 = arith.constant 0 : index
    %14 = vector.load %arg8[%c1_13, %c0_14, %c0_15, %c0_16] : memref<2x18x32x128xbf16, #tpu.memory_space<vmem>>, vector<1x1x32x128xbf16>
    %15 = vector.shape_cast %14 : vector<1x1x32x128xbf16> to vector<1x32x128xbf16>
    %16 = vector.shape_cast %0 : vector<1x32x128xbf16> to vector<1x1x32x128xbf16>
    tpu.vector_store %arg8[%c1_13, %c0_14, %c0_15, %c0_16], %16 {strides = array<i32>} : memref<2x18x32x128xbf16, #tpu.memory_space<vmem>>, vector<1x1x32x128xbf16>,
    %c1_17 = arith.constant 1 : index
    %c17_18 = arith.constant 17 : index
    %c0_19 = arith.constant 0 : index
    %c0_20 = arith.constant 0 : index
    %17 = vector.load %arg8[%c1_17, %c17_18, %c0_19, %c0_20] : memref<2x18x32x128xbf16, #tpu.memory_space<vmem>>, vector<1x1x32x128xbf16>
    %18 = vector.shape_cast %17 : vector<1x1x32x128xbf16> to vector<1x32x128xbf16>
    %19 = vector.shape_cast %0 : vector<1x32x128xbf16> to vector<1x1x32x128xbf16>
    tpu.vector_store %arg8[%c1_17, %c17_18, %c0_19, %c0_20], %19 {strides = array<i32>} : memref<2x18x32x128xbf16, #tpu.memory_space<vmem>>, vector<1x1x32x128xbf16>,
    %c1_21 = arith.constant 1 : index
    %c1_22 = arith.constant 1 : index
    %c0_23 = arith.constant 0 : index
    %c0_24 = arith.constant 0 : index
    %20 = vector.load %arg8[%c1_21, %c1_22, %c0_23, %c0_24] : memref<2x18x32x128xbf16, #tpu.memory_space<vmem>>, vector<1x16x8x128xbf16>
    %21 = vector.shape_cast %20 : vector<1x16x8x128xbf16> to vector<16x8x128xbf16>
    %22 = vector.shape_cast %1 : vector<16x8x128xbf16> to vector<1x16x8x128xbf16>
    tpu.vector_store %arg8[%c1_21, %c1_22, %c0_23, %c0_24], %22 {strides = array<i32>} : memref<2x18x32x128xbf16, #tpu.memory_space<vmem>>, vector<1x16x8x128xbf16>,
    %c1_25 = arith.constant 1 : index
    %c1_26 = arith.constant 1 : index
    %c24_27 = arith.constant 24 : index
    %c0_28 = arith.constant 0 : index
    %23 = vector.load %arg8[%c1_25, %c1_26, %c24_27, %c0_28] : memref<2x18x32x128xbf16, #tpu.memory_space<vmem>>, vector<1x16x8x128xbf16>
    %24 = vector.shape_cast %23 : vector<1x16x8x128xbf16> to vector<16x8x128xbf16>
    %25 = vector.shape_cast %1 : vector<16x8x128xbf16> to vector<1x16x8x128xbf16>
    tpu.vector_store %arg8[%c1_25, %c1_26, %c24_27, %c0_28], %25 {strides = array<i32>} : memref<2x18x32x128xbf16, #tpu.memory_space<vmem>>, vector<1x16x8x128xbf16>,
    %c0_29 = arith.constant 0 : index
    %c0_30 = arith.constant 0 : index
    %c0_31 = arith.constant 0 : index
    %c0_32 = arith.constant 0 : index
    %26 = vector.load %arg1[%c0_29, %c0_30, %c0_31, %c0_32] : memref<1x16x16x128xbf16, #tpu.memory_space<vmem>>, vector<1x16x16x128xbf16>
    %27 = vector.shape_cast %26 : vector<1x16x16x128xbf16> to vector<16x16x128xbf16>
    %c0_33 = arith.constant 0 : index
    %c1_34 = arith.constant 1 : index
    %c8 = arith.constant 8 : index
    %c0_35 = arith.constant 0 : index
    %28 = vector.load %arg8[%c0_33, %c1_34, %c8, %c0_35] : memref<2x18x32x128xbf16, #tpu.memory_space<vmem>>, vector<1x16x16x128xbf16>
    %29 = vector.shape_cast %28 : vector<1x16x16x128xbf16> to vector<16x16x128xbf16>
    %30 = vector.shape_cast %27 : vector<16x16x128xbf16> to vector<1x16x16x128xbf16>
    tpu.vector_store %arg8[%c0_33, %c1_34, %c8, %c0_35], %30 {strides = array<i32>} : memref<2x18x32x128xbf16, #tpu.memory_space<vmem>>, vector<1x16x16x128xbf16>,
    %c0_i32 = arith.constant 0 : i32
    %c7_i32 = arith.constant 7 : i32
    %31 = arith.addi %c0_i32, %c7_i32 : i32
    %c1_i32 = arith.constant 1 : i32
    scf.for %arg9 = %c0_i32 to %31 step %c1_i32  : i32 {
      %c2_i32 = arith.constant 2 : i32
      %54 = arith.remsi %arg9, %c2_i32 : i32
      %c1_i32_55 = arith.constant 1 : i32
      %55 = arith.subi %c1_i32_55, %54 : i32
      %56 = arith.index_cast %arg9 : i32 to index
      %c0_56 = arith.constant 0 : index
      %c0_57 = arith.constant 0 : index
      %57 = vector.load %arg5[%56, %c0_56, %c0_57] : memref<7x1x128xf32, #tpu.memory_space<vmem>>, vector<1x1x128xf32>
      %58 = vector.shape_cast %57 : vector<1x1x128xf32> to vector<1x128xf32>
      %59 = arith.index_cast %arg9 : i32 to index
      %c0_58 = arith.constant 0 : index
      %c0_59 = arith.constant 0 : index
      %60 = vector.load %arg6[%59, %c0_58, %c0_59] : memref<7x1x128xf32, #tpu.memory_space<vmem>>, vector<1x1x128xf32>
      %61 = vector.shape_cast %60 : vector<1x1x128xf32> to vector<1x128xf32>
      %cst_60 = arith.constant 0.000000e+00 : f32
      %62 = vector.broadcast %cst_60 : f32 to vector<128x128xf32>
      %63 = arith.index_cast %54 : i32 to index
      %c0_61 = arith.constant 0 : index
      %c0_62 = arith.constant 0 : index
      %c0_63 = arith.constant 0 : index
      %64 = vector.load %arg8[%63, %c0_61, %c0_62, %c0_63] : memref<2x18x32x128xbf16, #tpu.memory_space<vmem>>, vector<1x8x32x128xbf16>
      %65 = vector.shape_cast %64 : vector<1x8x32x128xbf16> to vector<8x32x128xbf16>
      %66 = vector.extract_strided_slice %65 {offsets = [0, 7, 0], sizes = [8, 16, 128], strides = [1, 1, 1]} : vector<8x32x128xbf16> to vector<8x16x128xbf16>
      %67 = vector.shape_cast %66 : vector<8x16x128xbf16> to vector<128x128xbf16>
      %68 = arith.index_cast %arg9 : i32 to index
      %c0_64 = arith.constant 0 : index
      %c0_65 = arith.constant 0 : index
      %69 = vector.load %arg2[%68, %c0_64, %c0_65] : memref<7x1152x128xbf16, #tpu.memory_space<vmem>>, vector<1x128x128xbf16>
      %70 = vector.shape_cast %69 : vector<1x128x128xbf16> to vector<128x128xbf16>
      %cst_66 = arith.constant dense<0.000000e+00> : vector<128x128xf32>
      %71 = tpu.matmul %67, %70, %cst_66 {dimension_numbers = #tpu.dot_dimension_numbers<[1], [0], [0], [1], [0, 0, 1, 1], [], []>} : vector<128x128xbf16>, vector<128x128xbf16>, vector<128x128xf32> -> vector<128x128xf32>
      %72 = arith.addf %62, %71 : vector<128x128xf32>
      %73 = vector.extract_strided_slice %65 {offsets = [0, 8, 0], sizes = [8, 16, 128], strides = [1, 1, 1]} : vector<8x32x128xbf16> to vector<8x16x128xbf16>
      %74 = vector.shape_cast %73 : vector<8x16x128xbf16> to vector<128x128xbf16>
      %75 = arith.index_cast %arg9 : i32 to index
      %c128_67 = arith.constant 128 : index
      %c0_68 = arith.constant 0 : index
      %76 = vector.load %arg2[%75, %c128_67, %c0_68] : memref<7x1152x128xbf16, #tpu.memory_space<vmem>>, vector<1x128x128xbf16>
      %77 = vector.shape_cast %76 : vector<1x128x128xbf16> to vector<128x128xbf16>
      %cst_69 = arith.constant dense<0.000000e+00> : vector<128x128xf32>
      %78 = tpu.matmul %74, %77, %cst_69 {dimension_numbers = #tpu.dot_dimension_numbers<[1], [0], [0], [1], [0, 0, 1, 1], [], []>} : vector<128x128xbf16>, vector<128x128xbf16>, vector<128x128xf32> -> vector<128x128xf32>
      %79 = arith.addf %72, %78 : vector<128x128xf32>
      %80 = vector.extract_strided_slice %65 {offsets = [0, 9, 0], sizes = [8, 16, 128], strides = [1, 1, 1]} : vector<8x32x128xbf16> to vector<8x16x128xbf16>
      %81 = vector.shape_cast %80 : vector<8x16x128xbf16> to vector<128x128xbf16>
      %82 = arith.index_cast %arg9 : i32 to index
      %c256 = arith.constant 256 : index
      %c0_70 = arith.constant 0 : index
      %83 = vector.load %arg2[%82, %c256, %c0_70] : memref<7x1152x128xbf16, #tpu.memory_space<vmem>>, vector<1x128x128xbf16>
      %84 = vector.shape_cast %83 : vector<1x128x128xbf16> to vector<128x128xbf16>
      %cst_71 = arith.constant dense<0.000000e+00> : vector<128x128xf32>
      %85 = tpu.matmul %81, %84, %cst_71 {dimension_numbers = #tpu.dot_dimension_numbers<[1], [0], [0], [1], [0, 0, 1, 1], [], []>} : vector<128x128xbf16>, vector<128x128xbf16>, vector<128x128xf32> -> vector<128x128xf32>
      %86 = arith.addf %79, %85 : vector<128x128xf32>
      %87 = arith.index_cast %54 : i32 to index
      %c1_72 = arith.constant 1 : index
      %c0_73 = arith.constant 0 : index
      %c0_74 = arith.constant 0 : index
      %88 = vector.load %arg8[%87, %c1_72, %c0_73, %c0_74] : memref<2x18x32x128xbf16, #tpu.memory_space<vmem>>, vector<1x8x32x128xbf16>
      %89 = vector.shape_cast %88 : vector<1x8x32x128xbf16> to vector<8x32x128xbf16>
      %90 = vector.extract_strided_slice %89 {offsets = [0, 7, 0], sizes = [8, 16, 128], strides = [1, 1, 1]} : vector<8x32x128xbf16> to vector<8x16x128xbf16>
      %91 = vector.shape_cast %90 : vector<8x16x128xbf16> to vector<128x128xbf16>
      %92 = arith.index_cast %arg9 : i32 to index
      %c384 = arith.constant 384 : index
      %c0_75 = arith.constant 0 : index
      %93 = vector.load %arg2[%92, %c384, %c0_75] : memref<7x1152x128xbf16, #tpu.memory_space<vmem>>, vector<1x128x128xbf16>
      %94 = vector.shape_cast %93 : vector<1x128x128xbf16> to vector<128x128xbf16>
      %cst_76 = arith.constant dense<0.000000e+00> : vector<128x128xf32>
      %95 = tpu.matmul %91, %94, %cst_76 {dimension_numbers = #tpu.dot_dimension_numbers<[1], [0], [0], [1], [0, 0, 1, 1], [], []>} : vector<128x128xbf16>, vector<128x128xbf16>, vector<128x128xf32> -> vector<128x128xf32>
      %96 = arith.addf %86, %95 : vector<128x128xf32>
      %97 = vector.extract_strided_slice %89 {offsets = [0, 8, 0], sizes = [8, 16, 128], strides = [1, 1, 1]} : vector<8x32x128xbf16> to vector<8x16x128xbf16>
      %98 = vector.shape_cast %97 : vector<8x16x128xbf16> to vector<128x128xbf16>
      %99 = arith.index_cast %arg9 : i32 to index
      %c512 = arith.constant 512 : index
      %c0_77 = arith.constant 0 : index
      %100 = vector.load %arg2[%99, %c512, %c0_77] : memref<7x1152x128xbf16, #tpu.memory_space<vmem>>, vector<1x128x128xbf16>
      %101 = vector.shape_cast %100 : vector<1x128x128xbf16> to vector<128x128xbf16>
      %cst_78 = arith.constant dense<0.000000e+00> : vector<128x128xf32>
      %102 = tpu.matmul %98, %101, %cst_78 {dimension_numbers = #tpu.dot_dimension_numbers<[1], [0], [0], [1], [0, 0, 1, 1], [], []>} : vector<128x128xbf16>, vector<128x128xbf16>, vector<128x128xf32> -> vector<128x128xf32>
      %103 = arith.addf %96, %102 : vector<128x128xf32>
      %104 = vector.extract_strided_slice %89 {offsets = [0, 9, 0], sizes = [8, 16, 128], strides = [1, 1, 1]} : vector<8x32x128xbf16> to vector<8x16x128xbf16>
      %105 = vector.shape_cast %104 : vector<8x16x128xbf16> to vector<128x128xbf16>
      %106 = arith.index_cast %arg9 : i32 to index
      %c640 = arith.constant 640 : index
      %c0_79 = arith.constant 0 : index
      %107 = vector.load %arg2[%106, %c640, %c0_79] : memref<7x1152x128xbf16, #tpu.memory_space<vmem>>, vector<1x128x128xbf16>
      %108 = vector.shape_cast %107 : vector<1x128x128xbf16> to vector<128x128xbf16>
      %cst_80 = arith.constant dense<0.000000e+00> : vector<128x128xf32>
      %109 = tpu.matmul %105, %108, %cst_80 {dimension_numbers = #tpu.dot_dimension_numbers<[1], [0], [0], [1], [0, 0, 1, 1], [], []>} : vector<128x128xbf16>, vector<128x128xbf16>, vector<128x128xf32> -> vector<128x128xf32>
      %110 = arith.addf %103, %109 : vector<128x128xf32>
      %111 = arith.index_cast %54 : i32 to index
      %c2 = arith.constant 2 : index
      %c0_81 = arith.constant 0 : index
      %c0_82 = arith.constant 0 : index
      %112 = vector.load %arg8[%111, %c2, %c0_81, %c0_82] : memref<2x18x32x128xbf16, #tpu.memory_space<vmem>>, vector<1x8x32x128xbf16>
      %113 = vector.shape_cast %112 : vector<1x8x32x128xbf16> to vector<8x32x128xbf16>
      %114 = vector.extract_strided_slice %113 {offsets = [0, 7, 0], sizes = [8, 16, 128], strides = [1, 1, 1]} : vector<8x32x128xbf16> to vector<8x16x128xbf16>
      %115 = vector.shape_cast %114 : vector<8x16x128xbf16> to vector<128x128xbf16>
      %116 = arith.index_cast %arg9 : i32 to index
      %c768 = arith.constant 768 : index
      %c0_83 = arith.constant 0 : index
      %117 = vector.load %arg2[%116, %c768, %c0_83] : memref<7x1152x128xbf16, #tpu.memory_space<vmem>>, vector<1x128x128xbf16>
      %118 = vector.shape_cast %117 : vector<1x128x128xbf16> to vector<128x128xbf16>
      %cst_84 = arith.constant dense<0.000000e+00> : vector<128x128xf32>
      %119 = tpu.matmul %115, %118, %cst_84 {dimension_numbers = #tpu.dot_dimension_numbers<[1], [0], [0], [1], [0, 0, 1, 1], [], []>} : vector<128x128xbf16>, vector<128x128xbf16>, vector<128x128xf32> -> vector<128x128xf32>
      %120 = arith.addf %110, %119 : vector<128x128xf32>
      %121 = vector.extract_strided_slice %113 {offsets = [0, 8, 0], sizes = [8, 16, 128], strides = [1, 1, 1]} : vector<8x32x128xbf16> to vector<8x16x128xbf16>
      %122 = vector.shape_cast %121 : vector<8x16x128xbf16> to vector<128x128xbf16>
      %123 = arith.index_cast %arg9 : i32 to index
      %c896 = arith.constant 896 : index
      %c0_85 = arith.constant 0 : index
      %124 = vector.load %arg2[%123, %c896, %c0_85] : memref<7x1152x128xbf16, #tpu.memory_space<vmem>>, vector<1x128x128xbf16>
      %125 = vector.shape_cast %124 : vector<1x128x128xbf16> to vector<128x128xbf16>
      %cst_86 = arith.constant dense<0.000000e+00> : vector<128x128xf32>
      %126 = tpu.matmul %122, %125, %cst_86 {dimension_numbers = #tpu.dot_dimension_numbers<[1], [0], [0], [1], [0, 0, 1, 1], [], []>} : vector<128x128xbf16>, vector<128x128xbf16>, vector<128x128xf32> -> vector<128x128xf32>
      %127 = arith.addf %120, %126 : vector<128x128xf32>
      %128 = vector.extract_strided_slice %113 {offsets = [0, 9, 0], sizes = [8, 16, 128], strides = [1, 1, 1]} : vector<8x32x128xbf16> to vector<8x16x128xbf16>
      %129 = vector.shape_cast %128 : vector<8x16x128xbf16> to vector<128x128xbf16>
      %130 = arith.index_cast %arg9 : i32 to index
      %c1024 = arith.constant 1024 : index
      %c0_87 = arith.constant 0 : index
      %131 = vector.load %arg2[%130, %c1024, %c0_87] : memref<7x1152x128xbf16, #tpu.memory_space<vmem>>, vector<1x128x128xbf16>
      %132 = vector.shape_cast %131 : vector<1x128x128xbf16> to vector<128x128xbf16>
      %cst_88 = arith.constant dense<0.000000e+00> : vector<128x128xf32>
      %133 = tpu.matmul %129, %132, %cst_88 {dimension_numbers = #tpu.dot_dimension_numbers<[1], [0], [0], [1], [0, 0, 1, 1], [], []>} : vector<128x128xbf16>, vector<128x128xbf16>, vector<128x128xf32> -> vector<128x128xf32>
      %134 = arith.addf %127, %133 : vector<128x128xf32>
      %135 = vector.broadcast %58 : vector<1x128xf32> to vector<128x128xf32>
      %136 = arith.mulf %134, %135 : vector<128x128xf32>
      %137 = vector.broadcast %61 : vector<1x128xf32> to vector<128x128xf32>
      %138 = arith.addf %136, %137 : vector<128x128xf32>
      %cst_89 = arith.constant 0.000000e+00 : f32
      %139 = vector.broadcast %cst_89 : f32 to vector<128x128xf32>
      %140 = arith.maximumf %138, %139 : vector<128x128xf32>
      %141 = vector.shape_cast %140 : vector<128x128xf32> to vector<8x16x128xf32>
      %142 = arith.truncf %141 : vector<8x16x128xf32> to vector<8x16x128xbf16>
      %143 = arith.index_cast %55 : i32 to index
      %c1_90 = arith.constant 1 : index
      %c8_91 = arith.constant 8 : index
      %c0_92 = arith.constant 0 : index
      %144 = vector.load %arg8[%143, %c1_90, %c8_91, %c0_92] : memref<2x18x32x128xbf16, #tpu.memory_space<vmem>>, vector<1x8x16x128xbf16>
      %145 = vector.shape_cast %144 : vector<1x8x16x128xbf16> to vector<8x16x128xbf16>
      %146 = vector.shape_cast %142 : vector<8x16x128xbf16> to vector<1x8x16x128xbf16>
      tpu.vector_store %arg8[%143, %c1_90, %c8_91, %c0_92], %146 {strides = array<i32>} : memref<2x18x32x128xbf16, #tpu.memory_space<vmem>>, vector<1x8x16x128xbf16>,
      %cst_93 = arith.constant 0.000000e+00 : f32
      %147 = vector.broadcast %cst_93 : f32 to vector<128x128xf32>
      %148 = arith.index_cast %54 : i32 to index
      %c8_94 = arith.constant 8 : index
      %c0_95 = arith.constant 0 : index
      %c0_96 = arith.constant 0 : index
      %149 = vector.load %arg8[%148, %c8_94, %c0_95, %c0_96] : memref<2x18x32x128xbf16, #tpu.memory_space<vmem>>, vector<1x8x32x128xbf16>
      %150 = vector.shape_cast %149 : vector<1x8x32x128xbf16> to vector<8x32x128xbf16>
      %151 = vector.extract_strided_slice %150 {offsets = [0, 7, 0], sizes = [8, 16, 128], strides = [1, 1, 1]} : vector<8x32x128xbf16> to vector<8x16x128xbf16>
      %152 = vector.shape_cast %151 : vector<8x16x128xbf16> to vector<128x128xbf16>
      %153 = arith.index_cast %arg9 : i32 to index
      %c0_97 = arith.constant 0 : index
      %c0_98 = arith.constant 0 : index
      %154 = vector.load %arg2[%153, %c0_97, %c0_98] : memref<7x1152x128xbf16, #tpu.memory_space<vmem>>, vector<1x128x128xbf16>
      %155 = vector.shape_cast %154 : vector<1x128x128xbf16> to vector<128x128xbf16>
      %cst_99 = arith.constant dense<0.000000e+00> : vector<128x128xf32>
      %156 = tpu.matmul %152, %155, %cst_99 {dimension_numbers = #tpu.dot_dimension_numbers<[1], [0], [0], [1], [0, 0, 1, 1], [], []>} : vector<128x128xbf16>, vector<128x128xbf16>, vector<128x128xf32> -> vector<128x128xf32>
      %157 = arith.addf %147, %156 : vector<128x128xf32>
      %158 = vector.extract_strided_slice %150 {offsets = [0, 8, 0], sizes = [8, 16, 128], strides = [1, 1, 1]} : vector<8x32x128xbf16> to vector<8x16x128xbf16>
      %159 = vector.shape_cast %158 : vector<8x16x128xbf16> to vector<128x128xbf16>
      %160 = arith.index_cast %arg9 : i32 to index
      %c128_100 = arith.constant 128 : index
      %c0_101 = arith.constant 0 : index
      %161 = vector.load %arg2[%160, %c128_100, %c0_101] : memref<7x1152x128xbf16, #tpu.memory_space<vmem>>, vector<1x128x128xbf16>
      %162 = vector.shape_cast %161 : vector<1x128x128xbf16> to vector<128x128xbf16>
      %cst_102 = arith.constant dense<0.000000e+00> : vector<128x128xf32>
      %163 = tpu.matmul %159, %162, %cst_102 {dimension_numbers = #tpu.dot_dimension_numbers<[1], [0], [0], [1], [0, 0, 1, 1], [], []>} : vector<128x128xbf16>, vector<128x128xbf16>, vector<128x128xf32> -> vector<128x128xf32>
      %164 = arith.addf %157, %163 : vector<128x128xf32>
      %165 = vector.extract_strided_slice %150 {offsets = [0, 9, 0], sizes = [8, 16, 128], strides = [1, 1, 1]} : vector<8x32x128xbf16> to vector<8x16x128xbf16>
      %166 = vector.shape_cast %165 : vector<8x16x128xbf16> to vector<128x128xbf16>
      %167 = arith.index_cast %arg9 : i32 to index
      %c256_103 = arith.constant 256 : index
      %c0_104 = arith.constant 0 : index
      %168 = vector.load %arg2[%167, %c256_103, %c0_104] : memref<7x1152x128xbf16, #tpu.memory_space<vmem>>, vector<1x128x128xbf16>
      %169 = vector.shape_cast %168 : vector<1x128x128xbf16> to vector<128x128xbf16>
      %cst_105 = arith.constant dense<0.000000e+00> : vector<128x128xf32>
      %170 = tpu.matmul %166, %169, %cst_105 {dimension_numbers = #tpu.dot_dimension_numbers<[1], [0], [0], [1], [0, 0, 1, 1], [], []>} : vector<128x128xbf16>, vector<128x128xbf16>, vector<128x128xf32> -> vector<128x128xf32>
      %171 = arith.addf %164, %170 : vector<128x128xf32>
      %172 = arith.index_cast %54 : i32 to index
      %c9_106 = arith.constant 9 : index
      %c0_107 = arith.constant 0 : index
      %c0_108 = arith.constant 0 : index
      %173 = vector.load %arg8[%172, %c9_106, %c0_107, %c0_108] : memref<2x18x32x128xbf16, #tpu.memory_space<vmem>>, vector<1x8x32x128xbf16>
      %174 = vector.shape_cast %173 : vector<1x8x32x128xbf16> to vector<8x32x128xbf16>
      %175 = vector.extract_strided_slice %174 {offsets = [0, 7, 0], sizes = [8, 16, 128], strides = [1, 1, 1]} : vector<8x32x128xbf16> to vector<8x16x128xbf16>
      %176 = vector.shape_cast %175 : vector<8x16x128xbf16> to vector<128x128xbf16>
      %177 = arith.index_cast %arg9 : i32 to index
      %c384_109 = arith.constant 384 : index
      %c0_110 = arith.constant 0 : index
      %178 = vector.load %arg2[%177, %c384_109, %c0_110] : memref<7x1152x128xbf16, #tpu.memory_space<vmem>>, vector<1x128x128xbf16>
      %179 = vector.shape_cast %178 : vector<1x128x128xbf16> to vector<128x128xbf16>
      %cst_111 = arith.constant dense<0.000000e+00> : vector<128x128xf32>
      %180 = tpu.matmul %176, %179, %cst_111 {dimension_numbers = #tpu.dot_dimension_numbers<[1], [0], [0], [1], [0, 0, 1, 1], [], []>} : vector<128x128xbf16>, vector<128x128xbf16>, vector<128x128xf32> -> vector<128x128xf32>
      %181 = arith.addf %171, %180 : vector<128x128xf32>
      %182 = vector.extract_strided_slice %174 {offsets = [0, 8, 0], sizes = [8, 16, 128], strides = [1, 1, 1]} : vector<8x32x128xbf16> to vector<8x16x128xbf16>
      %183 = vector.shape_cast %182 : vector<8x16x128xbf16> to vector<128x128xbf16>
      %184 = arith.index_cast %arg9 : i32 to index
      %c512_112 = arith.constant 512 : index
      %c0_113 = arith.constant 0 : index
      %185 = vector.load %arg2[%184, %c512_112, %c0_113] : memref<7x1152x128xbf16, #tpu.memory_space<vmem>>, vector<1x128x128xbf16>
      %186 = vector.shape_cast %185 : vector<1x128x128xbf16> to vector<128x128xbf16>
      %cst_114 = arith.constant dense<0.000000e+00> : vector<128x128xf32>
      %187 = tpu.matmul %183, %186, %cst_114 {dimension_numbers = #tpu.dot_dimension_numbers<[1], [0], [0], [1], [0, 0, 1, 1], [], []>} : vector<128x128xbf16>, vector<128x128xbf16>, vector<128x128xf32> -> vector<128x128xf32>
      %188 = arith.addf %181, %187 : vector<128x128xf32>
      %189 = vector.extract_strided_slice %174 {offsets = [0, 9, 0], sizes = [8, 16, 128], strides = [1, 1, 1]} : vector<8x32x128xbf16> to vector<8x16x128xbf16>
      %190 = vector.shape_cast %189 : vector<8x16x128xbf16> to vector<128x128xbf16>
      %191 = arith.index_cast %arg9 : i32 to index
      %c640_115 = arith.constant 640 : index
      %c0_116 = arith.constant 0 : index
      %192 = vector.load %arg2[%191, %c640_115, %c0_116] : memref<7x1152x128xbf16, #tpu.memory_space<vmem>>, vector<1x128x128xbf16>
      %193 = vector.shape_cast %192 : vector<1x128x128xbf16> to vector<128x128xbf16>
      %cst_117 = arith.constant dense<0.000000e+00> : vector<128x128xf32>
      %194 = tpu.matmul %190, %193, %cst_117 {dimension_numbers = #tpu.dot_dimension_numbers<[1], [0], [0], [1], [0, 0, 1, 1], [], []>} : vector<128x128xbf16>, vector<128x128xbf16>, vector<128x128xf32> -> vector<128x128xf32>
      %195 = arith.addf %188, %194 : vector<128x128xf32>
      %196 = arith.index_cast %54 : i32 to index
      %c10 = arith.constant 10 : index
      %c0_118 = arith.constant 0 : index
      %c0_119 = arith.constant 0 : index
      %197 = vector.load %arg8[%196, %c10, %c0_118, %c0_119] : memref<2x18x32x128xbf16, #tpu.memory_space<vmem>>, vector<1x8x32x128xbf16>
      %198 = vector.shape_cast %197 : vector<1x8x32x128xbf16> to vector<8x32x128xbf16>
      %199 = vector.extract_strided_slice %198 {offsets = [0, 7, 0], sizes = [8, 16, 128], strides = [1, 1, 1]} : vector<8x32x128xbf16> to vector<8x16x128xbf16>
      %200 = vector.shape_cast %199 : vector<8x16x128xbf16> to vector<128x128xbf16>
      %201 = arith.index_cast %arg9 : i32 to index
      %c768_120 = arith.constant 768 : index
      %c0_121 = arith.constant 0 : index
      %202 = vector.load %arg2[%201, %c768_120, %c0_121] : memref<7x1152x128xbf16, #tpu.memory_space<vmem>>, vector<1x128x128xbf16>
      %203 = vector.shape_cast %202 : vector<1x128x128xbf16> to vector<128x128xbf16>
      %cst_122 = arith.constant dense<0.000000e+00> : vector<128x128xf32>
      %204 = tpu.matmul %200, %203, %cst_122 {dimension_numbers = #tpu.dot_dimension_numbers<[1], [0], [0], [1], [0, 0, 1, 1], [], []>} : vector<128x128xbf16>, vector<128x128xbf16>, vector<128x128xf32> -> vector<128x128xf32>
      %205 = arith.addf %195, %204 : vector<128x128xf32>
      %206 = vector.extract_strided_slice %198 {offsets = [0, 8, 0], sizes = [8, 16, 128], strides = [1, 1, 1]} : vector<8x32x128xbf16> to vector<8x16x128xbf16>
      %207 = vector.shape_cast %206 : vector<8x16x128xbf16> to vector<128x128xbf16>
      %208 = arith.index_cast %arg9 : i32 to index
      %c896_123 = arith.constant 896 : index
      %c0_124 = arith.constant 0 : index
      %209 = vector.load %arg2[%208, %c896_123, %c0_124] : memref<7x1152x128xbf16, #tpu.memory_space<vmem>>, vector<1x128x128xbf16>
      %210 = vector.shape_cast %209 : vector<1x128x128xbf16> to vector<128x128xbf16>
      %cst_125 = arith.constant dense<0.000000e+00> : vector<128x128xf32>
      %211 = tpu.matmul %207, %210, %cst_125 {dimension_numbers = #tpu.dot_dimension_numbers<[1], [0], [0], [1], [0, 0, 1, 1], [], []>} : vector<128x128xbf16>, vector<128x128xbf16>, vector<128x128xf32> -> vector<128x128xf32>
      %212 = arith.addf %205, %211 : vector<128x128xf32>
      %213 = vector.extract_strided_slice %198 {offsets = [0, 9, 0], sizes = [8, 16, 128], strides = [1, 1, 1]} : vector<8x32x128xbf16> to vector<8x16x128xbf16>
      %214 = vector.shape_cast %213 : vector<8x16x128xbf16> to vector<128x128xbf16>
      %215 = arith.index_cast %arg9 : i32 to index
      %c1024_126 = arith.constant 1024 : index
      %c0_127 = arith.constant 0 : index
      %216 = vector.load %arg2[%215, %c1024_126, %c0_127] : memref<7x1152x128xbf16, #tpu.memory_space<vmem>>, vector<1x128x128xbf16>
      %217 = vector.shape_cast %216 : vector<1x128x128xbf16> to vector<128x128xbf16>
      %cst_128 = arith.constant dense<0.000000e+00> : vector<128x128xf32>
      %218 = tpu.matmul %214, %217, %cst_128 {dimension_numbers = #tpu.dot_dimension_numbers<[1], [0], [0], [1], [0, 0, 1, 1], [], []>} : vector<128x128xbf16>, vector<128x128xbf16>, vector<128x128xf32> -> vector<128x128xf32>
      %219 = arith.addf %212, %218 : vector<128x128xf32>
      %220 = vector.broadcast %58 : vector<1x128xf32> to vector<128x128xf32>
      %221 = arith.mulf %219, %220 : vector<128x128xf32>
      %222 = vector.broadcast %61 : vector<1x128xf32> to vector<128x128xf32>
      %223 = arith.addf %221, %222 : vector<128x128xf32>
      %cst_129 = arith.constant 0.000000e+00 : f32
      %224 = vector.broadcast %cst_129 : f32 to vector<128x128xf32>
      %225 = arith.maximumf %223, %224 : vector<128x128xf32>
      %226 = vector.shape_cast %225 : vector<128x128xf32> to vector<8x16x128xf32>
      %227 = arith.truncf %226 : vector<8x16x128xf32> to vector<8x16x128xbf16>
      %228 = arith.index_cast %55 : i32 to index
      %c9_130 = arith.constant 9 : index
      %c8_131 = arith.constant 8 : index
      %c0_132 = arith.constant 0 : index
      %229 = vector.load %arg8[%228, %c9_130, %c8_131, %c0_132] : memref<2x18x32x128xbf16, #tpu.memory_space<vmem>>, vector<1x8x16x128xbf16>
      %230 = vector.shape_cast %229 : vector<1x8x16x128xbf16> to vector<8x16x128xbf16>
      %231 = vector.shape_cast %227 : vector<8x16x128xbf16> to vector<1x8x16x128xbf16>
      tpu.vector_store %arg8[%228, %c9_130, %c8_131, %c0_132], %231 {strides = array<i32>} : memref<2x18x32x128xbf16, #tpu.memory_space<vmem>>, vector<1x8x16x128xbf16>,
    }
    %c7_i32_36 = arith.constant 7 : i32
    %c0_37 = arith.constant 0 : index
    %c0_38 = arith.constant 0 : index
    %32 = vector.load %arg3[%c0_37, %c0_38] : memref<8x128xbf16, #tpu.memory_space<vmem>>, vector<8x128xbf16>
    %c0_39 = arith.constant 0 : index
    %c0_40 = arith.constant 0 : index
    %33 = vector.load %arg4[%c0_39, %c0_40] : memref<8x1xf32, #tpu.memory_space<vmem>>, vector<8x1xf32>
    %c1_41 = arith.constant 1 : index
    %c1_42 = arith.constant 1 : index
    %c8_43 = arith.constant 8 : index
    %c0_44 = arith.constant 0 : index
    %34 = vector.load %arg8[%c1_41, %c1_42, %c8_43, %c0_44] : memref<2x18x32x128xbf16, #tpu.memory_space<vmem>>, vector<1x8x16x128xbf16>
    %35 = vector.shape_cast %34 : vector<1x8x16x128xbf16> to vector<8x16x128xbf16>
    %36 = vector.shape_cast %35 : vector<8x16x128xbf16> to vector<128x128xbf16>
    %37 = tpu.transpose %36, [1, 0] : vector<128x128xbf16> -> vector<128x128xbf16>
    %cst_45 = arith.constant dense<0.000000e+00> : vector<8x128xf32>
    %38 = tpu.matmul %32, %37, %cst_45 {dimension_numbers = #tpu.dot_dimension_numbers<[1], [0], [0], [1], [0, 0, 1, 1], [], []>} : vector<8x128xbf16>, vector<128x128xbf16>, vector<8x128xf32> -> vector<8x128xf32>
    %39 = vector.broadcast %33 : vector<8x1xf32> to vector<8x128xf32>
    %40 = arith.addf %38, %39 : vector<8x128xf32>
    %c0_46 = arith.constant 0 : index
    %c0_47 = arith.constant 0 : index
    %c0_48 = arith.constant 0 : index
    %41 = vector.load %arg7[%c0_46, %c0_47, %c0_48] : memref<1x8x256xf32, #tpu.memory_space<vmem>>, vector<1x8x128xf32>
    %42 = vector.shape_cast %41 : vector<1x8x128xf32> to vector<8x128xf32>
    %43 = vector.shape_cast %40 : vector<8x128xf32> to vector<1x8x128xf32>
    tpu.vector_store %arg7[%c0_46, %c0_47, %c0_48], %43 {strides = array<i32>} : memref<1x8x256xf32, #tpu.memory_space<vmem>>, vector<1x8x128xf32>,
    %c1_49 = arith.constant 1 : index
    %c9 = arith.constant 9 : index
    %c8_50 = arith.constant 8 : index
    %c0_51 = arith.constant 0 : index
    %44 = vector.load %arg8[%c1_49, %c9, %c8_50, %c0_51] : memref<2x18x32x128xbf16, #tpu.memory_space<vmem>>, vector<1x8x16x128xbf16>
    %45 = vector.shape_cast %44 : vector<1x8x16x128xbf16> to vector<8x16x128xbf16>
    %46 = vector.shape_cast %45 : vector<8x16x128xbf16> to vector<128x128xbf16>
    %47 = tpu.transpose %46, [1, 0] : vector<128x128xbf16> -> vector<128x128xbf16>
    %cst_52 = arith.constant dense<0.000000e+00> : vector<8x128xf32>
    %48 = tpu.matmul %32, %47, %cst_52 {dimension_numbers = #tpu.dot_dimension_numbers<[1], [0], [0], [1], [0, 0, 1, 1], [], []>} : vector<8x128xbf16>, vector<128x128xbf16>, vector<8x128xf32> -> vector<8x128xf32>
    %49 = vector.broadcast %33 : vector<8x1xf32> to vector<8x128xf32>
    %50 = arith.addf %48, %49 : vector<8x128xf32>
    %c0_53 = arith.constant 0 : index
    %c0_54 = arith.constant 0 : index
    %c128 = arith.constant 128 : index
    %51 = vector.load %arg7[%c0_53, %c0_54, %c128] : memref<1x8x256xf32, #tpu.memory_space<vmem>>, vector<1x8x128xf32>
    %52 = vector.shape_cast %51 : vector<1x8x128xf32> to vector<8x128xf32>
    %53 = vector.shape_cast %50 : vector<8x128xf32> to vector<1x8x128xf32>
    tpu.vector_store %arg7[%c0_53, %c0_54, %c128], %53 {strides = array<i32>} : memref<1x8x256xf32, #tpu.memory_space<vmem>>, vector<1x8x128xf32>,
    return
  }
  func.func @transform_0(%arg0: i32) -> (i32, i32, i32, i32) {
    %c0_i32 = arith.constant 0 : i32
    %c0_i32_0 = arith.constant 0 : i32
    %c0_i32_1 = arith.constant 0 : i32
    %c0_i32_2 = arith.constant 0 : i32
    return %arg0, %c0_i32, %c0_i32_0, %c0_i32_1 : i32, i32, i32, i32
  }
  func.func @transform_1(%arg0: i32) -> (i32, i32, i32) {
    %c0_i32 = arith.constant 0 : i32
    %c0_i32_0 = arith.constant 0 : i32
    %c0_i32_1 = arith.constant 0 : i32
    %c0_i32_2 = arith.constant 0 : i32
    return %c0_i32, %c0_i32_0, %c0_i32_1 : i32, i32, i32
  }
  func.func @transform_2(%arg0: i32) -> (i32, i32) {
    %c0_i32 = arith.constant 0 : i32
    %c0_i32_0 = arith.constant 0 : i32
    %c0_i32_1 = arith.constant 0 : i32
    return %c0_i32, %c0_i32_0 : i32, i32
  }
  func.func @transform_3(%arg0: i32) -> (i32, i32) {
    %c0_i32 = arith.constant 0 : i32
    %c0_i32_0 = arith.constant 0 : i32
    %c0_i32_1 = arith.constant 0 : i32
    return %c0_i32, %c0_i32_0 : i32, i32
  }
  func.func @transform_4(%arg0: i32) -> (i32, i32, i32) {
    %c0_i32 = arith.constant 0 : i32
    %c0_i32_0 = arith.constant 0 : i32
    %c0_i32_1 = arith.constant 0 : i32
    %c0_i32_2 = arith.constant 0 : i32
    return %c0_i32, %c0_i32_0, %c0_i32_1 : i32, i32, i32
  }
  func.func @transform_5(%arg0: i32) -> (i32, i32, i32) {
    %c0_i32 = arith.constant 0 : i32
    %c0_i32_0 = arith.constant 0 : i32
    %c0_i32_1 = arith.constant 0 : i32
    %c0_i32_2 = arith.constant 0 : i32
    return %c0_i32, %c0_i32_0, %c0_i32_1 : i32, i32, i32
  }
  func.func @transform_6(%arg0: i32) -> (i32, i32, i32) {
    %c0_i32 = arith.constant 0 : i32
    %c0_i32_0 = arith.constant 0 : i32
    %c0_i32_1 = arith.constant 0 : i32
    return %arg0, %c0_i32, %c0_i32_0 : i32, i32, i32
  }
}

</mosaic_0001>

<bundles_post_ra>
// kernel: simple_fcn_forward.1
= control target key start
LH: loop header
LB: loop body
LE: loop exit
PB: predicated region body
PF: predicated region fallthrough
CT: control target
= control target key end

     0   :  { %11 = vsyncpa [#allocation4], 0  ;;  %s12138_s0 = inlined_call_operand.vmem [shape: bf16[2,16,16,128], index: 0, kind: input, shape index: {}]   ;;  %s12139_s1 = inlined_call_operand.hbm [shape: bf16[7,1152,128], index: 1, kind: input, shape index: {}]   ;;  %s12140_s2 = inlined_call_operand.hbm [shape: bf16[8,128], index: 2, kind: input, shape index: {}]   ;;  %s12141_s3 = inlined_call_operand.vmem [shape: f32[8,1], index: 3, kind: input, shape index: {}]   ;;  %s12142_s4 = inlined_call_operand.hbm [shape: f32[7,1,128], index: 4, kind: input, shape index: {}]   ;;  %s12143_s5 = inlined_call_operand.hbm [shape: f32[7,1,128], index: 5, kind: input, shape index: {}]   ;;  %s12144_s6 = inlined_call_operand.vmem [shape: f32[2,8,256], index: 6, kind: output, shape index: {}]  }
   0x1   :  { %12 = vsyncpa [#allocation6], 0 }
   0x2   :  { %13 = vsyncpa [#allocation9], 0  ;;  %s8863_s21 = smov 0  }
   0x3 LB: > { %s8817_s22 = smov [#allocation5]   ;;  %s8869_s24 = sadd.s32 4294967295, %s8811_s21   ;;  %s8811_s21 = sphi %s8863_s21, %s19_s21  }
   0x4   : > { %s207_s23 = sshll.u32 %s8817_s22, 4  ;;  %p6847_p0 = scmp.ge.s32.totalorder %s8811_s21, 1  ;;  %s208_s23 = int_to_ptr.vmem [resolvable:$true] %s207_s23 }
   0x5   : > { %p181_p1 = scmp.lt.s32.totalorder %s8811_s21, 3  ;;  %p8439_p2 = scmp.eq.s32.totalorder %s8869_s24, 0 }
   0x6   : > { %s8818_s26 = smov [#allocation3]   ;;  %s8819_s29 = smov [#allocation7]  }
   0x7   : > { %p8874_p3 = pnand %p6847_p0, %p181_p1  ;;  %s193_s27 = sshll.u32 %s8818_s26, 4  ;;  %s8880_s27 = int_to_ptr.vmem [resolvable:$true] %s193_s27 }
   0x8   : > { %s220_s30 = sshll.u32 %s8819_s29, 4  ;;  %s8696_s7 = scalar_lea.vmem %s208_s23, 64  ;;  %s8888_s30 = int_to_ptr.vmem [resolvable:$true] %s220_s30 }
   0x9   : > { %p8426_p4 = pneg %p8874_p3  ;;  %p8697_p7 = scmp.ne.s32.totalorder %s208_s23, %s8696_s7 }
   0xa   : > { %p8704_p10 = scmp.lt.s32.totalorder %s208_s23, %s208_s23  ;;  %p8705_p11 = scmp.lt.s32.totalorder %s8696_s7, %s8696_s7 }
   0xb   : > { %p8884_p5 = pnand %p8439_p2, %p8426_p4 }
   0xc   : > { %p8706_p12 = por %p8705_p11, %p8704_p10 }
   0xd   : > { %p8687_p6 = pneg %p8884_p5 }
   0xf   : > { %p8699_p8 = pnand %p8697_p7, %p8687_p6 }
  0x11   : > { %p8700_p9 = pneg %p8699_p8 }
  0x13   : > { %p8707_p13 = pnand %p8706_p12, %p8700_p9 }
  0x15   : > { %8710 = shalt.err (!%p8707_p13)
}
  0x16   : > { %8432 = dma.hbm_to_vmem [thread:$0]  (!%p8884_p5), %s12140_s2, 64, %s208_s23, [#allocation6]  }
  0x17   : > { %s8722_s10 = scalar_lea.vmem %s8880_s27, 64512  ;;  %p8730_p7 = scmp.lt.s32.totalorder %s8880_s27, %s8880_s27 }
  0x18   : > { %p8723_p0 = scmp.ne.s32.totalorder %s8880_s27, %s8722_s10  ;;  %p8731_p8 = scmp.lt.s32.totalorder %s8722_s10, %s8722_s10 }
  0x1a   : > { %p8725_p1 = pnand %p8723_p0, %p8687_p6  ;;  %p8732_p9 = por %p8731_p8, %p8730_p7 }
  0x1c   : > { %p8726_p4 = pneg %p8725_p1 }
  0x1e   : > { %p8733_p10 = pnand %p8732_p9, %p8726_p4 }
  0x20   : > { %8736 = shalt.err (!%p8733_p10)
}
  0x21   : > { %s8820_s11 = smov 64   ;;  %s8821_s12 = smov 4  }
  0x22   : > { %8429 = dma.hbm_to_vmem [thread:$0]  (!%p8884_p5), %s12139_s1, 64512, %s8880_s27, [#allocation4], %s8820_s11, %s8820_s11, %s8821_s12  }
  0x23   : > { %s8748_s15 = scalar_lea.vmem %s8888_s30, 112  ;;  %s8755_s16 = scalar_lea.vmem %s8888_s30, 128 }
  0x24   : > { %p8749_p11 = scmp.ne.s32.totalorder %s8888_s30, %s8748_s15  ;;  %p8756_p0 = scmp.lt.s32.totalorder %s8888_s30, %s8888_s30 }
  0x25   : > { %p8757_p1 = scmp.lt.s32.totalorder %s8755_s16, %s8748_s15 }
  0x26   : > { %p8751_p12 = pnand %p8749_p11, %p8687_p6 }
  0x27   : > { %p8758_p4 = por %p8757_p1, %p8756_p0 }
  0x28   : > { %p8752_p13 = pneg %p8751_p12 }
  0x2a   : > { %p8759_p7 = pnand %p8758_p4, %p8752_p13 }
  0x2c   : > { %8762 = shalt.err (!%p8759_p7)
}
  0x2d   : > { %s8822_s17 = smov 16   ;;  %s8823_s18 = smov 1  }
  0x2e   : > { %8435 = dma.hbm_to_vmem [thread:$0]  (!%p8884_p5), %s12142_s4, 112, %s8888_s30, [#allocation6], %s8822_s17, %s8822_s17, %s8823_s18  }
  0x2f   : > { %s8824_s22 = smov [#allocation8]  }
  0x30   : > { %s233_s23 = sshll.u32 %s8824_s22, 4  ;;  %s234_s23 = int_to_ptr.vmem [resolvable:$true] %s233_s23 }
  0x31   : > { %s8774_s26 = scalar_lea.vmem %s234_s23, 112  ;;  %s8781_s27 = scalar_lea.vmem %s234_s23, 128 }
  0x32   : > { %p8775_p8 = scmp.ne.s32.totalorder %s234_s23, %s8774_s26  ;;  %p8782_p11 = scmp.lt.s32.totalorder %s234_s23, %s234_s23 }
  0x33   : > { %p8783_p12 = scmp.lt.s32.totalorder %s8781_s27, %s8774_s26 }
  0x34   : > { %p8777_p9 = pnand %p8775_p8, %p8687_p6 }
  0x35   : > { %p8784_p13 = por %p8783_p12, %p8782_p11 }
  0x36   : > { %p8778_p10 = pneg %p8777_p9 }
  0x38   : > { %p8785_p0 = pnand %p8784_p13, %p8778_p10 }
  0x3a   : > { %8788 = shalt.err (!%p8785_p0)
}
  0x3b   : > { %8438 = dma.hbm_to_vmem [thread:$0]  (!%p8884_p5), %s12143_s5, 112, %s234_s23, [#allocation9], %s8822_s17, %s8822_s17, %s8823_s18  }
  0x3c   : > { %257 = sbr.rel (%p8874_p3) target bundleno = 1215 (0x4bf), region = 44 }
  0x41   : > { %8798 = dma.done.wait (%p8439_p2), [#allocation4], 64512  }
  0x42   : > { %8800 = vsyncadd (%p8439_p2), [#allocation4], 4294902784 }
  0x43   : > { %8802 = dma.done.wait (%p8439_p2), [#allocation6], 176  }
  0x44   : > { %8804 = vsyncadd (%p8439_p2), [#allocation6], 4294967120 }
  0x45   : > { %8806 = dma.done.wait (%p8439_p2), [#allocation9], 112  }
  0x46   : > { %8808 = vsyncadd (%p8439_p2), [#allocation9], 4294967184  ;;  %p299_p3 = scmp.lt.s32.totalorder %s8869_s24, 1  ;;  %v12145_v0 = vmov 0  }
  0x47   : > { %310 = vst [vmem:[#allocation2] sm:$0xf] %v12145_v0  ;;  %311 = vst [vmem:[#allocation2 + $0x4] sm:$0xf] %v12145_v0 }
  0x48   : > { %312 = vst [vmem:[#allocation2 + $0x8] sm:$0xf] %v12145_v0  ;;  %313 = vst [vmem:[#allocation2 + $0xc] sm:$0xf] %v12145_v0  ;;  %s12485_s24 = smov (!%p299_p3, %s8869_s24), 1 }
  0x49   : > { %315 = vst [vmem:[#allocation2 + $0x110] sm:$0xf] %v12145_v0  ;;  %316 = vst [vmem:[#allocation2 + $0x114] sm:$0xf] %v12145_v0  ;;  %s7452_s25 = sshll.u32 %s12485_s24, 7  ;;  %s7453_s28 = sshll.u32 %s12485_s24, 4 }
  0x4a   : > { %317 = vst [vmem:[#allocation2 + $0x118] sm:$0xf] %v12145_v0  ;;  %318 = vst [vmem:[#allocation2 + $0x11c] sm:$0xf] %v12145_v0  ;;  %s9036_s9 = scalar_lea.vmem %s12138_s0, %s7452_s25  ;;  %s9041_s12 = scalar_lea.vmem %s12144_s6, %s7453_s28 }
  0x4b   : > { %320 = vst [vmem:[#allocation2 + $0x10] sm:$0xf] %v12145_v0  ;;  %321 = vst [vmem:[#allocation2 + $0x20] sm:$0xf] %v12145_v0  ;;  %v395_v1 = vld [vmem:[%s9036_s9] sm:$0xff]   ;;  %v397_v2 = vld [vmem:[%s9036_s9 + $0x8] sm:$0xff]  }
  0x4c   : > { %322 = vst [vmem:[#allocation2 + $0x30] sm:$0xf] %v12145_v0  ;;  %323 = vst [vmem:[#allocation2 + $0x40] sm:$0xf] %v12145_v0  ;;  %v399_v3 = vld [vmem:[%s9036_s9 + $0x10] sm:$0xff]   ;;  %v401_v4 = vld [vmem:[%s9036_s9 + $0x18] sm:$0xff]  }
  0x4d   : > { %324 = vst [vmem:[#allocation2 + $0x50] sm:$0xf] %v12145_v0  ;;  %325 = vst [vmem:[#allocation2 + $0x60] sm:$0xf] %v12145_v0  ;;  %v403_v5 = vld [vmem:[%s9036_s9 + $0x20] sm:$0xff]   ;;  %v405_v6 = vld [vmem:[%s9036_s9 + $0x28] sm:$0xff]  }
  0x4e   : > { %326 = vst [vmem:[#allocation2 + $0x70] sm:$0xf] %v12145_v0  ;;  %327 = vst [vmem:[#allocation2 + $0x80] sm:$0xf] %v12145_v0  ;;  %v407_v7 = vld [vmem:[%s9036_s9 + $0x30] sm:$0xff]   ;;  %v409_v8 = vld [vmem:[%s9036_s9 + $0x38] sm:$0xff]  }
  0x4f   : > { %328 = vst [vmem:[#allocation2 + $0x90] sm:$0xf] %v12145_v0  ;;  %329 = vst [vmem:[#allocation2 + $0xa0] sm:$0xf] %v12145_v0  ;;  %v411_v9 = vld [vmem:[%s9036_s9 + $0x40] sm:$0xff]   ;;  %v413_v10 = vld [vmem:[%s9036_s9 + $0x48] sm:$0xff]  }
  0x50   : > { %330 = vst [vmem:[#allocation2 + $0xb0] sm:$0xf] %v12145_v0  ;;  %331 = vst [vmem:[#allocation2 + $0xc0] sm:$0xf] %v12145_v0  ;;  %v415_v11 = vld [vmem:[%s9036_s9 + $0x50] sm:$0xff]   ;;  %v417_v12 = vld [vmem:[%s9036_s9 + $0x58] sm:$0xff]  }
  0x51   : > { %332 = vst [vmem:[#allocation2 + $0xd0] sm:$0xf] %v12145_v0  ;;  %333 = vst [vmem:[#allocation2 + $0xe0] sm:$0xf] %v12145_v0  ;;  %v419_v13 = vld [vmem:[%s9036_s9 + $0x60] sm:$0xff]   ;;  %v421_v14 = vld [vmem:[%s9036_s9 + $0x68] sm:$0xff]  }
  0x52   : > { %334 = vst [vmem:[#allocation2 + $0xf0] sm:$0xf] %v12145_v0  ;;  %335 = vst [vmem:[#allocation2 + $0x100] sm:$0xf] %v12145_v0  ;;  %v423_v15 = vld [vmem:[%s9036_s9 + $0x70] sm:$0xff]   ;;  %v425_v16 = vld [vmem:[%s9036_s9 + $0x78] sm:$0xff]  }
  0x53   : > { %336 = vst [vmem:[#allocation2 + $0x1c] sm:$0xf] %v12145_v0  ;;  %337 = vst [vmem:[#allocation2 + $0x2c] sm:$0xf] %v12145_v0  ;;  %s9059_s24 = smov 0  }
  0x54   : > { %338 = vst [vmem:[#allocation2 + $0x3c] sm:$0xf] %v12145_v0  ;;  %339 = vst [vmem:[#allocation2 + $0x4c] sm:$0xf] %v12145_v0 }
  0x55   : > { %340 = vst [vmem:[#allocation2 + $0x5c] sm:$0xf] %v12145_v0  ;;  %341 = vst [vmem:[#allocation2 + $0x6c] sm:$0xf] %v12145_v0 }
  0x56   : > { %342 = vst [vmem:[#allocation2 + $0x7c] sm:$0xf] %v12145_v0  ;;  %343 = vst [vmem:[#allocation2 + $0x8c] sm:$0xf] %v12145_v0 }
  0x57   : > { %344 = vst [vmem:[#allocation2 + $0x9c] sm:$0xf] %v12145_v0  ;;  %345 = vst [vmem:[#allocation2 + $0xac] sm:$0xf] %v12145_v0 }
  0x58   : > { %346 = vst [vmem:[#allocation2 + $0xbc] sm:$0xf] %v12145_v0  ;;  %347 = vst [vmem:[#allocation2 + $0xcc] sm:$0xf] %v12145_v0 }
  0x59   : > { %348 = vst [vmem:[#allocation2 + $0xdc] sm:$0xf] %v12145_v0  ;;  %349 = vst [vmem:[#allocation2 + $0xec] sm:$0xf] %v12145_v0 }
  0x5a   : > { %350 = vst [vmem:[#allocation2 + $0xfc] sm:$0xf] %v12145_v0  ;;  %351 = vst [vmem:[#allocation2 + $0x10c] sm:$0xf] %v12145_v0 }
  0x5b   : > { %353 = vst [vmem:[#allocation2 + $0x120] sm:$0xf] %v12145_v0  ;;  %354 = vst [vmem:[#allocation2 + $0x124] sm:$0xf] %v12145_v0 }
  0x5c   : > { %355 = vst [vmem:[#allocation2 + $0x128] sm:$0xf] %v12145_v0  ;;  %356 = vst [vmem:[#allocation2 + $0x12c] sm:$0xf] %v12145_v0 }
  0x5d   : > { %358 = vst [vmem:[#allocation2 + $0x230] sm:$0xf] %v12145_v0  ;;  %359 = vst [vmem:[#allocation2 + $0x234] sm:$0xf] %v12145_v0 }
  0x5e   : > { %360 = vst [vmem:[#allocation2 + $0x238] sm:$0xf] %v12145_v0  ;;  %361 = vst [vmem:[#allocation2 + $0x23c] sm:$0xf] %v12145_v0 }
  0x5f   : > { %363 = vst [vmem:[#allocation2 + $0x130] sm:$0xf] %v12145_v0  ;;  %364 = vst [vmem:[#allocation2 + $0x140] sm:$0xf] %v12145_v0 }
  0x60   : > { %365 = vst [vmem:[#allocation2 + $0x150] sm:$0xf] %v12145_v0  ;;  %366 = vst [vmem:[#allocation2 + $0x160] sm:$0xf] %v12145_v0 }
  0x61   : > { %367 = vst [vmem:[#allocation2 + $0x170] sm:$0xf] %v12145_v0  ;;  %368 = vst [vmem:[#allocation2 + $0x180] sm:$0xf] %v12145_v0 }
  0x62   : > { %369 = vst [vmem:[#allocation2 + $0x190] sm:$0xf] %v12145_v0  ;;  %370 = vst [vmem:[#allocation2 + $0x1a0] sm:$0xf] %v12145_v0 }
  0x63   : > { %371 = vst [vmem:[#allocation2 + $0x1b0] sm:$0xf] %v12145_v0  ;;  %372 = vst [vmem:[#allocation2 + $0x1c0] sm:$0xf] %v12145_v0 }
  0x64   : > { %373 = vst [vmem:[#allocation2 + $0x1d0] sm:$0xf] %v12145_v0  ;;  %374 = vst [vmem:[#allocation2 + $0x1e0] sm:$0xf] %v12145_v0 }
  0x65   : > { %375 = vst [vmem:[#allocation2 + $0x1f0] sm:$0xf] %v12145_v0  ;;  %376 = vst [vmem:[#allocation2 + $0x200] sm:$0xf] %v12145_v0 }
  0x66   : > { %377 = vst [vmem:[#allocation2 + $0x210] sm:$0xf] %v12145_v0  ;;  %378 = vst [vmem:[#allocation2 + $0x220] sm:$0xf] %v12145_v0 }
  0x67   : > { %379 = vst [vmem:[#allocation2 + $0x13c] sm:$0xf] %v12145_v0  ;;  %380 = vst [vmem:[#allocation2 + $0x14c] sm:$0xf] %v12145_v0 }
  0x68   : > { %381 = vst [vmem:[#allocation2 + $0x15c] sm:$0xf] %v12145_v0  ;;  %382 = vst [vmem:[#allocation2 + $0x16c] sm:$0xf] %v12145_v0 }
  0x69   : > { %383 = vst [vmem:[#allocation2 + $0x17c] sm:$0xf] %v12145_v0  ;;  %384 = vst [vmem:[#allocation2 + $0x18c] sm:$0xf] %v12145_v0 }
  0x6a   : > { %385 = vst [vmem:[#allocation2 + $0x19c] sm:$0xf] %v12145_v0  ;;  %386 = vst [vmem:[#allocation2 + $0x1ac] sm:$0xf] %v12145_v0 }
  0x6b   : > { %387 = vst [vmem:[#allocation2 + $0x1bc] sm:$0xf] %v12145_v0  ;;  %388 = vst [vmem:[#allocation2 + $0x1cc] sm:$0xf] %v12145_v0 }
  0x6c   : > { %389 = vst [vmem:[#allocation2 + $0x1dc] sm:$0xf] %v12145_v0  ;;  %390 = vst [vmem:[#allocation2 + $0x1ec] sm:$0xf] %v12145_v0 }
  0x6d   : > { %391 = vst [vmem:[#allocation2 + $0x1fc] sm:$0xf] %v12145_v0  ;;  %392 = vst [vmem:[#allocation2 + $0x20c] sm:$0xf] %v12145_v0 }
  0x6e   : > { %393 = vst [vmem:[#allocation2 + $0x21c] sm:$0xf] %v12145_v0  ;;  %394 = vst [vmem:[#allocation2 + $0x22c] sm:$0xf] %v12145_v0 }
  0x6f   : > { %427 = vst [vmem:[#allocation2 + $0x14] sm:$0xff] %v395_v1   ;;  %429 = vst [vmem:[#allocation2 + $0x24] sm:$0xff] %v397_v2  }
  0x70   : > { %431 = vst [vmem:[#allocation2 + $0x34] sm:$0xff] %v399_v3   ;;  %433 = vst [vmem:[#allocation2 + $0x44] sm:$0xff] %v401_v4  }
  0x71   : > { %435 = vst [vmem:[#allocation2 + $0x54] sm:$0xff] %v403_v5   ;;  %437 = vst [vmem:[#allocation2 + $0x64] sm:$0xff] %v405_v6  }
  0x72   : > { %439 = vst [vmem:[#allocation2 + $0x74] sm:$0xff] %v407_v7   ;;  %441 = vst [vmem:[#allocation2 + $0x84] sm:$0xff] %v409_v8  }
  0x73   : > { %443 = vst [vmem:[#allocation2 + $0x94] sm:$0xff] %v411_v9   ;;  %445 = vst [vmem:[#allocation2 + $0xa4] sm:$0xff] %v413_v10  }
  0x74   : > { %447 = vst [vmem:[#allocation2 + $0xb4] sm:$0xff] %v415_v11   ;;  %449 = vst [vmem:[#allocation2 + $0xc4] sm:$0xff] %v417_v12  }
  0x75   : > { %451 = vst [vmem:[#allocation2 + $0xd4] sm:$0xff] %v419_v13   ;;  %453 = vst [vmem:[#allocation2 + $0xe4] sm:$0xff] %v421_v14  }
  0x76   : > { %455 = vst [vmem:[#allocation2 + $0xf4] sm:$0xff] %v423_v15   ;;  %457 = vst [vmem:[#allocation2 + $0x104] sm:$0xff] %v425_v16  }
  0x77 LB: >> { %s7455_s13 = smul.u32 576, %s8815_s24  ;;  %s466_s14 = ssub.s32 0, %s8815_s24  ;;  %vm511_vm0 = vsmask.f32 256  ;;  %vm512_vm1 = vsmask.f32 4368  ;;  %s8815_s24 = sphi %s9059_s24, %s464_s24  }
  0x78   : >> { %s6862_s15 = smin.u32 %s8815_s24, %s466_s14  ;;  %p465_p2 = scmp.lt.s32.totalorder %s8815_s24, 0  ;;  %vm9103_vm2 = vmor %vm511_vm0, %vm512_vm1  ;;  %vm1095_vm3 = vsmask.f32 3328  ;;  %vm1096_vm4 = vsmask.f32 7440 }
  0x79   : >> { %s9067_s16 = scalar_lea.vmem [#allocation3], %s7455_s13  ;;  %s468_s17 = sand.u32 1, %s6862_s15   ;;  %vm9286_vm5 = vmor %vm1095_vm3, %vm1096_vm4 }
  0x7a   : >> { %v8474_v17 = vld [vmem:[%s9067_s16 + $0x78] sm:$0xff]   ;;  %v8476_v19 = vld [vmem:[%s9067_s16 + $0x70] sm:$0xff]   ;;  %s469_s18 = ssub.s32 0, %s468_s17  ;;  %v8478_v21 = vld [vmem:[%s9067_s16 + $0x68] sm:$0xff]   ;;  %s472_s22 = scalar_lea.vmem [#allocation7], %s8815_s24 }
  0x7b   : >> { %v8475_v18 = vld [vmem:[%s9067_s16 + $0x38] sm:$0xff]   ;;  %7794 = vmatprep.subr.bf16.mxu0 %v8474_v17  ;;  %v8477_v20 = vld [vmem:[%s9067_s16 + $0x30] sm:$0xff]   ;;  %v8479_v22 = vld [vmem:[%s9067_s16 + $0x28] sm:$0xff]   ;;  %s12487_s18 = smov (!%p465_p2, %s469_s18), %s468_s17  ;;  %s474_s26 = scalar_lea.vmem [#allocation8], %s8815_s24 }
  0x7c   : >> { %7826 = vmatprep.subr.bf16.mxu1 %v8475_v18  ;;  %7795 = vmatpush3.bf16.msra.mxu0 %v8474_v17  ;;  %v8480_v23 = vld [vmem:[%s9067_s16 + $0x60] sm:$0xff]   ;;  %s7454_s19 = smul.u32 288, %s12487_s18  ;;  %v8482_v25 = vld [vmem:[%s9067_s16 + $0x58] sm:$0xff]   ;;  %v8484_v27 = vld [vmem:[%s9067_s16 + $0x50] sm:$0xff]   ;;  %s471_s23 = ssub.s32 1, %s12487_s18 }
  0x7d   : >> { %7827 = vmatpush3.bf16.msra.mxu1 %v8475_v18  ;;  %7796 = vmatprep.subr.bf16.mxu0 %v8476_v19  ;;  %v8481_v24 = vld [vmem:[%s9067_s16 + $0x20] sm:$0xff]   ;;  %v8483_v26 = vld [vmem:[%s9067_s16 + $0x18] sm:$0xff]   ;;  %v8485_v28 = vld [vmem:[%s9067_s16 + $0x10] sm:$0xff]   ;;  %s10583_s27 = smul.u32 288, %s471_s23  ;;  %s464_s24 = sadd.s32 1, %s8815_s24  }
  0x7e   : >> { %7828 = vmatprep.subr.bf16.mxu1 %v8477_v20  ;;  %s9085_s20 = scalar_lea.vmem [#allocation2], %s7454_s19  ;;  %v8486_v37 = vld [vmem:[%s9067_s16 + $0x48] sm:$0xff]   ;;  %v8488_v57 = vld [vmem:[%s9067_s16 + $0x40] sm:$0xff]   ;;  %v8492_v13 = vld [vmem:[%s9067_s16 + $0xb8] sm:$0xff]   ;;  %p461_p5 = scmp.ge.s32.totalorder %s464_s24, 7  }
  0x7f   : >> { %v480_v29 = vld [vmem:[%s9085_s20 + $0x4] sm:$0xf]  ;;  %v481_v30 = vld [vmem:[%s9085_s20 + $0x8] sm:$0xf]  ;;  %v479_v31 = vld [vmem:[%s9085_s20] sm:$0xf] }
  0x80   : >> { %7797 = vmatpush3.bf16.msra.mxu0 %v8476_v19  ;;  %v520_v32 = vshrl.u32 %v480_v29, 16  ;;  %v523_v33 = vshll.u32 %v480_v29, 16  ;;  %v529_v34 = vshrl.u32 %v481_v30, 16  ;;  %v532_v35 = vshll.u32 %v481_v30, 16  ;;  %v9091_v36 = vld [vmem:[%s9085_s20 + $0x14] sm:$0xf] }
  0x81   : >> { %7829 = vmatpush3.bf16.msra.mxu1 %v8477_v20  ;;  %7798 = vmatprep.subr.bf16.mxu0 %v8478_v21  ;;  %v6873_v38 = vcombine.low %v480_v29, %v481_v30  ;;  %v515_v39 = vshrl.u32 %v479_v31, 16  ;;  %v9095_v40 = vld [vmem:[%s9085_s20 + $0x18] sm:$0xf]  ;;  %v542_v41 = vshrl.u32 %v9091_v36, 16  ;;  %v483_v42 = vld [vmem:[%s9085_s20 + $0x10] sm:$0xf] }
  0x82   : >> { %7830 = vmatprep.subr.bf16.mxu1 %v8479_v22  ;;  %v522_v43 = vrot.slane %v520_v32, 7  ;;  %v531_v44 = vrot.slane %v529_v34, 7  ;;  %v1098_v45 = vrot.slane %v520_v32, 4  ;;  %v1099_v46 = vrot.slane %v523_v33, 5  ;;  %v8487_v52 = vld [vmem:[%s9067_s16 + $0x8] sm:$0xff]   ;;  %v8489_v63 = vld [vmem:[%s9067_s16] sm:$0xff]  }
  0x83   : >> { %v9099_v47 = vrot.slane %v532_v35, 5  ;;  %v1104_v48 = vrot.slane %v529_v34, 4  ;;  %v6864_v50 = vrot.slane %v515_v39, 11  ;;  %v551_v51 = vshrl.u32 %v9095_v40, 16  ;;  %7810 = vmatprep.mubr.bf16.mxu0 %v6873_v38  ;;  %v9123_v9 = vld [vmem:[%s9085_s20 + $0x24] sm:$0xf] }
  0x84   : >> { %7799 = vmatpush3.bf16.msra.mxu0 %v8478_v21  ;;  %v1100_v53 = vor.u32 %v1099_v46, %v1098_v45  ;;  %v525_v54 = vor.u32 %v523_v33, %v522_v43  ;;  %v527_v55 = vrot.slane %v522_v43, 4  ;;  %v534_v56 = vor.u32 %v532_v35, %v531_v44  ;;  %v9127_v14 = vld [vmem:[%s9085_s20 + $0x28] sm:$0xf]  ;;  %v8493_v18 = vld [vmem:[%s9067_s16 + $0xf8] sm:$0xff]   ;;  %v487_v20 = vld [vmem:[%s9085_s20 + $0x20] sm:$0xf] }
  0x85   : >> { %7831 = vmatpush3.bf16.msra.mxu1 %v8479_v22  ;;  %7800 = vmatprep.subr.bf16.mxu0 %v8480_v23  ;;  %v1105_v58 = vor.u32 %v1104_v48, %v9099_v47  ;;  %v1112_v61 = vrot.slane %v542_v41, 4  ;;  %v537_v62 = vshrl.u32 %v483_v42, 16  ;;  %v9116_v2 = vrot.slane %v551_v51, 4  ;;  %v9136_v21 = vld [vmem:[%s9085_s20 + $0x34] sm:$0xf]  ;;  %s10611_s29 = scalar_lea.vmem [#allocation2], %s10583_s27 }
  0x86   : >> { %7832 = vmatprep.subr.bf16.mxu1 %v8481_v24  ;;  %v526_v59 = vsel %vm9103_vm2, %v6864_v50, %v525_v54  ;;  %v535_v60 = vsel %vm9103_vm2, %v527_v55, %v534_v56  ;;  %v544_v3 = vrot.slane %v542_v41, 7  ;;  %v545_v4 = vshll.u32 %v9091_v36, 16  ;;  %v8494_v34 = vld [vmem:[%s9067_s16 + $0xb0] sm:$0xff]   ;;  %v9177_v54 = vld [vmem:[%s9085_s20 + $0x44] sm:$0xf] }
  0x87   : >> { %v6889_v1 = vcombine.low %v526_v59, %v535_v60  ;;  %v9119_v5 = vrot.slane %v1100_v53, 4  ;;  %v6865_v6 = vrot.slane %v537_v62, 11  ;;  %v553_v7 = vrot.slane %v551_v51, 7  ;;  %v8495_v38 = vld [vmem:[%s9067_s16 + $0xf0] sm:$0xff]   ;;  %v495_v60 = vld [vmem:[%s9085_s20 + $0x40] sm:$0xf] }
  0x88   : >> { %7801 = vmatpush3.bf16.msra.mxu0 %v8480_v23  ;;  %v554_v8 = vshll.u32 %v9095_v40, 16  ;;  %v547_v10 = vor.u32 %v545_v4, %v544_v3  ;;  %v549_v11 = vrot.slane %v544_v3, 4  ;;  %v1113_v12 = vrot.slane %v545_v4, 5  ;;  %v9195_v4 = vld [vmem:[%s9085_s20 + $0x54] sm:$0xf] }
  0x89   : >> { %7833 = vmatpush3.bf16.msra.mxu1 %v8481_v24  ;;  %7802 = vmatprep.subr.bf16.mxu0 %v8482_v25  ;;  %v564_v15 = vshrl.u32 %v9123_v9, 16  ;;  %v9130_v16 = vrot.slane %v1105_v58, 4  ;;  %v573_v19 = vshrl.u32 %v9127_v14, 16  ;;  %v559_v24 = vshrl.u32 %v487_v20, 16  ;;  %v9184_v58 = vld [vmem:[%s9085_s20 + $0x48] sm:$0xf] }
  0x8a   : >> { %7834 = vmatprep.subr.bf16.mxu1 %v8483_v26  ;;  %7842 = vmatprep.mubr.bf16.mxu1 %v6889_v1  ;;  %v556_v17 = vor.u32 %v554_v8, %v553_v7  ;;  %v548_v22 = vsel %vm9103_vm2, %v6865_v6, %v547_v10  ;;  %v1114_v23 = vor.u32 %v1113_v12, %v1112_v61  ;;  %v567_v30 = vshll.u32 %v9123_v9, 16  ;;  %v8498_v1 = vld [vmem:[%s9067_s16 + $0xa8] sm:$0xff]   ;;  %v9198_v6 = vld [vmem:[%s9085_s20 + $0x58] sm:$0xf] }
  0x8b   : >> { %v575_v31 = vrot.slane %v573_v19, 7  ;;  %v9153_v33 = vrot.slane %v554_v8, 5  ;;  %v6875_v35 = vcombine.low %v9123_v9, %v9127_v14  ;;  %v586_v41 = vshrl.u32 %v9136_v21, 16  ;;  %v8499_v8 = vld [vmem:[%s9067_s16 + $0xe8] sm:$0xff]  }
  0x8c   : >> { %7803 = vmatpush3.bf16.msra.mxu0 %v8482_v25  ;;  %v566_v25 = vrot.slane %v564_v15, 7  ;;  %v557_v29 = vsel %vm9103_vm2, %v549_v11, %v556_v17  ;;  %v9163_v42 = vrot.slane %v1114_v23, 4  ;;  %v589_v45 = vshll.u32 %v9136_v21, 16 }
  0x8d   : >> { %7835 = vmatpush3.bf16.msra.mxu1 %v8483_v26  ;;  %7804 = vmatprep.subr.bf16.mxu0 %v8484_v27  ;;  %v9143_v26 = vld [vmem:[%s9085_s20 + $0x38] sm:$0xf]  ;;  %v6890_v32 = vcombine.low %v548_v22, %v557_v29  ;;  %v588_v50 = vrot.slane %v586_v41, 7  ;;  %v608_v59 = vshrl.u32 %v9177_v54, 16  ;;  %v617_v3 = vshrl.u32 %v9184_v58, 16 }
  0x8e   : >> { %7836 = vmatprep.subr.bf16.mxu1 %v8485_v28  ;;  %v571_v39 = vrot.slane %v566_v25, 4  ;;  %v595_v43 = vshrl.u32 %v9143_v26, 16  ;;  %v598_v51 = vshll.u32 %v9143_v26, 16  ;;  %v6876_v62 = vcombine.low %v9136_v21, %v9143_v26 }
  0x8f   : >> { %v591_v56 = vor.u32 %v589_v45, %v588_v50  ;;  %v603_v10 = vshrl.u32 %v495_v60, 16  ;;  %v610_v11 = vrot.slane %v608_v59, 7  ;;  %v611_v12 = vshll.u32 %v9177_v54, 16  ;;  %v9241_v60 = vld [vmem:[%s9085_s20 + $0x68] sm:$0xf] }
  0x90   : >> { %7805 = vmatpush3.bf16.msra.mxu0 %v8484_v27  ;;  %v491_v27 = vld [vmem:[%s9085_s20 + $0x30] sm:$0xf]  ;;  %v597_v53 = vrot.slane %v595_v43, 7  ;;  %v619_v20 = vrot.slane %v617_v3, 7  ;;  %v620_v22 = vshll.u32 %v9184_v58, 16  ;;  %v630_v23 = vshrl.u32 %v9195_v4, 16 }
  0x91   : >> { %7837 = vmatpush3.bf16.msra.mxu1 %v8485_v28  ;;  %7806 = vmatprep.subr.bf16.mxu0 %v8486_v37  ;;  %v6874_v28 = vcombine.low %v9091_v36, %v9095_v40  ;;  %v569_v36 = vor.u32 %v567_v30, %v566_v25  ;;  %v576_v40 = vshll.u32 %v9127_v14, 16  ;;  %v581_v44 = vshrl.u32 %v491_v27, 16 }
  0x92   : >> { %7838 = vmatprep.subr.bf16.mxu1 %v8487_v52  ;;  %v6868_v25 = vrot.slane %v603_v10, 11  ;;  %v613_v27 = vor.u32 %v611_v12, %v610_v11  ;;  %v6877_v29 = vcombine.low %v9177_v54, %v9184_v58  ;;  %v8505_v10 = vld [vmem:[%s9067_s16 + $0xd8] sm:$0xff]   ;;  %v1132_v9 = vrot.slane %v573_v19, 4  ;;  %v9390_v19 = vld [vmem:[%s9085_s20 + $0x34] sm:$0xf] }
  0x93   : >> { %v578_v48 = vor.u32 %v576_v40, %v575_v31  ;;  %v622_v31 = vor.u32 %v620_v22, %v619_v20  ;;  %v9259_v20 = vld [vmem:[%s9085_s20 + $0x78] sm:$0xf]  ;;  %v1144_v14 = vrot.slane %v598_v51, 5  ;;  %vm8827_vm6 = vmmov (%p461_p5), 0  }
  0x94   : >> { %7807 = vmatpush3.bf16.msra.mxu0 %v8486_v37  ;;  %v6866_v37 = vrot.slane %v559_v24, 11  ;;  %v8522_v54 = vld [vmem:[%s9067_s16 + $0x118] sm:$0xff]  }
  0x95   : >> { %7839 = vmatpush3.bf16.msra.mxu1 %v8487_v52  ;;  %7808 = vmatprep.subr.bf16.mxu0 %v8488_v57  ;;  %v6867_v52 = vrot.slane %v581_v44, 11  ;;  %v579_v55 = vsel %vm9103_vm2, %v571_v39, %v578_v48  ;;  %v642_v39 = vshll.u32 %v9198_v6, 16 }
  0x96   : >> { %7840 = vmatprep.subr.bf16.mxu1 %v8489_v63  ;;  %v570_v46 = vsel %vm9103_vm2, %v6866_v37, %v569_v36  ;;  %v614_v37 = vsel %vm9103_vm2, %v6868_v25, %v613_v27  ;;  %v633_v36 = vshll.u32 %v9195_v4, 16  ;;  %v8506_v25 = vld [vmem:[%s9067_s16 + $0x90] sm:$0xff]  }
  0x97   : >> { %v6891_v61 = vcombine.low %v570_v46, %v579_v55  ;;  %v592_v7 = vsel %vm9103_vm2, %v6867_v52, %v591_v56  ;;  %v8504_v56 = vld [vmem:[%s9067_s16 + $0x98] sm:$0xff]  }
  0x98   : >> { %7809 = vmatpush3.bf16.msra.mxu0 %v8488_v57  ;;  %v593_v57 = vrot.slane %v588_v50, 4  ;;  %v1119_v50 = vor.u32 %v9116_v2, %v9153_v33  ;;  %v6878_v2 = vcombine.low %v9195_v4, %v9198_v6 }
  0x99   : >> { %7841 = vmatpush3.bf16.msra.mxu1 %v8489_v63  ;;  %7858 = vmatprep.subr.bf16.mxu0 %v8492_v13  ;;  %v600_v63 = vor.u32 %v598_v51, %v597_v53  ;;  %v1146_v51 = vrot.slane %v595_v43, 4 }
  0x9a   : >> { %7890 = vmatprep.subr.bf16.mxu1 %v8493_v18 }
  0x9b   : >> { %7811 = vmatmul.mubr.bf16.vlgmr.msra.gmra.mxu0 %v6874_v28  ;;  %v601_v17 = vsel %vm9103_vm2, %v593_v57, %v600_v63  ;;  %v615_v28 = vrot.slane %v610_v11, 4  ;;  %v9238_v57 = vld [vmem:[%s9085_s20 + $0x64] sm:$0xf]  ;;  %v12150_v63 = vshrl.u32 %v9241_v60, 16 }
  0x9c   : >> { %7843 = vmatmul.mubr.bf16.vlgmr.msra.gmra.mxu1 %v6890_v32  ;;  %7859 = vmatpush3.bf16.msra.mxu0 %v8492_v13  ;;  %v499_v13 = vld [vmem:[%s9085_s20 + $0x50] sm:$0xf]  ;;  %v6892_v24 = vcombine.low %v592_v7, %v601_v17  ;;  %v639_v32 = vshrl.u32 %v9198_v6, 16  ;;  %v9251_v7 = vld [vmem:[%s9085_s20 + $0x74] sm:$0xf]  ;;  %v664_v17 = vshll.u32 %v9241_v60, 16 }
  0x9d   : >> { %7891 = vmatpush3.bf16.msra.mxu1 %v8493_v18  ;;  %7860 = vmatprep.subr.bf16.mxu0 %v8494_v34  ;;  %v8500_v18 = vld [vmem:[%s9067_s16 + $0xa0] sm:$0xff]   ;;  %v623_v44 = vsel %vm9103_vm2, %v615_v28, %v622_v31  ;;  %v663_v28 = vrot.slane %v12150_v63, 7  ;;  %v507_v31 = vld [vmem:[%s9085_s20 + $0x70] sm:$0xf] }
  0x9e   : >> { %7892 = vmatprep.subr.bf16.mxu1 %v8495_v38  ;;  %7814 = vmatprep.mubr.bf16.mxu0 %v6875_v35  ;;  %v625_v35 = vshrl.u32 %v499_v13, 16  ;;  %v641_v48 = vrot.slane %v639_v32, 7  ;;  %v6893_v52 = vcombine.low %v614_v37, %v623_v44  ;;  %v655_v13 = vshll.u32 %v9238_v57, 16  ;;  %v8507_v37 = vld [vmem:[%s9067_s16 + $0xd0] sm:$0xff]  }
  0x9f   : >> { %7846 = vmatprep.mubr.bf16.mxu1 %v6891_v61  ;;  %v1174_v4 = vrot.slane %v639_v32, 4 }
  0xa0   : >> { %7861 = vmatpush3.bf16.msra.mxu0 %v8494_v34  ;;  %v8501_v34 = vld [vmem:[%s9067_s16 + $0xe0] sm:$0xff]   ;;  %v6869_v46 = vrot.slane %v625_v35, 11  ;;  %v644_v61 = vor.u32 %v642_v39, %v641_v48 }
  0xa1   : >> { %7893 = vmatpush3.bf16.msra.mxu1 %v8495_v38  ;;  %7862 = vmatprep.subr.bf16.mxu0 %v8498_v1  ;;  %v632_v38 = vrot.slane %v630_v23, 7 }
  0xa2   : >> { %7894 = vmatprep.subr.bf16.mxu1 %v8499_v8 }
  0xa3   : >> { %7815 = vmatmul.mubr.bf16.gmra.mxu0 %v6876_v62  ;;  %v635_v53 = vor.u32 %v633_v36, %v632_v38  ;;  %v637_v55 = vrot.slane %v632_v38, 4  ;;  %v652_v62 = vshrl.u32 %v9238_v57, 16  ;;  %v6879_v38 = vcombine.low %v9238_v57, %v9241_v60 }
  0xa4   : >> { %7847 = vmatmul.mubr.bf16.gmra.mxu1 %v6892_v24  ;;  %7863 = vmatpush3.bf16.msra.mxu0 %v8498_v1  ;;  %v503_v1 = vld [vmem:[%s9085_s20 + $0x60] sm:$0xf] }
  0xa5   : >> { %7895 = vmatpush3.bf16.msra.mxu1 %v8499_v8  ;;  %7864 = vmatprep.subr.bf16.mxu0 %v8500_v18  ;;  %v636_v8 = vsel %vm9103_vm2, %v6869_v46, %v635_v53  ;;  %v647_v11 = vshrl.u32 %v503_v1, 16  ;;  %v645_v24 = vsel %vm9103_vm2, %v637_v55, %v644_v61  ;;  %v654_v27 = vrot.slane %v652_v62, 7 }
  0xa6   : >> { %7896 = vmatprep.subr.bf16.mxu1 %v8501_v34  ;;  %7818 = vmatprep.mubr.bf16.mxu0 %v6877_v29  ;;  %v12149_v29 = vshrl.u32 %v9251_v7, 16  ;;  %v6894_v35 = vcombine.low %v636_v8, %v645_v24  ;;  %v12146_v46 = vshrl.u32 %v9259_v20, 16  ;;  %v666_v53 = vor.u32 %v664_v17, %v663_v28 }
  0xa7   : >> { %7850 = vmatprep.mubr.bf16.mxu1 %v6893_v52  ;;  %v6870_v44 = vrot.slane %v647_v11, 11  ;;  %v657_v48 = vor.u32 %v655_v13, %v654_v27  ;;  %v659_v52 = vrot.slane %v654_v27, 4  ;;  %v669_v55 = vshrl.u32 %v507_v31, 16 }
  0xa8   : >> { %7865 = vmatpush3.bf16.msra.mxu0 %v8500_v18  ;;  %v676_v18 = vrot.slane %v12149_v29, 7  ;;  %v12148_v61 = vshll.u32 %v9251_v7, 16  ;;  %v685_v1 = vrot.slane %v12146_v46, 7  ;;  %v12228_v8 = vmov 0 }
  0xa9   : >> { %7897 = vmatpush3.bf16.msra.mxu1 %v8501_v34  ;;  %7866 = vmatprep.subr.bf16.mxu0 %v8504_v56  ;;  %v12147_v34 = vshll.u32 %v9259_v20, 16  ;;  %v12229_v8 = vsel %vm9286_vm5, 4294967295, %v12228_v8  ;;  %v1120_v11 = vrot.slane %v1119_v50, 4  ;;  %v658_v24 = vsel %vm9103_vm2, %v6870_v44, %v657_v48  ;;  %v8510_v44 = vld [vmem:[%s9067_s16 + $0x88] sm:$0xff]   ;;  %v486_v48 = vld [vmem:[%s9085_s20 + $0x1c] sm:$0xf] }
  0xaa   : >> { %7898 = vmatprep.subr.bf16.mxu1 %v8505_v10  ;;  %12230 = vst [vmem:[#allocation13_spill] sm:$0xff] %v12229_v8  ;;  %v667_v27 = vsel %vm9103_vm2, %v659_v52, %v666_v53  ;;  %v6871_v28 = vrot.slane %v669_v55, 11  ;;  %v679_v0 = vor.u32 %v12148_v61, %v676_v18  ;;  %v681_v46 = vrot.slane %v676_v18, 4  ;;  %v8511_v53 = vld [vmem:[%s9067_s16 + $0xc8] sm:$0xff]  }
  0xab   : >> { %7819 = vmatmul.mubr.bf16.gmra.mxu0 %v6878_v2  ;;  %v6895_v31 = vcombine.low %v658_v24, %v667_v27  ;;  %v688_v50 = vor.u32 %v12147_v34, %v685_v1  ;;  %v482_v2 = vld [vmem:[%s9085_s20 + $0xc] sm:$0xf]  ;;  %v1117_v55 = vsel %vm9286_vm5, %v9163_v42, %v9153_v33  ;;  %v8512_v1 = vld [vmem:[%s9067_s16 + $0x80] sm:$0xff]  }
  0xac   : >> { %7851 = vmatmul.mubr.bf16.gmra.mxu1 %v6894_v35  ;;  %7867 = vmatpush3.bf16.msra.mxu0 %v8504_v56  ;;  %v1103_v56 = vsel %vm9286_vm5, %v9119_v5, %v9099_v47  ;;  %v1108_v35 = vshll.u32 %v482_v2, 16  ;;  %v680_v52 = vsel %vm9103_vm2, %v6871_v28, %v679_v0  ;;  %v1122_v47 = vshll.u32 %v486_v48, 16  ;;  %v6922_v5 = vld [vmem:[%s9085_s20 + $0x10] sm:$0xf]  ;;  %v9319_v0 = vld [vmem:[%s9085_s20 + $0x14] sm:$0xf] }
  0xad   : >> { %7899 = vmatpush3.bf16.msra.mxu1 %v8505_v10  ;;  %7868 = vmatprep.subr.bf16.mxu0 %v8506_v25  ;;  %v689_v10 = vsel %vm9103_vm2, %v681_v46, %v688_v50  ;;  %v9322_v46 = vld [vmem:[%s9085_s20 + $0x18] sm:$0xf]  ;;  %v1455_v27 = vshrl.u32 %v6922_v5, 16  ;;  %v8513_v28 = vld [vmem:[%s9067_s16 + $0xc0] sm:$0xff]   ;;  %v1460_v42 = vshrl.u32 %v9319_v0, 16 }
  0xae   : >> { %7900 = vmatprep.subr.bf16.mxu1 %v8507_v37  ;;  %7822 = vmatprep.mubr.bf16.mxu0 %v6879_v38  ;;  %v6880_v38 = vcombine.low %v9251_v7, %v9259_v20  ;;  %v6896_v18 = vcombine.low %v680_v52, %v689_v10  ;;  %v1110_v24 = vrot.slane %v1108_v35, 5  ;;  %v1124_v33 = vrot.slane %v1122_v47, 5  ;;  %v6926_v2 = vld [vmem:[%s9085_s20 + $0x20] sm:$0xf]  ;;  %v9337_v10 = vld [vmem:[%s9085_s20 + $0x28] sm:$0xf] }
  0xaf   : >> { %7854 = vmatprep.mubr.bf16.mxu1 %v6895_v31  ;;  %v1463_v31 = vshll.u32 %v9319_v0, 16  ;;  %v1469_v50 = vshrl.u32 %v9322_v46, 16  ;;  %v6954_v48 = vrot.slane %v1455_v27, 11  ;;  %v1472_v52 = vshll.u32 %v9322_v46, 16  ;;  %v8514_v27 = vld [vmem:[%s9067_s16 + $0x138] sm:$0xff]  }
  0xb0   : >> { %7869 = vmatpush3.bf16.msra.mxu0 %v8506_v25  ;;  %v1111_v35 = vsel %vm9286_vm5, %v9130_v16, %v1110_v24  ;;  %v9334_v25 = vld [vmem:[%s9085_s20 + $0x24] sm:$0xf]  ;;  %v6978_v47 = vcombine.low %v9319_v0, %v9322_v46  ;;  %v1462_v34 = vrot.slane %v1460_v42, 7  ;;  %v1477_v61 = vshrl.u32 %v6926_v2, 16 }
  0xb1   : >> { %7901 = vmatpush3.bf16.msra.mxu1 %v8507_v37  ;;  %7870 = vmatprep.subr.bf16.mxu0 %v8510_v44  ;;  %v6905_v5 = vcombine.low %v1103_v56, %v1111_v35  ;;  %v1125_v37 = vsel %vm9286_vm5, %v1120_v11, %v1124_v33  ;;  %v1471_v16 = vrot.slane %v1469_v50, 7  ;;  %v12151_v29 = vshrl.u32 %v9334_v25, 16  ;;  %v8515_v35 = vld [vmem:[%s9067_s16 + $0x178] sm:$0xff]  }
  0xb2   : >> { %7902 = vmatprep.subr.bf16.mxu1 %v8511_v53  ;;  %v6906_v24 = vcombine.low %v1117_v55, %v1125_v37  ;;  %v1485_v63 = vshll.u32 %v9334_v25, 16  ;;  %v1465_v11 = vor.u32 %v1463_v31, %v1462_v34  ;;  %v1467_v56 = vrot.slane %v1462_v34, 4  ;;  %v490_v37 = vld [vmem:[%s9085_s20 + $0x2c] sm:$0xf] }
  0xb3   : >> { %7823 = vmatmul.mubr.bf16.gmra.mxu0 %v6880_v38  ;;  %v1474_v33 = vor.u32 %v1472_v52, %v1471_v16  ;;  %v1491_v38 = vshrl.u32 %v9337_v10, 16  ;;  %v6955_v55 = vrot.slane %v1477_v61, 11  ;;  %v1484_v2 = vrot.slane %v12151_v29, 7 }
  0xb4   : >> { %7855 = vmatmul.mubr.bf16.gmra.mxu1 %v6896_v18  ;;  %7871 = vmatpush3.bf16.msra.mxu0 %v8510_v44  ;;  %v1494_v18 = vshll.u32 %v9337_v10, 16  ;;  %v1126_v44 = vrot.slane %v564_v15, 4  ;;  %v1466_v34 = vsel %vm9103_vm2, %v6954_v48, %v1465_v11  ;;  %v1127_v16 = vrot.slane %v567_v30, 5  ;;  %v494_v30 = vld [vmem:[%s9085_s20 + $0x3c] sm:$0xf] }
  0xb5   : >> { %7903 = vmatpush3.bf16.msra.mxu1 %v8511_v53  ;;  %7872 = vmatprep.subr.bf16.mxu0 %v8512_v1  ;;  %v1475_v53 = vsel %vm9103_vm2, %v1467_v56, %v1474_v33  ;;  %v1493_v61 = vrot.slane %v1491_v38, 7  ;;  %v1489_v29 = vrot.slane %v1484_v2, 4  ;;  %v1130_v48 = vrot.slane %v576_v40, 5 }
  0xb6   : >> { %7904 = vmatprep.subr.bf16.mxu1 %v8513_v28  ;;  %7874 = vmatprep.mubr.bf16.mxu0 %v6905_v5  ;;  %v6962_v15 = vcombine.low %v1466_v34, %v1475_v53  ;;  %v1487_v5 = vor.u32 %v1485_v63, %v1484_v2  ;;  %v1128_v56 = vor.u32 %v1127_v16, %v1126_v44  ;;  %v1136_v33 = vshll.u32 %v490_v37, 16  ;;  %v6930_v34 = vld [vmem:[%s9085_s20 + $0x30] sm:$0xf]  ;;  %v9396_v37 = vld [vmem:[%s9085_s20 + $0x38] sm:$0xf] }
  0xb7   : >> { %v1496_v11 = vor.u32 %v1494_v18, %v1493_v61  ;;  %v8516_v53 = vld [vmem:[%s9067_s16 + $0x130] sm:$0xff]   ;;  %v1140_v40 = vrot.slane %v586_v41, 4  ;;  %v1133_v61 = vor.u32 %v1132_v9, %v1130_v48  ;;  %v1150_v16 = vshll.u32 %v494_v30, 16  ;;  %v9405_v9 = vld [vmem:[%s9085_s20 + $0x44] sm:$0xf]  ;;  %v8518_v30 = vld [vmem:[%s9067_s16 + $0x128] sm:$0xff]  }
  0xb8   : >> { %7873 = vmatpush3.bf16.msra.mxu0 %v8512_v1  ;;  %v1488_v2 = vsel %vm9103_vm2, %v6955_v55, %v1487_v5  ;;  %v1141_v1 = vrot.slane %v589_v45, 5  ;;  %7906 = vmatprep.mubr.bf16.mxu1 %v6962_v15  ;;  %v8517_v44 = vld [vmem:[%s9067_s16 + $0x170] sm:$0xff]   ;;  %v1129_v55 = vrot.slane %v1128_v56, 4  ;;  %v1138_v41 = vrot.slane %v1136_v33, 5  ;;  %v6934_v15 = vld [vmem:[%s9085_s20 + $0x40] sm:$0xf] }
  0xb9   : >> { %7905 = vmatpush3.bf16.msra.mxu1 %v8513_v28  ;;  %7922 = vmatprep.subr.bf16.mxu0 %v8514_v27  ;;  %v1497_v28 = vsel %vm9103_vm2, %v1489_v29, %v1496_v11  ;;  %v1134_v5 = vrot.slane %v1133_v61, 4  ;;  %v1499_v11 = vshrl.u32 %v6930_v34, 16  ;;  %v1504_v56 = vshrl.u32 %v9390_v19, 16 }
  0xba   : >> { %7954 = vmatprep.subr.bf16.mxu1 %v8515_v35  ;;  %v6963_v21 = vcombine.low %v1488_v2, %v1497_v28  ;;  %v1142_v45 = vor.u32 %v1141_v1, %v1140_v40  ;;  %v1131_v29 = vsel %vm9286_vm5, %v1129_v55, %v1130_v48  ;;  %v1147_v33 = vor.u32 %v1146_v51, %v1144_v14  ;;  %v8519_v1 = vld [vmem:[%s9067_s16 + $0x168] sm:$0xff]  }
  0xbb   : >> { %7875 = vmatmul.mubr.bf16.vlgmr.msra.gmra.mxu0 %v6906_v24  ;;  %v9408_v24 = vld [vmem:[%s9085_s20 + $0x48] sm:$0xf]  ;;  %v1152_v43 = vrot.slane %v1150_v16, 5  ;;  %v1139_v48 = vsel %vm9286_vm5, %v1134_v5, %v1138_v41  ;;  %v6956_v34 = vrot.slane %v1499_v11, 11  ;;  %v1506_v2 = vrot.slane %v1504_v56, 7  ;;  %v8520_v5 = vld [vmem:[%s9067_s16 + $0x120] sm:$0xff]  }
  0xbc   : >> { %7923 = vmatpush3.bf16.msra.mxu0 %v8514_v27  ;;  %7907 = vmatmul.mubr.bf16.vlgmr.msra.gmra.mxu1 %v6963_v21  ;;  %v1143_v26 = vrot.slane %v1142_v45, 4  ;;  %v1507_v27 = vshll.u32 %v9390_v19, 16  ;;  %v1513_v40 = vshrl.u32 %v9396_v37, 16  ;;  %v6907_v28 = vcombine.low %v1131_v29, %v1139_v48  ;;  %v8521_v48 = vld [vmem:[%s9067_s16 + $0x160] sm:$0xff]  }
  0xbd   : >> { %7924 = vmatprep.subr.bf16.mxu0 %v8516_v53  ;;  %7955 = vmatpush3.bf16.msra.mxu1 %v8515_v35  ;;  %v1148_v61 = vrot.slane %v1147_v33, 4  ;;  %v1516_v21 = vshll.u32 %v9396_v37, 16  ;;  %v1511_v41 = vrot.slane %v1506_v2, 4  ;;  %v1521_v51 = vshrl.u32 %v6934_v15, 16 }
  0xbe   : >> { %7956 = vmatprep.subr.bf16.mxu1 %v8517_v44  ;;  %v1145_v55 = vsel %vm9286_vm5, %v1143_v26, %v1144_v14  ;;  %v1509_v35 = vor.u32 %v1507_v27, %v1506_v2  ;;  %v1515_v45 = vrot.slane %v1513_v40, 7  ;;  %7878 = vmatprep.mubr.bf16.mxu0 %v6907_v28  ;;  %v1526_v14 = vshrl.u32 %v9405_v9, 16 }
  0xbf   : >> { %v1153_v16 = vsel %vm9286_vm5, %v1148_v61, %v1152_v43  ;;  %v1529_v29 = vshll.u32 %v9405_v9, 16  ;;  %v6957_v33 = vrot.slane %v1521_v51, 11  ;;  %v1538_v28 = vshll.u32 %v9408_v24, 16 }
  0xc0   : >> { %7925 = vmatpush3.bf16.msra.mxu0 %v8516_v53  ;;  %v1535_v53 = vshrl.u32 %v9408_v24, 16  ;;  %v6908_v11 = vcombine.low %v1145_v55, %v1153_v16  ;;  %v1510_v26 = vsel %vm9103_vm2, %v6956_v34, %v1509_v35  ;;  %v1518_v15 = vor.u32 %v1516_v21, %v1515_v45 }
  0xc1   : >> { %7926 = vmatprep.subr.bf16.mxu0 %v8518_v30  ;;  %7957 = vmatpush3.bf16.msra.mxu1 %v8517_v44  ;;  %v1528_v43 = vrot.slane %v1526_v14, 7  ;;  %v498_v44 = vld [vmem:[%s9085_s20 + $0x4c] sm:$0xf]  ;;  %v1154_v34 = vrot.slane %v608_v59, 4  ;;  %v1155_v61 = vrot.slane %v611_v12, 5  ;;  %v1158_v35 = vrot.slane %v620_v22, 5 }
  0xc2   : >> { %v1537_v2 = vrot.slane %v1535_v53, 7  ;;  %7958 = vmatprep.subr.bf16.mxu1 %v8519_v1  ;;  %v1519_v55 = vsel %vm9103_vm2, %v1511_v41, %v1518_v15  ;;  %v1160_v45 = vrot.slane %v617_v3, 4  ;;  %v1164_v58 = vshll.u32 %v498_v44, 16 }
  0xc3   : >> { %7879 = vmatmul.mubr.bf16.gmra.mxu0 %v6908_v11  ;;  %v6964_v51 = vcombine.low %v1510_v26, %v1519_v55  ;;  %v1531_v59 = vor.u32 %v1529_v29, %v1528_v43  ;;  %v1533_v16 = vrot.slane %v1528_v43, 4  ;;  %v502_v11 = vld [vmem:[%s9085_s20 + $0x5c] sm:$0xf]  ;;  %v1156_v12 = vor.u32 %v1155_v61, %v1154_v34  ;;  %v9462_v26 = vld [vmem:[%s9085_s20 + $0x54] sm:$0xf] }
  0xc4   : >> { %7927 = vmatpush3.bf16.msra.mxu0 %v8518_v30  ;;  %v1540_v41 = vor.u32 %v1538_v28, %v1537_v2  ;;  %v1161_v22 = vor.u32 %v1160_v45, %v1158_v35  ;;  %v1168_v3 = vrot.slane %v630_v23, 4  ;;  %v6938_v30 = vld [vmem:[%s9085_s20 + $0x50] sm:$0xf]  ;;  %v1169_v43 = vrot.slane %v633_v36, 5  ;;  %v9473_v23 = vld [vmem:[%s9085_s20 + $0x58] sm:$0xf] }
  0xc5   : >> { %7959 = vmatpush3.bf16.msra.mxu1 %v8519_v1  ;;  %7928 = vmatprep.subr.bf16.mxu0 %v8520_v5  ;;  %v1532_v15 = vsel %vm9103_vm2, %v6957_v33, %v1531_v59  ;;  %v1172_v2 = vrot.slane %v642_v39, 5  ;;  %v1157_v34 = vrot.slane %v1156_v12, 4  ;;  %v1166_v61 = vrot.slane %v1164_v58, 5  ;;  %v6942_v45 = vld [vmem:[%s9085_s20 + $0x60] sm:$0xf]  ;;  %v8523_v33 = vld [vmem:[%s9067_s16 + $0x158] sm:$0xff]  }
  0xc6   : >> { %7910 = vmatprep.mubr.bf16.mxu1 %v6964_v51  ;;  %v1541_v1 = vsel %vm9103_vm2, %v1533_v16, %v1540_v41  ;;  %7960 = vmatprep.subr.bf16.mxu1 %v8521_v48  ;;  %v1162_v55 = vrot.slane %v1161_v22, 4  ;;  %v9477_v51 = vld [vmem:[%s9085_s20 + $0x64] sm:$0xf]  ;;  %v1170_v59 = vor.u32 %v1169_v43, %v1168_v3  ;;  %v1178_v36 = vshll.u32 %v502_v11, 16  ;;  %v8524_v39 = vld [vmem:[%s9067_s16 + $0x110] sm:$0xff]  }
  0xc7   : >> { %v6965_v44 = vcombine.low %v1532_v15, %v1541_v1  ;;  %v1543_v16 = vshrl.u32 %v6938_v30, 16  ;;  %v1159_v41 = vsel %vm9286_vm5, %v1157_v34, %v1158_v35  ;;  %v1548_v22 = vshrl.u32 %v9462_v26, 16  ;;  %v9490_v11 = vld [vmem:[%s9085_s20 + $0x68] sm:$0xf]  ;;  %v8525_v30 = vld [vmem:[%s9067_s16 + $0x150] sm:$0xff]  }
  0xc8   : >> { %7929 = vmatpush3.bf16.msra.mxu0 %v8520_v5  ;;  %v1167_v12 = vsel %vm9286_vm5, %v1162_v55, %v1166_v61  ;;  %v1551_v5 = vshll.u32 %v9462_v26, 16  ;;  %v1171_v6 = vrot.slane %v1170_v59, 4  ;;  %v1175_v32 = vor.u32 %v1174_v4, %v1172_v2 }
  0xc9   : >> { %7911 = vmatmul.mubr.bf16.gmra.mxu1 %v6965_v44  ;;  %7930 = vmatprep.subr.bf16.mxu0 %v8522_v54  ;;  %v6909_v58 = vcombine.low %v1159_v41, %v1167_v12  ;;  %v1180_v3 = vrot.slane %v1178_v36, 5  ;;  %v6958_v15 = vrot.slane %v1543_v16, 11  ;;  %v1550_v35 = vrot.slane %v1548_v22, 7  ;;  %v8526_v16 = vld [vmem:[%s9067_s16 + $0x108] sm:$0xff]  }
  0xca   : >> { %7961 = vmatpush3.bf16.msra.mxu1 %v8521_v48  ;;  %v12155_v1 = vshrl.u32 %v9473_v23, 16  ;;  %v1560_v43 = vshll.u32 %v9473_v23, 16  ;;  %v1173_v48 = vsel %vm9286_vm5, %v1171_v6, %v1172_v2  ;;  %v1176_v44 = vrot.slane %v1175_v32, 4 }
  0xcb   : >> { %7962 = vmatprep.subr.bf16.mxu1 %v8523_v33  ;;  %7882 = vmatprep.mubr.bf16.mxu0 %v6909_v58  ;;  %v1565_v34 = vshrl.u32 %v6942_v45, 16  ;;  %v12154_v55 = vshrl.u32 %v9477_v51, 16  ;;  %v1553_v61 = vor.u32 %v1551_v5, %v1550_v35  ;;  %v1555_v59 = vrot.slane %v1550_v35, 4  ;;  %v8527_v35 = vld [vmem:[%s9067_s16 + $0x148] sm:$0xff]  }
  0xcc   : >> { %7931 = vmatpush3.bf16.msra.mxu0 %v8522_v54  ;;  %v1559_v4 = vrot.slane %v12155_v1, 7  ;;  %v12152_v36 = vshll.u32 %v9477_v51, 16  ;;  %v1181_v2 = vsel %vm9286_vm5, %v1176_v44, %v1180_v3  ;;  %v12153_v41 = vshrl.u32 %v9490_v11, 16  ;;  %v506_v3 = vld [vmem:[%s9085_s20 + $0x6c] sm:$0xf] }
  0xcd   : >> { %7932 = vmatprep.subr.bf16.mxu0 %v8524_v39  ;;  %v6959_v54 = vrot.slane %v1565_v34, 11  ;;  %v1572_v45 = vrot.slane %v12154_v55, 7  ;;  %v6910_v12 = vcombine.low %v1173_v48, %v1181_v2  ;;  %v1554_v58 = vsel %vm9103_vm2, %v6958_v15, %v1553_v61 }
  0xce   : >> { %7963 = vmatpush3.bf16.msra.mxu1 %v8523_v33  ;;  %v1562_v6 = vor.u32 %v1560_v43, %v1559_v4  ;;  %v1582_v32 = vshll.u32 %v9490_v11, 16  ;;  %v1581_v48 = vrot.slane %v12153_v41, 7  ;;  %v1182_v15 = vrot.slane %v652_v62, 4  ;;  %v9535_v41 = vld [vmem:[%s9085_s20 + $0x74] sm:$0xf]  ;;  %v8528_v62 = vld [vmem:[%s9067_s16 + $0x100] sm:$0xff]  }
  0xcf   : >> { %7964 = vmatprep.subr.bf16.mxu1 %v8525_v30  ;;  %v1575_v44 = vor.u32 %v12152_v36, %v1572_v45  ;;  %v1577_v33 = vrot.slane %v1572_v45, 4  ;;  %7883 = vmatmul.mubr.bf16.gmra.mxu0 %v6910_v12  ;;  %v1183_v61 = vrot.slane %v655_v13, 5  ;;  %v1186_v4 = vrot.slane %v664_v17, 5  ;;  %v510_v36 = vld [vmem:[%s9085_s20 + $0x7c] sm:$0xf]  ;;  %v8529_v17 = vld [vmem:[%s9067_s16 + $0x140] sm:$0xff]  }
  0xd0   : >> { %7933 = vmatpush3.bf16.msra.mxu0 %v8524_v39  ;;  %v1563_v34 = vsel %vm9103_vm2, %v1555_v59, %v1562_v6  ;;  %v12231_v2 = vshrl.u32 %v9241_v60, 16  ;;  %v6946_v39 = vld [vmem:[%s9085_s20 + $0x70] sm:$0xf]  ;;  %v1584_v57 = vor.u32 %v1582_v32, %v1581_v48  ;;  %v1192_v13 = vshll.u32 %v506_v3, 16 }
  0xd1   : >> { %7934 = vmatprep.subr.bf16.mxu0 %v8526_v16  ;;  %v6966_v55 = vcombine.low %v1554_v58, %v1563_v34  ;;  %v1576_v59 = vsel %vm9103_vm2, %v6959_v54, %v1575_v44  ;;  %v1184_v60 = vor.u32 %v1183_v61, %v1182_v15  ;;  %v12232_v6 = vshrl.u32 %v9251_v7, 16  ;;  %v9554_v34 = vld [vmem:[%s9085_s20 + $0x78] sm:$0xf] }
  0xd2   : >> { %v1188_v45 = vrot.slane %v12231_v2, 4  ;;  %7965 = vmatpush3.bf16.msra.mxu1 %v8525_v30  ;;  %v12233_v1 = vshll.u32 %v9251_v7, 16  ;;  %v1585_v54 = vsel %vm9103_vm2, %v1577_v33, %v1584_v57  ;;  %v1194_v44 = vrot.slane %v1192_v13, 5  ;;  %v9557_v61 = vld [vmem:[%s9067_s16 + $0x1b8] sm:$0xff]   ;;  %v6950_v33 = vld [vmem:[%s9085_s20 + $0x80] sm:$0xf] }
  0xd3   : >> { %v1196_v2 = vrot.slane %v12232_v6, 4  ;;  %7966 = vmatprep.subr.bf16.mxu1 %v8527_v35  ;;  %7914 = vmatprep.mubr.bf16.mxu1 %v6966_v55  ;;  %v12234_v48 = vshll.u32 %v9259_v20, 16  ;;  %v12235_v30 = vshrl.u32 %v9259_v20, 16  ;;  %v6967_v7 = vcombine.low %v1576_v59, %v1585_v54 }
  0xd4   : >> { %v1189_v12 = vor.u32 %v1188_v45, %v1186_v4  ;;  %v1197_v58 = vrot.slane %v12233_v1, 5  ;;  %7935 = vmatpush3.bf16.msra.mxu0 %v8526_v16  ;;  %v1185_v1 = vrot.slane %v1184_v60, 4  ;;  %v1206_v13 = vshll.u32 %v510_v36, 16 }
  0xd5   : >> { %v1200_v3 = vrot.slane %v12234_v48, 5  ;;  %v1202_v15 = vrot.slane %v12235_v30, 4  ;;  %7936 = vmatprep.subr.bf16.mxu0 %v8528_v62  ;;  %v1587_v6 = vshrl.u32 %v6946_v39, 16  ;;  %v1592_v20 = vshrl.u32 %v9535_v41, 16  ;;  %v9562_v48 = vld [vmem:[%s9067_s16 + $0x1f8] sm:$0xff]   ;;  %7915 = vmatmul.mubr.bf16.gmra.mxu1 %v6967_v7 }
  0xd6   : >> { %v1190_v55 = vrot.slane %v1189_v12, 4  ;;  %v1198_v45 = vor.u32 %v1197_v58, %v1196_v2  ;;  %7967 = vmatpush3.bf16.msra.mxu1 %v8527_v35  ;;  %v1187_v16 = vsel %vm9286_vm5, %v1185_v1, %v1186_v4  ;;  %v1595_v12 = vshll.u32 %v9535_v41, 16  ;;  %v9570_v2 = vld [vmem:[%s9085_s20 + $0x84] sm:$0xf]  ;;  %v9573_v58 = vld [vmem:[%s9085_s20 + $0x88] sm:$0xf] }
  0xd7   : >> { %v1203_v57 = vor.u32 %v1202_v15, %v1200_v3  ;;  %7968 = vmatprep.subr.bf16.mxu1 %v8529_v17  ;;  %v1208_v39 = vrot.slane %v1206_v13, 5  ;;  %v6960_v54 = vrot.slane %v1587_v6, 11  ;;  %v1601_v30 = vshrl.u32 %v9554_v34, 16 }
  0xd8   : >> { %v1195_v59 = vsel %vm9286_vm5, %v1190_v55, %v1194_v44  ;;  %v1199_v60 = vrot.slane %v1198_v45, 4  ;;  %7937 = vmatpush3.bf16.msra.mxu0 %v8528_v62  ;;  %v1594_v44 = vrot.slane %v1592_v20, 7  ;;  %v1604_v15 = vshll.u32 %v9554_v34, 16 }
  0xd9   : >> { %v6911_v36 = vcombine.low %v1187_v16, %v1195_v59  ;;  %v1204_v35 = vrot.slane %v1203_v57, 4  ;;  %7986 = vmatprep.subr.bf16.mxu0 %v9557_v61  ;;  %v1609_v1 = vshrl.u32 %v6950_v33, 16  ;;  %v1614_v55 = vshrl.u32 %v9570_v2, 16 }
  0xda   : >> { %v1201_v4 = vsel %vm9286_vm5, %v1199_v60, %v1200_v3  ;;  %v12157_v62 = vshll.u32 %v9570_v2, 16  ;;  %7969 = vmatpush3.bf16.msra.mxu1 %v8529_v17  ;;  %v6925_v3 = vld [vmem:[%s9085_s20 + $0x1c] sm:$0xf]  ;;  %v1597_v57 = vor.u32 %v1595_v12, %v1594_v44  ;;  %v1599_v13 = vrot.slane %v1594_v44, 4 }
  0xdb   : >> { %7886 = vmatprep.mubr.bf16.mxu0 %v6911_v36  ;;  %v1209_v7 = vsel %vm9286_vm5, %v1204_v35, %v1208_v39  ;;  %v1603_v6 = vrot.slane %v1601_v30, 7  ;;  %8018 = vmatprep.subr.bf16.mxu1 %v9562_v48  ;;  %v6961_v16 = vrot.slane %v1609_v1, 11  ;;  %v1616_v33 = vrot.slane %v1614_v55, 7 }
  0xdc   : >> { %v6912_v45 = vcombine.low %v1201_v4, %v1209_v7  ;;  %v12156_v59 = vshrl.u32 %v9573_v58, 16  ;;  %v1626_v17 = vshll.u32 %v9573_v58, 16  ;;  %v1598_v60 = vsel %vm9103_vm2, %v6960_v54, %v1597_v57 }
  0xdd   : >> { %v1606_v36 = vor.u32 %v1604_v15, %v1603_v6  ;;  %v6979_v35 = vcombine.low %v9334_v25, %v9337_v10  ;;  %v2064_v39 = vrot.slane %v1460_v42, 4  ;;  %v1619_v4 = vor.u32 %v12157_v62, %v1616_v33  ;;  %v6929_v6 = vld [vmem:[%s9085_s20 + $0x2c] sm:$0xf] }
  0xde   : >> { %7887 = vmatmul.mubr.bf16.gmra.mxu0 %v6912_v45  ;;  %v1621_v44 = vrot.slane %v1616_v33, 4  ;;  %v1625_v7 = vrot.slane %v12156_v59, 7  ;;  %v2065_v54 = vrot.slane %v1463_v31, 5  ;;  %v2068_v42 = vrot.slane %v1472_v52, 5 }
  0xdf   : >> { %7938 = vmatprep.mubr.bf16.mxu0 %v6978_v47  ;;  %v1607_v1 = vsel %vm9103_vm2, %v1599_v13, %v1606_v36  ;;  %v2070_v45 = vrot.slane %v1469_v50, 4  ;;  %v2074_v57 = vshll.u32 %v6925_v3, 16  ;;  %v1620_v59 = vsel %vm9103_vm2, %v6961_v16, %v1619_v4 }
  0xe0   : >> { %v6968_v33 = vcombine.low %v1598_v60, %v1607_v1  ;;  %v1628_v0 = vor.u32 %v1626_v17, %v1625_v7  ;;  %v2066_v31 = vor.u32 %v2065_v54, %v2064_v39  ;;  %v12236_v13 = vshrl.u32 %v9334_v25, 16  ;;  %v8534_v60 = vld [vmem:[%s9067_s16 + $0x1b0] sm:$0xff]  }
  0xe1   : >> { %v2071_v47 = vor.u32 %v2070_v45, %v2068_v42  ;;  %v2076_v62 = vrot.slane %v2074_v57, 5  ;;  %v2079_v46 = vrot.slane %v1485_v63, 5  ;;  %v2082_v3 = vrot.slane %v1494_v18, 5  ;;  %v6933_v18 = vld [vmem:[%s9085_s20 + $0x3c] sm:$0xf] }
  0xe2   : >> { %v2078_v36 = vrot.slane %v12236_v13, 4  ;;  %7918 = vmatprep.mubr.bf16.mxu1 %v6968_v33  ;;  %v1629_v50 = vsel %vm9103_vm2, %v1621_v44, %v1628_v0  ;;  %v2067_v52 = vrot.slane %v2066_v31, 4  ;;  %v2084_v16 = vrot.slane %v1491_v38, 4  ;;  %v8538_v0 = vld [vmem:[%s9067_s16 + $0x1a8] sm:$0xff]  }
  0xe3   : >> { %v6969_v39 = vcombine.low %v1620_v59, %v1629_v50  ;;  %v2072_v4 = vrot.slane %v2071_v47, 4  ;;  %v2088_v54 = vshll.u32 %v6929_v6, 16  ;;  %v6980_v44 = vcombine.low %v9390_v19, %v9396_v37 }
  0xe4   : >> { %v2080_v7 = vor.u32 %v2079_v46, %v2078_v36  ;;  %v2069_v63 = vsel %vm9286_vm5, %v2067_v52, %v2068_v42  ;;  %v2085_v25 = vor.u32 %v2084_v16, %v2082_v3  ;;  %v6981_v1 = vcombine.low %v9405_v9, %v9408_v24  ;;  %v6937_v42 = vld [vmem:[%s9085_s20 + $0x4c] sm:$0xf] }
  0xe5   : >> { %7919 = vmatmul.mubr.bf16.gmra.mxu1 %v6969_v39  ;;  %v2077_v10 = vsel %vm9286_vm5, %v2072_v4, %v2076_v62  ;;  %v2090_v59 = vrot.slane %v2088_v54, 5  ;;  %v2092_v45 = vrot.slane %v1504_v56, 4  ;;  %v2093_v33 = vrot.slane %v1507_v27, 5  ;;  %v6941_v39 = vld [vmem:[%s9085_s20 + $0x5c] sm:$0xf] }
  0xe6   : >> { %7939 = vmatmul.mubr.bf16.vlgmr.msra.gmra.mxu0 %v6979_v35  ;;  %v2081_v38 = vrot.slane %v2080_v7, 4  ;;  %v6994_v57 = vcombine.low %v2069_v63, %v2077_v10  ;;  %v2086_v6 = vrot.slane %v2085_v25, 4  ;;  %v2096_v35 = vrot.slane %v1516_v21, 5  ;;  %v6945_v54 = vld [vmem:[%s9085_s20 + $0x6c] sm:$0xf] }
  0xe7   : >> { %7987 = vmatpush3.bf16.msra.mxu0 %v9557_v61  ;;  %7942 = vmatprep.mubr.bf16.mxu0 %v6980_v44  ;;  %v2098_v56 = vrot.slane %v1513_v40, 4  ;;  %v2102_v31 = vshll.u32 %v6933_v18, 16  ;;  %v2106_v61 = vrot.slane %v1526_v14, 4  ;;  %v2094_v27 = vor.u32 %v2093_v33, %v2092_v45  ;;  %v8535_v14 = vld [vmem:[%s9067_s16 + $0x1f0] sm:$0xff]   ;;  %v8544_v45 = vld [vmem:[%s9067_s16 + $0x198] sm:$0xff]  }
  0xe8   : >> { %v2083_v62 = vsel %vm9286_vm5, %v2081_v38, %v2082_v3  ;;  %7988 = vmatprep.subr.bf16.mxu0 %v8534_v60  ;;  %7970 = vmatprep.mubr.bf16.mxu1 %v6994_v57  ;;  %v2091_v19 = vsel %vm9286_vm5, %v2086_v6, %v2090_v59  ;;  %v2107_v21 = vrot.slane %v1529_v29, 5  ;;  %v2110_v47 = vrot.slane %v1538_v28, 5  ;;  %v8540_v3 = vld [vmem:[%s9067_s16 + $0x1a0] sm:$0xff]   ;;  %v8539_v59 = vld [vmem:[%s9067_s16 + $0x1e8] sm:$0xff]  }
  0xe9   : >> { %v6995_v13 = vcombine.low %v2083_v62, %v2091_v19  ;;  %v2099_v37 = vor.u32 %v2098_v56, %v2096_v35  ;;  %v2104_v40 = vrot.slane %v2102_v31, 5  ;;  %v2112_v36 = vrot.slane %v1535_v53, 4 }
  0xea   : >> { %v2095_v46 = vrot.slane %v2094_v27, 4  ;;  %v2108_v50 = vor.u32 %v2107_v21, %v2106_v61  ;;  %v2116_v52 = vshll.u32 %v6937_v42, 16  ;;  %v6982_v9 = vcombine.low %v9462_v26, %v9473_v23 }
  0xeb   : >> { %7989 = vmatpush3.bf16.msra.mxu0 %v8534_v60  ;;  %v2100_v29 = vrot.slane %v2099_v37, 4  ;;  %v2113_v28 = vor.u32 %v2112_v36, %v2110_v47  ;;  %v6983_v16 = vcombine.low %v9477_v51, %v9490_v11  ;;  %v2120_v24 = vrot.slane %v1548_v22, 4 }
  0xec   : >> { %7990 = vmatprep.subr.bf16.mxu0 %v8538_v0  ;;  %v2097_v53 = vsel %vm9286_vm5, %v2095_v46, %v2096_v35  ;;  %v2109_v60 = vrot.slane %v2108_v50, 4  ;;  %v2118_v4 = vrot.slane %v2116_v52, 5  ;;  %v2121_v7 = vrot.slane %v1551_v5, 5  ;;  %v8546_v50 = vld [vmem:[%s9067_s16 + $0x190] sm:$0xff]  }
  0xed   : >> { %7971 = vmatmul.mubr.bf16.vlgmr.msra.gmra.mxu1 %v6995_v13  ;;  %v2105_v63 = vsel %vm9286_vm5, %v2100_v29, %v2104_v40  ;;  %v2114_v25 = vrot.slane %v2113_v28, 4  ;;  %v2124_v22 = vrot.slane %v1560_v43, 5  ;;  %v12237_v44 = vshrl.u32 %v9473_v23, 16 }
  0xee   : >> { %7943 = vmatmul.mubr.bf16.gmra.mxu0 %v6981_v1  ;;  %8019 = vmatpush3.bf16.msra.mxu1 %v9562_v48  ;;  %v6996_v10 = vcombine.low %v2097_v53, %v2105_v63  ;;  %v2111_v26 = vsel %vm9286_vm5, %v2109_v60, %v2110_v47  ;;  %v2122_v5 = vor.u32 %v2121_v7, %v2120_v24  ;;  %v2130_v38 = vshll.u32 %v6941_v39, 16  ;;  %v6949_v47 = vld [vmem:[%s9085_s20 + $0x7c] sm:$0xf]  ;;  %v8550_v60 = vld [vmem:[%s9067_s16 + $0x188] sm:$0xff]  }
  0xef   : >> { %v2126_v18 = vrot.slane %v12237_v44, 4  ;;  %7991 = vmatpush3.bf16.msra.mxu0 %v8538_v0  ;;  %8020 = vmatprep.subr.bf16.mxu1 %v8535_v14  ;;  %v2119_v1 = vsel %vm9286_vm5, %v2114_v25, %v2118_v4  ;;  %v12238_v23 = vshrl.u32 %v9477_v51, 16  ;;  %v12239_v48 = vshll.u32 %v9477_v51, 16  ;;  %v8541_v51 = vld [vmem:[%s9067_s16 + $0x1e0] sm:$0xff]  }
  0xf0   : >> { %7992 = vmatprep.subr.bf16.mxu0 %v8540_v3  ;;  %7974 = vmatprep.mubr.bf16.mxu1 %v6996_v10  ;;  %v6997_v6 = vcombine.low %v2111_v26, %v2119_v1  ;;  %v2123_v33 = vrot.slane %v2122_v5, 4  ;;  %v2132_v35 = vrot.slane %v2130_v38, 5  ;;  %v2138_v62 = vrot.slane %v1582_v32, 5  ;;  %v7015_v10 = vld [vmem:[%s9085_s20 + $0x30] sm:$0xf] }
  0xf1   : >> { %v2127_v43 = vor.u32 %v2126_v18, %v2124_v22  ;;  %v2134_v42 = vrot.slane %v12238_v23, 4  ;;  %v2135_v57 = vrot.slane %v12239_v48, 5  ;;  %7946 = vmatprep.mubr.bf16.mxu0 %v6982_v9  ;;  %v12240_v31 = vshrl.u32 %v9490_v11, 16  ;;  %v7011_v9 = vld [vmem:[%s9085_s20 + $0x20] sm:$0xf] }
  0xf2   : >> { %v2144_v19 = vshll.u32 %v6945_v54, 16  ;;  %8021 = vmatpush3.bf16.msra.mxu1 %v8535_v14  ;;  %v2125_v27 = vsel %vm9286_vm5, %v2123_v33, %v2124_v22  ;;  %v6984_v21 = vcombine.low %v9535_v41, %v9554_v34  ;;  %v6985_v32 = vcombine.low %v9570_v2, %v9573_v58  ;;  %v6953_v14 = vld [vmem:[%s9085_s20 + $0x8c] sm:$0xf]  ;;  %v9741_v18 = vld [vmem:[%s9085_s20 + $0x28] sm:$0xf] }
  0xf3   : >> { %v2128_v0 = vrot.slane %v2127_v43, 4  ;;  %v2136_v56 = vor.u32 %v2135_v57, %v2134_v42  ;;  %v2140_v61 = vrot.slane %v12240_v31, 4  ;;  %7993 = vmatpush3.bf16.msra.mxu0 %v8540_v3  ;;  %v2148_v11 = vrot.slane %v1592_v20, 4  ;;  %8022 = vmatprep.subr.bf16.mxu1 %v8539_v59  ;;  %v9754_v48 = vld [vmem:[%s9085_s20 + $0x38] sm:$0xf]  ;;  %v8547_v57 = vld [vmem:[%s9067_s16 + $0x1d0] sm:$0xff]  }
  0xf4   : >> { %7994 = vmatprep.subr.bf16.mxu0 %v8544_v45  ;;  %v2146_v36 = vrot.slane %v2144_v19, 5  ;;  %v2149_v52 = vrot.slane %v1595_v12, 5  ;;  %v2152_v3 = vrot.slane %v1604_v15, 5  ;;  %v2154_v20 = vrot.slane %v1601_v30, 4 }
  0xf5   : >> { %v2133_v13 = vsel %vm9286_vm5, %v2128_v0, %v2132_v35  ;;  %v2137_v37 = vrot.slane %v2136_v56, 4  ;;  %v2141_v40 = vor.u32 %v2140_v61, %v2138_v62  ;;  %7975 = vmatmul.mubr.bf16.gmra.mxu1 %v6997_v6  ;;  %v2158_v39 = vshll.u32 %v6949_v47, 16  ;;  %v8552_v56 = vld [vmem:[%s9067_s16 + $0x180] sm:$0xff]  }
  0xf6   : >> { %v6998_v46 = vcombine.low %v2125_v27, %v2133_v13  ;;  %7947 = vmatmul.mubr.bf16.gmra.mxu0 %v6983_v16  ;;  %v2162_v41 = vrot.slane %v1614_v55, 4  ;;  %8023 = vmatpush3.bf16.msra.mxu1 %v8539_v59  ;;  %v2150_v12 = vor.u32 %v2149_v52, %v2148_v11  ;;  %v2155_v15 = vor.u32 %v2154_v20, %v2152_v3  ;;  %v9732_v16 = vld [vmem:[%s9085_s20 + $0x24] sm:$0xf]  ;;  %v8545_v55 = vld [vmem:[%s9067_s16 + $0x1d8] sm:$0xff]   ;;  %v9746_v59 = vld [vmem:[%s9085_s20 + $0x34] sm:$0xf] }
  0xf7   : >> { %v2139_v29 = vsel %vm9286_vm5, %v2137_v37, %v2138_v62  ;;  %v2142_v28 = vrot.slane %v2141_v40, 4  ;;  %v12241_v34 = vshll.u32 %v9570_v2, 16  ;;  %v2166_v24 = vrot.slane %v1626_v17, 5  ;;  %8024 = vmatprep.subr.bf16.mxu1 %v8541_v51  ;;  %7995 = vmatpush3.bf16.msra.mxu0 %v8544_v45  ;;  %v7019_v11 = vld [vmem:[%s9085_s20 + $0x40] sm:$0xf]  ;;  %v8551_v40 = vld [vmem:[%s9067_s16 + $0x1c8] sm:$0xff]  }
  0xf8   : >> { %7978 = vmatprep.mubr.bf16.mxu1 %v6998_v46  ;;  %v2160_v4 = vrot.slane %v2158_v39, 5  ;;  %v12242_v7 = vshrl.u32 %v9573_v58, 16  ;;  %v2172_v63 = vshll.u32 %v6953_v14, 16  ;;  %7996 = vmatprep.subr.bf16.mxu0 %v8546_v50  ;;  %v2151_v17 = vrot.slane %v2150_v12, 4  ;;  %v9777_v37 = vld [vmem:[%s9085_s20 + $0x44] sm:$0xf] }
  0xf9   : >> { %v2163_v30 = vrot.slane %v12241_v34, 5  ;;  %v2147_v53 = vsel %vm9286_vm5, %v2142_v28, %v2146_v36  ;;  %7950 = vmatprep.mubr.bf16.mxu0 %v6984_v21  ;;  %v2156_v22 = vrot.slane %v2155_v15, 4  ;;  %v2421_v38 = vshrl.u32 %v7011_v9, 16  ;;  %v9787_v52 = vld [vmem:[%s9085_s20 + $0x48] sm:$0xf]  ;;  %v8554_v20 = vld [vmem:[%s9067_s16 + $0x238] sm:$0xff]  }
  0xfa   : >> { %v2168_v54 = vrot.slane %v12242_v7, 4  ;;  %v6999_v25 = vcombine.low %v2139_v29, %v2147_v53  ;;  %v2174_v5 = vrot.slane %v2172_v63, 5  ;;  %v2426_v1 = vshrl.u32 %v9732_v16, 16  ;;  %8025 = vmatpush3.bf16.msra.mxu1 %v8541_v51  ;;  %v7023_v39 = vld [vmem:[%s9085_s20 + $0x50] sm:$0xf]  ;;  %v8553_v7 = vld [vmem:[%s9067_s16 + $0x1c0] sm:$0xff]  }
  0xfb   : >> { %v2164_v44 = vor.u32 %v2163_v30, %v2162_v41  ;;  %v2153_v45 = vsel %vm9286_vm5, %v2151_v17, %v2152_v3  ;;  %v2161_v43 = vsel %vm9286_vm5, %v2156_v22, %v2160_v4  ;;  %v2429_v42 = vshll.u32 %v9732_v16, 16  ;;  %8026 = vmatprep.subr.bf16.mxu1 %v8545_v55  ;;  %7997 = vmatpush3.bf16.msra.mxu0 %v8546_v50  ;;  %v9803_v30 = vld [vmem:[%s9085_s20 + $0x54] sm:$0xf]  ;;  %v9810_v4 = vld [vmem:[%s9085_s20 + $0x58] sm:$0xf] }
  0xfc   : >> { %v2169_v26 = vor.u32 %v2168_v54, %v2166_v24  ;;  %v7000_v6 = vcombine.low %v2153_v45, %v2161_v43  ;;  %v7043_v35 = vrot.slane %v2421_v38, 11  ;;  %v2428_v62 = vrot.slane %v2426_v1, 7  ;;  %7998 = vmatprep.subr.bf16.mxu0 %v8550_v60  ;;  %v8557_v22 = vld [vmem:[%s9067_s16 + $0x230] sm:$0xff]  }
  0xfd   : >> { %v2165_v23 = vrot.slane %v2164_v44, 4  ;;  %v2435_v31 = vshrl.u32 %v9741_v18, 16  ;;  %v2438_v61 = vshll.u32 %v9741_v18, 16  ;;  %v2443_v19 = vshrl.u32 %v7015_v10, 16  ;;  %7979 = vmatmul.mubr.bf16.gmra.mxu1 %v6999_v25 }
  0xfe   : >> { %v2170_v33 = vrot.slane %v2169_v26, 4  ;;  %7951 = vmatmul.mubr.bf16.gmra.mxu0 %v6985_v32  ;;  %v2431_v27 = vor.u32 %v2429_v42, %v2428_v62  ;;  %v2433_v21 = vrot.slane %v2428_v62, 4  ;;  %v2448_v47 = vshrl.u32 %v9746_v59, 16  ;;  %8027 = vmatpush3.bf16.msra.mxu1 %v8545_v55 }
  0xff   : >> { %v2167_v0 = vsel %vm9286_vm5, %v2165_v23, %v2166_v24  ;;  %7982 = vmatprep.mubr.bf16.mxu1 %v7000_v6  ;;  %v2437_v2 = vrot.slane %v2435_v31, 7  ;;  %v7044_v58 = vrot.slane %v2443_v19, 11  ;;  %v2451_v32 = vshll.u32 %v9746_v59, 16  ;;  %8028 = vmatprep.subr.bf16.mxu1 %v8547_v57  ;;  %v9831_v6 = vld [vmem:[%s9085_s20 + $0x64] sm:$0xf] }
 0x100   : >> { %v2175_v51 = vsel %vm9286_vm5, %v2170_v33, %v2174_v5  ;;  %7999 = vmatpush3.bf16.msra.mxu0 %v8550_v60  ;;  %v2432_v36 = vsel %vm9103_vm2, %v7043_v35, %v2431_v27  ;;  %v2450_v14 = vrot.slane %v2448_v47, 7  ;;  %v2457_v46 = vshrl.u32 %v9754_v48, 16  ;;  %v7031_v19 = vld [vmem:[%s9085_s20 + $0x70] sm:$0xf] }
 0x101   : >> { %v7001_v13 = vcombine.low %v2167_v0, %v2175_v51  ;;  %v2460_v50 = vshll.u32 %v9754_v48, 16  ;;  %8000 = vmatprep.subr.bf16.mxu0 %v8552_v56  ;;  %v2440_v3 = vor.u32 %v2438_v61, %v2437_v2  ;;  %v7067_v9 = vcombine.low %v9732_v16, %v9741_v18  ;;  %v9851_v2 = vld [vmem:[%s9085_s20 + $0x78] sm:$0xf] }
 0x102   : >> { %v7068_v29 = vcombine.low %v9746_v59, %v9754_v48  ;;  %v2465_v28 = vshrl.u32 %v7019_v11, 16  ;;  %v2453_v41 = vor.u32 %v2451_v32, %v2450_v14  ;;  %v2455_v12 = vrot.slane %v2450_v14, 4  ;;  %8029 = vmatpush3.bf16.msra.mxu1 %v8547_v57  ;;  %v7027_v57 = vld [vmem:[%s9085_s20 + $0x60] sm:$0xf] }
 0x103   : >> { %v2459_v15 = vrot.slane %v2457_v46, 7  ;;  %v2470_v34 = vshrl.u32 %v9777_v37, 16  ;;  %v2441_v24 = vsel %vm9103_vm2, %v2433_v21, %v2440_v3  ;;  %v2473_v55 = vshll.u32 %v9777_v37, 16  ;;  %8030 = vmatprep.subr.bf16.mxu1 %v8551_v40 }
 0x104   : >> { %v7045_v53 = vrot.slane %v2465_v28, 11  ;;  %v2479_v60 = vshrl.u32 %v9787_v52, 16  ;;  %8001 = vmatpush3.bf16.msra.mxu0 %v8552_v56  ;;  %v7051_v54 = vcombine.low %v2432_v36, %v2441_v24  ;;  %v2454_v63 = vsel %vm9103_vm2, %v7044_v58, %v2453_v41  ;;  %v9838_v56 = vld [vmem:[%s9085_s20 + $0x68] sm:$0xf] }
 0x105   : >> { %v2462_v25 = vor.u32 %v2460_v50, %v2459_v15  ;;  %v2472_v17 = vrot.slane %v2470_v34, 7  ;;  %8050 = vmatprep.subr.bf16.mxu0 %v8554_v20  ;;  %v2482_v10 = vshll.u32 %v9787_v52, 16  ;;  %v2487_v26 = vshrl.u32 %v7023_v39, 16  ;;  %7983 = vmatmul.mubr.bf16.gmra.mxu1 %v7001_v13  ;;  %v9848_v13 = vld [vmem:[%s9085_s20 + $0x74] sm:$0xf] }
 0x106   : >> { %v2481_v44 = vrot.slane %v2479_v60, 7  ;;  %v2492_v5 = vshrl.u32 %v9803_v30, 16  ;;  %8002 = vmatprep.mubr.bf16.mxu0 %v7051_v54  ;;  %v2495_v23 = vshll.u32 %v9803_v30, 16  ;;  %8031 = vmatpush3.bf16.msra.mxu1 %v8551_v40  ;;  %v2501_v27 = vshrl.u32 %v9810_v4, 16 }
 0x107   : >> { %v2463_v38 = vsel %vm9103_vm2, %v2455_v12, %v2462_v25  ;;  %v2475_v45 = vor.u32 %v2473_v55, %v2472_v17  ;;  %v2477_v43 = vrot.slane %v2472_v17, 4  ;;  %8034 = vmatprep.mubr.bf16.mxu1 %v7067_v9  ;;  %v7046_v62 = vrot.slane %v2487_v26, 11  ;;  %8032 = vmatprep.subr.bf16.mxu1 %v8553_v7  ;;  %v8558_v12 = vld [vmem:[%s9067_s16 + $0x228] sm:$0xff]   ;;  %v8561_v25 = vld [vmem:[%s9067_s16 + $0x220] sm:$0xff]  }
 0x108   : >> { %v7052_v33 = vcombine.low %v2454_v63, %v2463_v38  ;;  %v2484_v35 = vor.u32 %v2482_v10, %v2481_v44  ;;  %v2494_v0 = vrot.slane %v2492_v5, 7  ;;  %v2504_v21 = vshll.u32 %v9810_v4, 16 }
 0x109   : >> { %v2476_v51 = vsel %vm9103_vm2, %v7045_v53, %v2475_v45  ;;  %v7069_v11 = vcombine.low %v9777_v37, %v9787_v52  ;;  %v7070_v14 = vcombine.low %v9803_v30, %v9810_v4  ;;  %v2503_v9 = vrot.slane %v2501_v27, 7  ;;  %v7026_v37 = vld [vmem:[%s9085_s20 + $0x5c] sm:$0xf] }
 0x10a   : >> { %8003 = vmatmul.mubr.bf16.vlgmr.msra.gmra.mxu0 %v7052_v33  ;;  %v2485_v58 = vsel %vm9103_vm2, %v2477_v43, %v2484_v35  ;;  %v2497_v40 = vor.u32 %v2495_v23, %v2494_v0  ;;  %v2499_v36 = vrot.slane %v2494_v0, 4  ;;  %v2509_v28 = vshrl.u32 %v7027_v57, 16  ;;  %8033 = vmatpush3.bf16.msra.mxu1 %v8553_v7  ;;  %v7035_v35 = vld [vmem:[%s9085_s20 + $0x80] sm:$0xf] }
 0x10b   : >> { %8051 = vmatpush3.bf16.msra.mxu0 %v8554_v20  ;;  %v7053_v3 = vcombine.low %v2476_v51, %v2485_v58  ;;  %v2514_v39 = vshrl.u32 %v9831_v6, 16  ;;  %v2517_v15 = vshll.u32 %v9831_v6, 16  ;;  %v2523_v24 = vshrl.u32 %v9838_v56, 16  ;;  %v9896_v51 = vld [vmem:[%s9085_s20 + $0x88] sm:$0xf] }
 0x10c   : >> { %8052 = vmatprep.subr.bf16.mxu0 %v8557_v22  ;;  %v2498_v41 = vsel %vm9103_vm2, %v7046_v62, %v2497_v40  ;;  %v2526_v20 = vshll.u32 %v9838_v56, 16  ;;  %v2506_v53 = vor.u32 %v2504_v21, %v2503_v9  ;;  %v7047_v54 = vrot.slane %v2509_v28, 11  ;;  %v9887_v62 = vld [vmem:[%s9085_s20 + $0x84] sm:$0xf]  ;;  %v7039_v58 = vld [vmem:[%s9085_s20 + $0x90] sm:$0xf] }
 0x10d   : >> { %8006 = vmatprep.mubr.bf16.mxu0 %v7053_v3  ;;  %v2516_v7 = vrot.slane %v2514_v39, 7  ;;  %v2531_v63 = vshrl.u32 %v7031_v19, 16  ;;  %v2525_v17 = vrot.slane %v2523_v24, 7  ;;  %v2536_v44 = vshrl.u32 %v9848_v13, 16  ;;  %8035 = vmatmul.mubr.bf16.vlgmr.msra.gmra.mxu1 %v7068_v29  ;;  %v9907_v9 = vld [vmem:[%s9085_s20 + $0x94] sm:$0xf] }
 0x10e   : >> { %v2539_v26 = vshll.u32 %v9848_v13, 16  ;;  %v12158_v38 = vshrl.u32 %v9851_v2, 16  ;;  %v2507_v45 = vsel %vm9103_vm2, %v2499_v36, %v2506_v53  ;;  %8038 = vmatprep.mubr.bf16.mxu1 %v7069_v11  ;;  %v12165_v36 = vshll.u32 %v9851_v2, 16  ;;  %v9910_v28 = vld [vmem:[%s9085_s20 + $0x98] sm:$0xf] }
 0x10f   : >> { %8053 = vmatpush3.bf16.msra.mxu0 %v8557_v22  ;;  %v2519_v43 = vor.u32 %v2517_v15, %v2516_v7  ;;  %v2521_v57 = vrot.slane %v2516_v7, 4  ;;  %v7048_v33 = vrot.slane %v2531_v63, 11  ;;  %v7054_v0 = vcombine.low %v2498_v41, %v2507_v45 }
 0x110   : >> { %8054 = vmatprep.subr.bf16.mxu0 %v8558_v12  ;;  %v2528_v29 = vor.u32 %v2526_v20, %v2525_v17  ;;  %v2538_v22 = vrot.slane %v2536_v44, 7  ;;  %v2547_v19 = vrot.slane %v12158_v38, 7  ;;  %v7071_v11 = vcombine.low %v9831_v6, %v9838_v56 }
 0x111   : >> { %v2520_v40 = vsel %vm9103_vm2, %v7047_v54, %v2519_v43  ;;  %v7072_v3 = vcombine.low %v9848_v13, %v9851_v2  ;;  %v2553_v7 = vshrl.u32 %v7035_v35, 16  ;;  %v12162_v45 = vshrl.u32 %v9887_v62, 16 }
 0x112   : >> { %8007 = vmatmul.mubr.bf16.gmra.mxu0 %v7054_v0  ;;  %v2529_v41 = vsel %vm9103_vm2, %v2521_v57, %v2528_v29  ;;  %v2541_v53 = vor.u32 %v2539_v26, %v2538_v22  ;;  %v2543_v54 = vrot.slane %v2538_v22, 4  ;;  %v2550_v17 = vor.u32 %v12165_v36, %v2547_v19  ;;  %v8562_v57 = vld [vmem:[%s9067_s16 + $0x218] sm:$0xff]  }
 0x113   : >> { %8055 = vmatpush3.bf16.msra.mxu0 %v8558_v12  ;;  %v7055_v63 = vcombine.low %v2520_v40, %v2529_v41  ;;  %v12160_v43 = vshll.u32 %v9887_v62, 16  ;;  %v7049_v29 = vrot.slane %v2553_v7, 11  ;;  %v12159_v38 = vshrl.u32 %v9896_v51, 16 }
 0x114   : >> { %8056 = vmatprep.subr.bf16.mxu0 %v8561_v25  ;;  %v2542_v0 = vsel %vm9103_vm2, %v7048_v33, %v2541_v53  ;;  %v12164_v35 = vshll.u32 %v9896_v51, 16  ;;  %v2551_v12 = vsel %vm9103_vm2, %v2543_v54, %v2550_v17  ;;  %v2560_v22 = vrot.slane %v12162_v45, 7  ;;  %v8565_v54 = vld [vmem:[%s9067_s16 + $0x210] sm:$0xff]   ;;  %v7018_v45 = vld [vmem:[%s9085_s20 + $0x3c] sm:$0xf] }
 0x115   : >> { %8010 = vmatprep.mubr.bf16.mxu0 %v7055_v63  ;;  %v2575_v19 = vshrl.u32 %v7039_v58, 16  ;;  %v12161_v40 = vshrl.u32 %v9907_v9, 16  ;;  %v7056_v41 = vcombine.low %v2542_v0, %v2551_v12  ;;  %v2569_v33 = vrot.slane %v12159_v38, 7  ;;  %8039 = vmatmul.mubr.bf16.gmra.mxu1 %v7070_v14  ;;  %v7014_v12 = vld [vmem:[%s9085_s20 + $0x2c] sm:$0xf] }
 0x116   : >> { %v2583_v53 = vshll.u32 %v9907_v9, 16  ;;  %v12163_v7 = vshrl.u32 %v9910_v28, 16  ;;  %v2563_v58 = vor.u32 %v12160_v43, %v2560_v22  ;;  %v2565_v63 = vrot.slane %v2560_v22, 4  ;;  %8042 = vmatprep.mubr.bf16.mxu1 %v7071_v11 }
 0x117   : >> { %8057 = vmatpush3.bf16.msra.mxu0 %v8561_v25  ;;  %v7050_v17 = vrot.slane %v2575_v19, 11  ;;  %v2582_v0 = vrot.slane %v12161_v40, 7  ;;  %v2572_v38 = vor.u32 %v12164_v35, %v2569_v33  ;;  %v2592_v25 = vshll.u32 %v9910_v28, 16  ;;  %v8566_v35 = vld [vmem:[%s9067_s16 + $0x208] sm:$0xff]  }
 0x118   : >> { %8058 = vmatprep.subr.bf16.mxu0 %v8562_v57  ;;  %v2591_v14 = vrot.slane %v12163_v7, 7  ;;  %v7073_v43 = vcombine.low %v9887_v62, %v9896_v51  ;;  %v2564_v22 = vsel %vm9103_vm2, %v7049_v29, %v2563_v58  ;;  %v7074_v11 = vcombine.low %v9907_v9, %v9910_v28 }
 0x119   : >> { %v2585_v19 = vor.u32 %v2583_v53, %v2582_v0  ;;  %v2587_v40 = vrot.slane %v2582_v0, 4  ;;  %v2573_v33 = vsel %vm9103_vm2, %v2565_v63, %v2572_v38  ;;  %v3030_v36 = vrot.slane %v2426_v1, 4 }
 0x11a   : >> { %8011 = vmatmul.mubr.bf16.gmra.mxu0 %v7056_v41  ;;  %v2594_v7 = vor.u32 %v2592_v25, %v2591_v14  ;;  %v3031_v29 = vrot.slane %v2429_v42, 5  ;;  %v7057_v58 = vcombine.low %v2564_v22, %v2573_v33  ;;  %v3034_v41 = vrot.slane %v2438_v61, 5 }
 0x11b   : >> { %8059 = vmatpush3.bf16.msra.mxu0 %v8562_v57  ;;  %v2586_v0 = vsel %vm9103_vm2, %v7050_v17, %v2585_v19  ;;  %v3036_v38 = vrot.slane %v2435_v31, 4  ;;  %v3040_v16 = vshll.u32 %v7014_v12, 16  ;;  %v3044_v42 = vrot.slane %v2448_v47, 4  ;;  %v7022_v31 = vld [vmem:[%s9085_s20 + $0x4c] sm:$0xf]  ;;  %v8569_v47 = vld [vmem:[%s9067_s16 + $0x200] sm:$0xff]  }
 0x11c   : >> { %8060 = vmatprep.subr.bf16.mxu0 %v8565_v54  ;;  %v2595_v63 = vsel %vm9103_vm2, %v2587_v40, %v2594_v7  ;;  %v3032_v1 = vor.u32 %v3031_v29, %v3030_v36  ;;  %8014 = vmatprep.mubr.bf16.mxu0 %v7057_v58  ;;  %v3045_v17 = vrot.slane %v2451_v32, 5  ;;  %v3048_v18 = vrot.slane %v2460_v50, 5 }
 0x11d   : >> { %v7058_v57 = vcombine.low %v2586_v0, %v2595_v63  ;;  %v3037_v14 = vor.u32 %v3036_v38, %v3034_v41  ;;  %v3042_v22 = vrot.slane %v3040_v16, 5  ;;  %v3050_v40 = vrot.slane %v2457_v46, 4  ;;  %8043 = vmatmul.mubr.bf16.gmra.mxu1 %v7072_v3 }
 0x11e   : >> { %v3033_v61 = vrot.slane %v3032_v1, 4  ;;  %v3054_v36 = vshll.u32 %v7018_v45, 16  ;;  %v3046_v59 = vor.u32 %v3045_v17, %v3044_v42  ;;  %v3058_v32 = vrot.slane %v2470_v34, 4  ;;  %8046 = vmatprep.mubr.bf16.mxu1 %v7073_v43 }
 0x11f   : >> { %8061 = vmatpush3.bf16.msra.mxu0 %v8565_v54  ;;  %v3038_v7 = vrot.slane %v3037_v14, 4  ;;  %v3059_v50 = vrot.slane %v2473_v55, 5  ;;  %v3051_v46 = vor.u32 %v3050_v40, %v3048_v18  ;;  %v3062_v3 = vrot.slane %v2482_v10, 5 }
 0x120   : >> { %8062 = vmatprep.subr.bf16.mxu0 %v8566_v35  ;;  %v3035_v48 = vsel %vm9286_vm5, %v3033_v61, %v3034_v41  ;;  %v3056_v45 = vrot.slane %v3054_v36, 5  ;;  %v3047_v12 = vrot.slane %v3046_v59, 4  ;;  %v3064_v34 = vrot.slane %v2479_v60, 4 }
 0x121   : >> { %v3043_v54 = vsel %vm9286_vm5, %v3038_v7, %v3042_v22  ;;  %v3060_v19 = vor.u32 %v3059_v50, %v3058_v32  ;;  %v3052_v43 = vrot.slane %v3051_v46, 4  ;;  %v3068_v33 = vshll.u32 %v7022_v31, 16  ;;  %v7038_v7 = vld [vmem:[%s9085_s20 + $0x8c] sm:$0xf] }
 0x122   : >> { %8015 = vmatmul.mubr.bf16.gmra.mxu0 %v7058_v57  ;;  %v7083_v55 = vcombine.low %v3035_v48, %v3043_v54  ;;  %v3072_v29 = vrot.slane %v2492_v5, 4  ;;  %v3049_v10 = vsel %vm9286_vm5, %v3047_v12, %v3048_v18  ;;  %v3065_v0 = vor.u32 %v3064_v34, %v3062_v3 }
 0x123   : >> { %8063 = vmatpush3.bf16.msra.mxu0 %v8566_v35  ;;  %v3061_v58 = vrot.slane %v3060_v19, 4  ;;  %v3073_v41 = vrot.slane %v2495_v23, 5  ;;  %v3057_v52 = vsel %vm9286_vm5, %v3052_v43, %v3056_v45  ;;  %v3070_v60 = vrot.slane %v3068_v33, 5  ;;  %v7030_v35 = vld [vmem:[%s9085_s20 + $0x6c] sm:$0xf] }
 0x124   : >> { %8064 = vmatprep.subr.bf16.mxu0 %v8569_v47  ;;  %8066 = vmatprep.mubr.bf16.mxu0 %v7083_v55  ;;  %v3076_v38 = vrot.slane %v2504_v21, 5  ;;  %v3078_v5 = vrot.slane %v2501_v27, 4  ;;  %v7084_v63 = vcombine.low %v3049_v10, %v3057_v52  ;;  %v3066_v30 = vrot.slane %v3065_v0, 4 }
 0x125   : >> { %v3063_v1 = vsel %vm9286_vm5, %v3061_v58, %v3062_v3  ;;  %v3074_v23 = vor.u32 %v3073_v41, %v3072_v29  ;;  %v3082_v42 = vshll.u32 %v7026_v37, 16  ;;  %v3086_v57 = vrot.slane %v2514_v39, 4  ;;  %8047 = vmatmul.mubr.bf16.gmra.mxu1 %v7074_v11  ;;  %v7034_v39 = vld [vmem:[%s9085_s20 + $0x7c] sm:$0xf] }
 0x126   : >> { %v3079_v16 = vor.u32 %v3078_v5, %v3076_v38  ;;  %v3087_v14 = vrot.slane %v2517_v15, 5  ;;  %v3071_v4 = vsel %vm9286_vm5, %v3066_v30, %v3070_v60  ;;  %v3090_v21 = vrot.slane %v2526_v20, 5 }
 0x127   : >> { %8065 = vmatpush3.bf16.msra.mxu0 %v8569_v47  ;;  %v3075_v27 = vrot.slane %v3074_v23, 4  ;;  %v3092_v17 = vrot.slane %v2523_v24, 4  ;;  %v7085_v18 = vcombine.low %v3063_v1, %v3071_v4  ;;  %v3084_v15 = vrot.slane %v3082_v42, 5 }
 0x128   : >> { %v3080_v6 = vrot.slane %v3079_v16, 4  ;;  %v3088_v31 = vor.u32 %v3087_v14, %v3086_v57  ;;  %v3096_v22 = vshll.u32 %v7030_v35, 16  ;;  %v3100_v40 = vrot.slane %v2536_v44, 4 }
 0x129   : >> { %v3077_v11 = vsel %vm9286_vm5, %v3075_v27, %v3076_v38  ;;  %v3093_v61 = vor.u32 %v3092_v17, %v3090_v21  ;;  %v3101_v24 = vrot.slane %v2539_v26, 5  ;;  %v12243_v36 = vshll.u32 %v9851_v2, 16 }
 0x12a   : >> { %8067 = vmatmul.mubr.bf16.vlgmr.msra.gmra.mxu0 %v7084_v63  ;;  %v3085_v20 = vsel %vm9286_vm5, %v3080_v6, %v3084_v15  ;;  %v3089_v56 = vrot.slane %v3088_v31, 4  ;;  %v3098_v50 = vrot.slane %v3096_v22, 5  ;;  %v12244_v48 = vshrl.u32 %v9851_v2, 16  ;;  %v7042_v2 = vld [vmem:[%s9085_s20 + $0x9c] sm:$0xf] }
 0x12b   : >> { %v3104_v47 = vrot.slane %v12243_v36, 5  ;;  %8070 = vmatprep.mubr.bf16.mxu0 %v7085_v18  ;;  %v7086_v59 = vcombine.low %v3077_v11, %v3085_v20  ;;  %v3094_v32 = vrot.slane %v3093_v61, 4  ;;  %v3102_v45 = vor.u32 %v3101_v24, %v3100_v40 }
 0x12c   : >> { %v3106_v44 = vrot.slane %v12244_v48, 4  ;;  %v3091_v46 = vsel %vm9286_vm5, %v3089_v56, %v3090_v21  ;;  %v3110_v3 = vshll.u32 %v7034_v39, 16  ;;  %v12245_v13 = vshrl.u32 %v9887_v62, 16 }
 0x12d   : >> { %v3099_v54 = vsel %vm9286_vm5, %v3094_v32, %v3098_v50  ;;  %v12246_v19 = vshll.u32 %v9887_v62, 16  ;;  %v12247_v37 = vshll.u32 %v9896_v51, 16  ;;  %v3103_v33 = vrot.slane %v3102_v45, 4 }
 0x12e   : >> { %v3114_v26 = vrot.slane %v12245_v13, 4  ;;  %v3107_v12 = vor.u32 %v3106_v44, %v3104_v47  ;;  %v7087_v43 = vcombine.low %v3091_v46, %v3099_v54  ;;  %v3112_v29 = vrot.slane %v3110_v3, 5 }
 0x12f   : >> { %v3115_v34 = vrot.slane %v12246_v19, 5  ;;  %v3118_v55 = vrot.slane %v12247_v37, 5  ;;  %v12248_v10 = vshrl.u32 %v9896_v51, 16  ;;  %v3124_v52 = vshll.u32 %v7038_v7, 16 }
 0x130   : >> { %v3108_v0 = vrot.slane %v3107_v12, 4  ;;  %v12249_v60 = vshrl.u32 %v9907_v9, 16  ;;  %v3129_v62 = vrot.slane %v2583_v53, 5  ;;  %v3132_v35 = vrot.slane %v2592_v25, 5 }
 0x131   : >> { %v3120_v58 = vrot.slane %v12248_v10, 4  ;;  %v3116_v41 = vor.u32 %v3115_v34, %v3114_v26  ;;  %v3126_v1 = vrot.slane %v3124_v52, 5  ;;  %v12250_v30 = vshrl.u32 %v9910_v28, 16 }
 0x132   : >> { %v3128_v38 = vrot.slane %v12249_v60, 4  ;;  %8071 = vmatmul.mubr.bf16.gmra.mxu0 %v7086_v59  ;;  %v3138_v42 = vshll.u32 %v7042_v2, 16  ;;  %v3105_v57 = vsel %vm9286_vm5, %v3103_v33, %v3104_v47  ;;  %v3113_v9 = vsel %vm9286_vm5, %v3108_v0, %v3112_v29 }
 0x133   : >> { %v3121_v5 = vor.u32 %v3120_v58, %v3118_v55  ;;  %v3117_v63 = vrot.slane %v3116_v41, 4  ;;  %v3134_v23 = vrot.slane %v12250_v30, 4  ;;  %8074 = vmatprep.mubr.bf16.mxu0 %v7087_v43  ;;  %v7088_v21 = vcombine.low %v3105_v57, %v3113_v9 }
 0x134   : >> { %v3130_v16 = vor.u32 %v3129_v62, %v3128_v38  ;;  %v3140_v27 = vrot.slane %v3138_v42, 5 }
 0x135   : >> { %v3122_v51 = vrot.slane %v3121_v5, 4  ;;  %v3135_v53 = vor.u32 %v3134_v23, %v3132_v35  ;;  %v3119_v25 = vsel %vm9286_vm5, %v3117_v63, %v3118_v55 }
 0x136   : >> { %v3131_v28 = vrot.slane %v3130_v16, 4 }
 0x137   : >> { %v3127_v14 = vsel %vm9286_vm5, %v3122_v51, %v3126_v1  ;;  %v3136_v4 = vrot.slane %v3135_v53, 4  ;;  %v8570_v51 = vld [vmem:[%s9067_s16 + $0x78] sm:$0xff]  }
 0x138   : >> { %v7089_v17 = vcombine.low %v3119_v25, %v3127_v14  ;;  %v3133_v39 = vsel %vm9286_vm5, %v3131_v28, %v3132_v35  ;;  %8082 = vmatprep.subr.bf16.mxu1 %v8570_v51  ;;  %v8571_v14 = vld [vmem:[%s9067_s16 + $0x70] sm:$0xff]  }
 0x139   : >> { %v3141_v18 = vsel %vm9286_vm5, %v3136_v4, %v3140_v27  ;;  %8083 = vmatpush3.bf16.msra.mxu1 %v8570_v51  ;;  %v8572_v27 = vld [vmem:[%s9067_s16 + $0x38] sm:$0xff]  }
 0x13a   : >> { %8075 = vmatmul.mubr.bf16.gmra.mxu0 %v7088_v21  ;;  %v7090_v6 = vcombine.low %v3133_v39, %v3141_v18  ;;  %8084 = vmatprep.subr.bf16.mxu1 %v8571_v14 }
 0x13b   : >> { %8078 = vmatprep.mubr.bf16.mxu0 %v7089_v17  ;;  %v8573_v17 = vld [vmem:[%s9067_s16 + $0x68] sm:$0xff]   ;;  %8114 = vmatprep.subr.bf16.mxu0 %v8572_v27 }
 0x13c   : >> { %8115 = vmatpush3.bf16.msra.mxu0 %v8572_v27  ;;  %v10184_v27 = vld [vmem:[%s9067_s16 + $0xf8] sm:$0xff]  }
 0x13d   : >> { %8085 = vmatpush3.bf16.msra.mxu1 %v8571_v14  ;;  %12252 = vst [vmem:[#allocation15_spill] sm:$0xff] %v10184_v27 }
 0x13e   : >> { %8086 = vmatprep.subr.bf16.mxu1 %v8573_v17 }
 0x141   : >> { %8087 = vmatpush3.bf16.msra.mxu1 %v8573_v17 }
 0x142   : >> { %8079 = vmatmul.mubr.bf16.gmra.mxu0 %v7090_v6 }
 0x15b   : >> { %v7812_v15 = vpop.f32.mrf.mxu0 }
 0x15c   : >> { %v7844_v31 = vpop.f32.mrf.mxu1 }
 0x15d   : >> { %v1041_v11 = vadd.f32 %v7844_v31, %v7812_v15  ;;  %v855_v61 = vpop.f32.mrf.mxu0  ;;  %v8574_v31 = vld [vmem:[%s9067_s16 + $0x30] sm:$0xff]  }
 0x15e   : >> { %v1032_v22 = vpop.f32.mrf.mxu1  ;;  %8116 = vmatprep.subr.bf16.mxu0 %v8574_v31 }
 0x15f   : >> { %v1033_v40 = vadd.f32 %v1032_v22, %v855_v61  ;;  %v7813_v20 = vpop.f32.mrf.mxu0  ;;  %v8575_v61 = vld [vmem:[%s9067_s16 + $0x60] sm:$0xff]   ;;  %8117 = vmatpush3.bf16.msra.mxu0 %v8574_v31 }
 0x160   : >> { %v7845_v56 = vpop.f32.mrf.mxu1  ;;  %8088 = vmatprep.subr.bf16.mxu1 %v8575_v61 }
 0x161   : >> { %v1044_v24 = vadd.f32 %v7845_v56, %v7813_v20  ;;  %v10075_v36 = vpop.f32.mrf.mxu0  ;;  %8089 = vmatpush3.bf16.msra.mxu1 %v8575_v61  ;;  %v8576_v20 = vld [vmem:[%s9067_s16 + $0x28] sm:$0xff]  }
 0x162   : >> { %v10077_v47 = vpop.f32.mrf.mxu1  ;;  %8118 = vmatprep.subr.bf16.mxu0 %v8576_v20 }
 0x163   : >> { %v7816_v7 = vpop.f32.mrf.mxu0  ;;  %8119 = vmatpush3.bf16.msra.mxu0 %v8576_v20 }
 0x164   : >> { %v7848_v59 = vpop.f32.mrf.mxu1 }
 0x165   : >> { %v1057_v32 = vadd.f32 %v7848_v59, %v7816_v7  ;;  %v871_v50 = vpop.f32.mrf.mxu0  ;;  %v8578_v59 = vld [vmem:[%s9067_s16 + $0x20] sm:$0xff]  }
 0x166   : >> { %v1048_v48 = vpop.f32.mrf.mxu1  ;;  %8120 = vmatprep.subr.bf16.mxu0 %v8578_v59 }
 0x167   : >> { %v1049_v44 = vadd.f32 %v1048_v48, %v871_v50  ;;  %v7817_v46 = vpop.f32.mrf.mxu0  ;;  %v8579_v50 = vld [vmem:[%s9067_s16 + $0x50] sm:$0xff]   ;;  %8121 = vmatpush3.bf16.msra.mxu0 %v8578_v59 }
 0x168   : >> { %v7849_v45 = vpop.f32.mrf.mxu1 }
 0x169   : >> { %v1060_v3 = vadd.f32 %v7849_v45, %v7817_v46  ;;  %v10079_v13 = vpop.f32.mrf.mxu0  ;;  %v8581_v46 = vld [vmem:[%s9067_s16 + $0x48] sm:$0xff]  }
 0x16a   : >> { %v10081_v26 = vpop.f32.mrf.mxu1 }
 0x16b   : >> { %v7820_v54 = vpop.f32.mrf.mxu0 }
 0x16c   : >> { %v7852_v12 = vpop.f32.mrf.mxu1 }
 0x16d   : >> { %v10083_v19 = vadd.f32 %v7852_v12, %v7820_v54  ;;  %v887_v34 = vpop.f32.mrf.mxu0 }
 0x16e   : >> { %v1064_v37 = vpop.f32.mrf.mxu1 }
 0x16f   : >> { %v10085_v55 = vadd.f32 %v1064_v37, %v887_v34  ;;  %v7821_v2 = vpop.f32.mrf.mxu0  ;;  %v8583_v34 = vld [vmem:[%s9067_s16 + $0x40] sm:$0xff]  }
 0x170   : >> { %v7853_v43 = vpop.f32.mrf.mxu1 }
 0x171   : >> { %v10087_v33 = vadd.f32 %v7853_v43, %v7821_v2  ;;  %v10089_v29 = vpop.f32.mrf.mxu0 }
 0x172   : >> { %v10091_v10 = vpop.f32.mrf.mxu1 }
 0x173   : >> { %v7824_v58 = vpop.f32.mrf.mxu0 }
 0x174   : >> { %v7856_v0 = vpop.f32.mrf.mxu1 }
 0x175   : >> { %v10093_v41 = vadd.f32 %v7856_v0, %v7824_v58  ;;  %v903_v52 = vpop.f32.mrf.mxu0 }
 0x176   : >> { %v1080_v60 = vpop.f32.mrf.mxu1 }
 0x177   : >> { %v10095_v38 = vadd.f32 %v1080_v60, %v903_v52  ;;  %v7825_v5 = vpop.f32.mrf.mxu0  ;;  %v8585_v52 = vld [vmem:[%s9067_s16 + $0x8] sm:$0xff]   ;;  %v8588_v60 = vld [vmem:[%s9067_s16] sm:$0xff]  }
 0x178   : >> { %v7857_v62 = vpop.f32.mrf.mxu1 }
 0x179   : >> { %v10097_v35 = vadd.f32 %v7857_v62, %v7825_v5  ;;  %v10099_v63 = vpop.f32.mrf.mxu0 }
 0x17a   : >> { %v10101_v1 = vpop.f32.mrf.mxu1 }
 0x17b   : >> { %v7876_v30 = vpop.f32.mrf.mxu0 }
 0x17c   : >> { %v10103_v23 = vadd.f32 %v7876_v30, %v1041_v11  ;;  %v10106_v42 = vpop.f32.mrf.mxu1 }
 0x17d   : >> { %v1340_v16 = vpop.f32.mrf.mxu0 }
 0x17e   : >> { %v10108_v57 = vadd.f32 %v1340_v16, %v1033_v40  ;;  %v10110_v53 = vpop.f32.mrf.mxu1 }
 0x17f   : >> { %v7877_v9 = vpop.f32.mrf.mxu0 }
 0x180   : >> { %v10112_v25 = vadd.f32 %v7877_v9, %v1044_v24  ;;  %v10117_v4 = vpop.f32.mrf.mxu1  ;;  %v8577_v24 = vld [vmem:[%s9067_s16 + $0x58] sm:$0xff]  }
 0x181   : >> { %v10115_v28 = vpop.f32.mrf.mxu0  ;;  %8090 = vmatprep.subr.bf16.mxu1 %v8577_v24 }
 0x182   : >> { %v10123_v18 = vpop.f32.mrf.mxu1  ;;  %8091 = vmatpush3.bf16.msra.mxu1 %v8577_v24 }
 0x183   : >> { %v7880_v21 = vpop.f32.mrf.mxu0  ;;  %8092 = vmatprep.subr.bf16.mxu1 %v8579_v50 }
 0x184   : >> { %v10121_v39 = vadd.f32 %v7880_v21, %v1057_v32 }
 0x185   : >> { %v1356_v6 = vpop.f32.mrf.mxu0 }
 0x186   : >> { %v10125_v15 = vadd.f32 %v1356_v6, %v1049_v44  ;;  %v8580_v44 = vld [vmem:[%s9067_s16 + $0x18] sm:$0xff]   ;;  %8093 = vmatpush3.bf16.msra.mxu1 %v8579_v50 }
 0x187   : >> { %v7881_v11 = vpop.f32.mrf.mxu0  ;;  %8122 = vmatprep.subr.bf16.mxu0 %v8580_v44  ;;  %8094 = vmatprep.subr.bf16.mxu1 %v8581_v46 }
 0x188   : >> { %v10129_v22 = vadd.f32 %v7881_v11, %v1060_v3  ;;  %v8582_v3 = vld [vmem:[%s9067_s16 + $0x10] sm:$0xff]   ;;  %8123 = vmatpush3.bf16.msra.mxu0 %v8580_v44 }
 0x189   : >> { %v10131_v40 = vpop.f32.mrf.mxu1  ;;  %v10137_v7 = vpop.f32.mrf.mxu0  ;;  %8124 = vmatprep.subr.bf16.mxu0 %v8582_v3 }
 0x18a   : >> { %8095 = vmatpush3.bf16.msra.mxu1 %v8581_v46 }
 0x18b   : >> { %v10134_v56 = vpop.f32.mrf.mxu1  ;;  %8096 = vmatprep.subr.bf16.mxu1 %v8583_v34 }
 0x18c   : >> { %8125 = vmatpush3.bf16.msra.mxu0 %v8582_v3 }
 0x18d   : >> { %v10140_v32 = vpop.f32.mrf.mxu1  ;;  %8126 = vmatprep.subr.bf16.mxu0 %v8585_v52 }
 0x18e   : >> { %8097 = vmatpush3.bf16.msra.mxu1 %v8583_v34 }
 0x18f   : >> { %v7884_v48 = vpop.f32.mrf.mxu0  ;;  %v10149_v54 = vpop.f32.mrf.mxu1 }
 0x190   : >> { %v10146_v45 = vadd.f32 %v7884_v48, %v10083_v19  ;;  %8127 = vmatpush3.bf16.msra.mxu0 %v8585_v52 }
 0x191   : >> { %v1372_v12 = vpop.f32.mrf.mxu0  ;;  %8128 = vmatprep.subr.bf16.mxu0 %v8588_v60 }
 0x192   : >> { %v10153_v37 = vadd.f32 %v1372_v12, %v10085_v55  ;;  %v10166_v55 = vld [vmem:[%s9067_s16 + $0xb8] sm:$0xff]  }
 0x193   : >> { %v7885_v2 = vpop.f32.mrf.mxu0  ;;  %12251 = vst [vmem:[#allocation14_spill] sm:$0xff] %v10166_v55  ;;  %8146 = vmatprep.subr.bf16.mxu1 %v10166_v55 }
 0x194   : >> { %v10156_v43 = vadd.f32 %v7885_v2, %v10087_v33  ;;  %8129 = vmatpush3.bf16.msra.mxu0 %v8588_v60 }
 0x195   : >> { %v10158_v19 = vpop.f32.mrf.mxu1  ;;  %v10162_v0 = vpop.f32.mrf.mxu0  ;;  %8178 = vmatprep.subr.bf16.mxu0 %v10184_v27 }
 0x197   : >> { %v10160_v58 = vpop.f32.mrf.mxu1 }
 0x199   : >> { %v10169_v5 = vpop.f32.mrf.mxu1 }
 0x19b   : >> { %v10178_v16 = vpop.f32.mrf.mxu1 }
 0x19e   : >> { %v7888_v33 = vpop.f32.mrf.mxu0 }
 0x19f   : >> { %v10173_v62 = vadd.f32 %v7888_v33, %v10093_v41 }
 0x1a0   : >> { %v1388_v30 = vpop.f32.mrf.mxu0 }
 0x1a1   : >> { %v10176_v51 = vadd.f32 %v1388_v30, %v10095_v38 }
 0x1a2   : >> { %v7889_v9 = vpop.f32.mrf.mxu0 }
 0x1a3   : >> { %v10181_v14 = vadd.f32 %v7889_v9, %v10097_v35 }
 0x1a4   : >> { %v10186_v21 = vpop.f32.mrf.mxu0 }
 0x1a5   : >> { %v10189_v41 = vpop.f32.mrf.mxu1 }
 0x1a6   : >> { %v10191_v17 = vpop.f32.mrf.mxu0 }
 0x1a7   : >> { %v10193_v6 = vpop.f32.mrf.mxu1 }
 0x1a8   : >> { %v10195_v38 = vpop.f32.mrf.mxu0 }
 0x1a9   : >> { %v10197_v31 = vpop.f32.mrf.mxu1 }
 0x1aa   : >> { %v10199_v11 = vpop.f32.mrf.mxu0 }
 0x1ab   : >> { %v10201_v35 = vpop.f32.mrf.mxu1 }
 0x1ac   : >> { %v10203_v61 = vpop.f32.mrf.mxu0 }
 0x1ad   : >> { %v10205_v20 = vpop.f32.mrf.mxu1 }
 0x1ae   : >> { %v10207_v24 = vpop.f32.mrf.mxu0 }
 0x1af   : >> { %v10209_v59 = vpop.f32.mrf.mxu1 }
 0x1b0   : >> { %v10211_v50 = vpop.f32.mrf.mxu0 }
 0x1b1   : >> { %12253 = vst [vmem:[#allocation16_spill] sm:$0xff] %v10211_v50  ;;  %v10213_v48 = vpop.f32.mrf.mxu1 }
 0x1b2   : >> { %12254 = vst [vmem:[#allocation17_spill] sm:$0xff] %v10213_v48  ;;  %v10215_v44 = vpop.f32.mrf.mxu0 }
 0x1b3   : >> { %12255 = vst [vmem:[#allocation18_spill] sm:$0xff] %v10215_v44  ;;  %v10217_v46 = vpop.f32.mrf.mxu1  ;;  %v10285_v44 = vld [vmem:[%s9085_s20 + $0xa8] sm:$0xf] }
 0x1b4   : >> { %12256 = vst [vmem:[#allocation19_spill] sm:$0xff] %v10217_v46  ;;  %v10219_v3 = vpop.f32.mrf.mxu0  ;;  %12282 = vst [vmem:[#allocation45_spill] sm:$0xff] %v10285_v44 }
 0x1b5   : >> { %12257 = vst [vmem:[#allocation20_spill] sm:$0xff] %v10219_v3  ;;  %v10221_v12 = vpop.f32.mrf.mxu1 }
 0x1b6   : >> { %12258 = vst [vmem:[#allocation21_spill] sm:$0xff] %v10221_v12  ;;  %v10223_v34 = vpop.f32.mrf.mxu0 }
 0x1b7   : >> { %12259 = vst [vmem:[#allocation22_spill] sm:$0xff] %v10223_v34  ;;  %v10225_v2 = vpop.f32.mrf.mxu1 }
 0x1b8   : >> { %12260 = vst [vmem:[#allocation23_spill] sm:$0xff] %v10225_v2  ;;  %v10227_v52 = vpop.f32.mrf.mxu0 }
 0x1b9   : >> { %12261 = vst [vmem:[#allocation24_spill] sm:$0xff] %v10227_v52  ;;  %v10229_v60 = vpop.f32.mrf.mxu1 }
 0x1ba   : >> { %12262 = vst [vmem:[#allocation25_spill] sm:$0xff] %v10229_v60  ;;  %v10231_v33 = vpop.f32.mrf.mxu0 }
 0x1bb   : >> { %12263 = vst [vmem:[#allocation26_spill] sm:$0xff] %v10231_v33  ;;  %v10233_v30 = vpop.f32.mrf.mxu1 }
 0x1bc   : >> { %12264 = vst [vmem:[#allocation27_spill] sm:$0xff] %v10233_v30  ;;  %v10235_v9 = vpop.f32.mrf.mxu0 }
 0x1bd   : >> { %12265 = vst [vmem:[#allocation28_spill] sm:$0xff] %v10235_v9  ;;  %v10237_v27 = vpop.f32.mrf.mxu1 }
 0x1be   : >> { %12266 = vst [vmem:[#allocation29_spill] sm:$0xff] %v10237_v27  ;;  %v10239_v55 = vpop.f32.mrf.mxu0 }
 0x1bf   : >> { %12267 = vst [vmem:[#allocation30_spill] sm:$0xff] %v10239_v55  ;;  %v10241_v8 = vpop.f32.mrf.mxu1 }
 0x1c0   : >> { %12268 = vst [vmem:[#allocation31_spill] sm:$0xff] %v10241_v8  ;;  %v10243_v12 = vpop.f32.mrf.mxu0  ;;  %v10260_v8 = vld [vmem:[%s9085_s20 + $0x94] sm:$0xf] }
 0x1c1   : >> { %12269 = vst [vmem:[#allocation32_spill] sm:$0xff] %v10243_v12  ;;  %v10245_v52 = vpop.f32.mrf.mxu1  ;;  %v10263_v12 = vld [vmem:[%s9085_s20 + $0x98] sm:$0xf] }
 0x1c2   : >> { %12270 = vst [vmem:[#allocation33_spill] sm:$0xff] %v10245_v52  ;;  %v10247_v2 = vpop.f32.mrf.mxu0  ;;  %v12170_v50 = vshll.u32 %v10263_v12, 16 }
 0x1c3   : >> { %12271 = vst [vmem:[#allocation34_spill] sm:$0xff] %v10247_v2  ;;  %v10249_v60 = vpop.f32.mrf.mxu1  ;;  %v7139_v2 = vld [vmem:[%s9085_s20 + $0x90] sm:$0xf] }
 0x1c4   : >> { %12272 = vst [vmem:[#allocation35_spill] sm:$0xff] %v10249_v60  ;;  %v10251_v33 = vpop.f32.mrf.mxu0 }
 0x1c5   : >> { %12273 = vst [vmem:[#allocation36_spill] sm:$0xff] %v10251_v33  ;;  %v10253_v30 = vpop.f32.mrf.mxu1  ;;  %v1036_v33 = vadd.f32 %v10077_v47, %v10075_v36  ;;  %v1052_v36 = vadd.f32 %v10081_v26, %v10079_v13  ;;  %v1068_v47 = vadd.f32 %v10091_v10, %v10089_v29  ;;  %v1084_v13 = vadd.f32 %v10101_v1, %v10099_v63  ;;  %v10338_v10 = vld [vmem:[%s9085_s20 + $0xb4] sm:$0xf] }
 0x1c6   : >> { %12274 = vst [vmem:[#allocation37_spill] sm:$0xff] %v10253_v30  ;;  %v10306_v26 = vadd.f32 %v10106_v42, %v10103_v23  ;;  %v10319_v63 = vadd.f32 %v10117_v4, %v10112_v25  ;;  %12289 = vst [vmem:[#allocation50_spill] sm:$0xff] %v10338_v10 }
 0x1c7   : >> { %v10255_v9 = vpop.f32.mrf.mxu1  ;;  %v1404_v3 = vadd.f32 %v10115_v28, %v1036_v33  ;;  %v12284_v28 = vshrl.u32 %v10260_v8, 16  ;;  %v1408_v23 = vadd.f32 %v10137_v7, %v1052_v36 }
 0x1c8   : >> { %12275 = vst [vmem:[#allocation38_spill] sm:$0xff] %v10255_v9  ;;  %v3553_v9 = vshrl.u32 %v7139_v2, 16  ;;  %v10329_v2 = vadd.f32 %v10131_v40, %v10121_v39 }
 0x1c9   : >> { %v10265_v27 = vpop.f32.mrf.mxu1  ;;  %v3560_v33 = vrot.slane %v12284_v28, 7  ;;  %v7143_v28 = vld [vmem:[%s9085_s20 + $0xa0] sm:$0xf]  ;;  %v10322_v1 = vadd.f32 %v10123_v18, %v1404_v3  ;;  %v10341_v18 = vld [vmem:[%s9085_s20 + $0xb8] sm:$0xf] }
 0x1ca   : >> { %v10257_v55 = vpop.f32.mrf.mxu0  ;;  %12276 = vst [vmem:[#allocation39_spill] sm:$0xff] %v10265_v27  ;;  %v10282_v27 = vld [vmem:[%s9085_s20 + $0xa4] sm:$0xf]  ;;  %v7168_v4 = vrot.slane %v3553_v9, 11  ;;  %12290 = vst [vmem:[#allocation51_spill] sm:$0xff] %v10341_v18 }
 0x1cb   : >> { %v10271_v60 = vpop.f32.mrf.mxu1  ;;  %12281 = vst [vmem:[#allocation44_spill] sm:$0xff] %v10282_v27  ;;  %v3565_v39 = vrot.slane %v3560_v33, 4 }
 0x1cc   : >> { %v10267_v52 = vpop.f32.mrf.mxu0  ;;  %12278 = vst [vmem:[#allocation41_spill] sm:$0xff] %v10271_v60 }
 0x1cd   : >> { %12277 = vst [vmem:[#allocation40_spill] sm:$0xff] %v10267_v52  ;;  %v10279_v46 = vpop.f32.mrf.mxu1  ;;  %v12285_v52 = vshrl.u32 %v10263_v12, 16 }
 0x1ce   : >> { %v10276_v34 = vpop.f32.mrf.mxu0  ;;  %12280 = vst [vmem:[#allocation43_spill] sm:$0xff] %v10279_v46  ;;  %v12171_v46 = vshll.u32 %v10260_v8, 16 }
 0x1cf   : >> { %12279 = vst [vmem:[#allocation42_spill] sm:$0xff] %v10276_v34  ;;  %v10293_v60 = vpop.f32.mrf.mxu1  ;;  %v7135_v34 = vld [vmem:[%s9085_s20 + $0x80] sm:$0xf]  ;;  %v3569_v48 = vrot.slane %v12285_v52, 7  ;;  %v10315_v52 = vadd.f32 %v10110_v53, %v10108_v57  ;;  %v10333_v57 = vadd.f32 %v10134_v56, %v10125_v15  ;;  %v3575_v15 = vshrl.u32 %v7143_v28, 16 }
 0x1d0   : >> { %v10291_v30 = vpop.f32.mrf.mxu0  ;;  %v3531_v25 = vshrl.u32 %v7135_v34, 16  ;;  %v3563_v3 = vor.u32 %v12171_v46, %v3560_v33  ;;  %v7138_v56 = vld [vmem:[%s9085_s20 + $0x8c] sm:$0xf]  ;;  %v12292_v34 = vshrl.u32 %v10282_v27, 16  ;;  %v10361_v33 = vadd.f32 %v10140_v32, %v10129_v22 }
 0x1d1   : >> { %12283 = vst [vmem:[#allocation46_spill] sm:$0xff] %v10291_v30  ;;  %v10325_v42 = vpop.f32.mrf.mxu1  ;;  %v3572_v40 = vor.u32 %v12170_v50, %v3569_v48  ;;  %v7147_v30 = vld [vmem:[%s9085_s20 + $0xb0] sm:$0xf]  ;;  %v10364_v48 = vadd.f32 %v10149_v54, %v1408_v23  ;;  %v10372_v46 = vadd.f32 %v10158_v19, %v10146_v45  ;;  %v1412_v22 = vadd.f32 %v10162_v0, %v1068_v47 }
 0x1d2   : >> { %v10308_v29 = vpop.f32.mrf.mxu0  ;;  %12287 = vst [vmem:[#allocation48_spill] sm:$0xff] %v10325_v42  ;;  %v3582_v9 = vrot.slane %v12292_v34, 7  ;;  %v4118_v54 = vshll.u32 %v7138_v56, 16  ;;  %v10381_v23 = vrot.slane %v3531_v25, 11  ;;  %v3564_v50 = vsel %vm9103_vm2, %v7168_v4, %v3563_v3 }
 0x1d3   : >> { %12286 = vst [vmem:[#allocation47_spill] sm:$0xff] %v10308_v29  ;;  %v10343_v7 = vpop.f32.mrf.mxu1  ;;  %v12293_v29 = vshrl.u32 %v10285_v44, 16  ;;  %v3573_v34 = vsel %vm9103_vm2, %v3565_v39, %v3572_v40  ;;  %v3597_v45 = vshrl.u32 %v7147_v30, 16  ;;  %v12295_v0 = vshll.u32 %v10285_v44, 16 }
 0x1d4   : >> { %v10335_v53 = vpop.f32.mrf.mxu0  ;;  %12291 = vst [vmem:[#allocation52_spill] sm:$0xff] %v10343_v7  ;;  %12294 = vst [vmem:[#allocation53_spill] sm:$0xff] %v10381_v23  ;;  %v7169_v7 = vrot.slane %v3575_v15, 11  ;;  %v12296_v4 = vshrl.u32 %v10338_v10, 16  ;;  %v12174_v39 = vshll.u32 %v10338_v10, 16  ;;  %v12297_v30 = vshrl.u32 %v10341_v18, 16 }
 0x1d5   : >> { %12288 = vst [vmem:[#allocation49_spill] sm:$0xff] %v10335_v53  ;;  %v12172_v53 = vshll.u32 %v10282_v27, 16  ;;  %v3591_v42 = vrot.slane %v12293_v29, 7  ;;  %v10366_v28 = vpop.f32.mrf.mxu1  ;;  %v10376_v29 = vadd.f32 %v10160_v58, %v10153_v37  ;;  %v3587_v58 = vrot.slane %v3582_v9, 4  ;;  %v12322_v10 = vld [vmem:[#allocation26_spill] sm:$0xff] }
 0x1d6   : >> { %v10350_v36 = vpop.f32.mrf.mxu0  ;;  %v3604_v3 = vrot.slane %v12296_v4, 7  ;;  %v3613_v40 = vrot.slane %v12297_v30, 7  ;;  %v10403_v56 = vadd.f32 %v10169_v5, %v10156_v43  ;;  %v10413_v4 = vld [vmem:[%s9085_s20 + $0xc4] sm:$0xf]  ;;  %v1416_v30 = vadd.f32 %v10186_v21, %v1084_v13 }
 0x1d7   : >> { %v3585_v37 = vor.u32 %v12172_v53, %v3582_v9  ;;  %v3594_v47 = vor.u32 %v12295_v0, %v3591_v42  ;;  %v10393_v25 = vpop.f32.mrf.mxu1  ;;  %v10406_v9 = vadd.f32 %v10178_v16, %v1412_v22  ;;  %12298 = vst [vmem:[#allocation54_spill] sm:$0xff] %v10413_v4  ;;  %v10415_v53 = vrot.slane %v4118_v54, 5  ;;  %v10425_v16 = vld [vmem:[%s9085_s20 + $0xc8] sm:$0xf] }
 0x1d8   : >> { %v10379_v32 = vpop.f32.mrf.mxu0  ;;  %v10420_v43 = vcombine.low %v3564_v50, %v3573_v34  ;;  %12301 = vst [vmem:[#allocation57_spill] sm:$0xff] %v10425_v16  ;;  %v2050_v22 = vadd.f32 %v10191_v17, %v10306_v26  ;;  %v7170_v13 = vrot.slane %v3597_v45, 11  ;;  %v12173_v34 = vshrl.u32 %v10413_v4, 16 }
 0x1d9   : >> { %12299 = vst [vmem:[#allocation55_spill] sm:$0xff] %v10415_v53  ;;  %v3586_v54 = vsel %vm9103_vm2, %v7169_v7, %v3585_v37  ;;  %v3595_v21 = vsel %vm9103_vm2, %v3587_v58, %v3594_v47  ;;  %v10435_v50 = vpop.f32.mrf.mxu1  ;;  %v3607_v5 = vor.u32 %v12174_v39, %v3604_v3  ;;  %v3609_v15 = vrot.slane %v3604_v3, 4  ;;  %v7151_v53 = vld [vmem:[%s9085_s20 + $0xc0] sm:$0xf]  ;;  %v12304_v39 = vld [vmem:[#allocation16_spill] sm:$0xff] }
 0x1da   : >> { %v10387_v19 = vpop.f32.mrf.mxu0  ;;  %12300 = vst [vmem:[#allocation56_spill] sm:$0xff] %v10420_v43  ;;  %v12302_v17 = vshll.u32 %v10341_v18, 16  ;;  %v10445_v7 = vadd.f32 %v10189_v41, %v10173_v62  ;;  %v10449_v45 = vadd.f32 %v10193_v6, %v10176_v51  ;;  %v2048_v37 = vadd.f32 %v10195_v38, %v10315_v52  ;;  %v10467_v6 = vld [vmem:[%s9085_s20 + $0xd4] sm:$0xf]  ;;  %v10470_v38 = vld [vmem:[%s9085_s20 + $0xd8] sm:$0xf] }
 0x1db   : >> { %v12175_v47 = vshrl.u32 %v10425_v16, 16  ;;  %v10458_v3 = vadd.f32 %v10197_v31, %v10181_v14  ;;  %v2051_v62 = vadd.f32 %v10199_v11, %v10319_v63  ;;  %v10462_v41 = vcombine.low %v3586_v54, %v3595_v21  ;;  %v10480_v63 = vpop.f32.mrf.mxu1  ;;  %v10509_v51 = vld [vmem:[%s9085_s20 + $0xe8] sm:$0xf]  ;;  %v12321_v18 = vld [vmem:[#allocation24_spill] sm:$0xff] }
 0x1dc   : >> { %v10408_v42 = vpop.f32.mrf.mxu0  ;;  %v3616_v26 = vor.u32 %v12302_v17, %v3613_v40  ;;  %v10473_v52 = vadd.f32 %v10201_v35, %v1416_v30  ;;  %v2371_v40 = vadd.f32 %v10205_v20, %v2050_v22  ;;  %v2049_v14 = vadd.f32 %v10203_v61, %v10322_v1  ;;  %v7155_v61 = vld [vmem:[%s9085_s20 + $0xd0] sm:$0xf] }
 0x1dd   : >> { %12303 = vst [vmem:[#allocation58_spill] sm:$0xff] %v10462_v41  ;;  %v3619_v11 = vshrl.u32 %v7151_v53, 16  ;;  %v3608_v54 = vsel %vm9103_vm2, %v7170_v13, %v3607_v5  ;;  %v10488_v35 = vrot.slane %v12173_v34, 7  ;;  %v12176_v20 = vshll.u32 %v10413_v4, 16  ;;  %v10506_v34 = vld [vmem:[%s9085_s20 + $0xe4] sm:$0xf] }
 0x1de   : >> { %v10429_v0 = vpop.f32.mrf.mxu0  ;;  %v3617_v21 = vsel %vm9103_vm2, %v3609_v15, %v3616_v26  ;;  %v3635_v22 = vrot.slane %v12175_v47, 7  ;;  %v2369_v15 = vadd.f32 %v10209_v59, %v2048_v37  ;;  %v2054_v13 = vadd.f32 %v10207_v24, %v10329_v2  ;;  %v12306_v24 = vld [vmem:[#allocation17_spill] sm:$0xff]  ;;  %v12307_v2 = vld [vmem:[#allocation40_spill] sm:$0xff]  ;;  %v10521_v26 = vpop.f32.mrf.mxu1  ;;  %v12313_v41 = vld [vmem:[#allocation42_spill] sm:$0xff] }
 0x1df   : >> { %v2791_v17 = vadd.f32 %v10257_v55, %v2371_v40  ;;  %v2052_v30 = vadd.f32 %v12304_v39, %v10333_v57  ;;  %v10515_v53 = vcombine.low %v3608_v54, %v3617_v21  ;;  %v10517_v59 = vrot.slane %v3619_v11, 11  ;;  %v12308_v39 = vld [vmem:[#allocation18_spill] sm:$0xff]  ;;  %v12312_v57 = vld [vmem:[#allocation43_spill] sm:$0xff]  ;;  %v12329_v27 = vld [vmem:[#allocation52_spill] sm:$0xff] }
 0x1e0   : >> { %v10453_v58 = vpop.f32.mrf.mxu0  ;;  %v3641_v37 = vshrl.u32 %v7155_v61, 16  ;;  %v2372_v55 = vadd.f32 %v12306_v24, %v2051_v62  ;;  %v2789_v40 = vadd.f32 %v12307_v2, %v2369_v15  ;;  %v10526_v5 = vor.u32 %v12176_v20, %v10488_v35  ;;  %v12310_v24 = vld [vmem:[#allocation19_spill] sm:$0xff]  ;;  %v12311_v20 = vld [vmem:[#allocation20_spill] sm:$0xff] }
 0x1e1   : >> { %12305 = vst [vmem:[#allocation16_spill] sm:$0xff] %v10515_v53  ;;  %v2055_v11 = vadd.f32 %v12308_v39, %v10361_v33  ;;  %v12309_v21 = vshll.u32 %v10425_v16, 16  ;;  %v2370_v2 = vadd.f32 %v12310_v24, %v2049_v14  ;;  %v2053_v53 = vadd.f32 %v12311_v20, %v10364_v48  ;;  %v12314_v39 = vld [vmem:[#allocation22_spill] sm:$0xff]  ;;  %v12317_v20 = vld [vmem:[#allocation21_spill] sm:$0xff]  ;;  %v12319_v61 = vld [vmem:[#allocation23_spill] sm:$0xff] }
 0x1e2   : >> { %v10478_v31 = vpop.f32.mrf.mxu0  ;;  %v3016_v4 = vadd.f32 %v12312_v57, %v2791_v17  ;;  %v2792_v33 = vadd.f32 %v12313_v41, %v2372_v55  ;;  %v2058_v43 = vadd.f32 %v12314_v39, %v10372_v46  ;;  %v10551_v15 = vrot.slane %v3641_v37, 11  ;;  %v12318_v46 = vld [vmem:[#allocation46_spill] sm:$0xff]  ;;  %v10561_v57 = vpop.f32.mrf.mxu1  ;;  %v12320_v37 = vld [vmem:[#allocation25_spill] sm:$0xff] }
 0x1e3   : >> { %v10535_v62 = vor.u32 %v12309_v21, %v3635_v22  ;;  %v10549_v22 = vld [vmem:[%s472_s22] ss:$0 sm:$0xff]  ;;  %v12316_v14 = vshrl.u32 %v10467_v6, 16  ;;  %v2375_v41 = vadd.f32 %v12317_v20, %v2054_v13  ;;  %v3014_v17 = vadd.f32 %v10293_v60, %v2789_v40  ;;  %v12323_v40 = vld [vmem:[#allocation27_spill] sm:$0xff]  ;;  %v12324_v20 = vld [vmem:[#allocation48_spill] sm:$0xff] }
 0x1e4   : >> { %v10492_v1 = vpop.f32.mrf.mxu0  ;;  %12315 = vst [vmem:[#allocation17_spill] sm:$0xff] %v10551_v15  ;;  %v2790_v55 = vadd.f32 %v12318_v46, %v2370_v2  ;;  %v2373_v16 = vadd.f32 %v12319_v61, %v2052_v30  ;;  %v2376_v23 = vadd.f32 %v12320_v37, %v2055_v11  ;;  %v2059_v48 = vadd.f32 %v12322_v10, %v10403_v56  ;;  %v10573_v13 = vld [vmem:[%s474_s26] ss:$0 sm:$0xff]  ;;  %v12325_v61 = vld [vmem:[#allocation29_spill] sm:$0xff] }
 0x1e5   : >> { %v10555_v24 = vrot.slane %v12316_v14, 7  ;;  %v2056_v14 = vadd.f32 %v12321_v18, %v10376_v29  ;;  %v2374_v2 = vadd.f32 %v12323_v40, %v2053_v53  ;;  %v3017_v46 = vadd.f32 %v12324_v20, %v2792_v33  ;;  %v12327_v29 = vld [vmem:[#allocation47_spill] sm:$0xff]  ;;  %v12328_v10 = vld [vmem:[#allocation49_spill] sm:$0xff]  ;;  %v10586_v53 = vpop.f32.mrf.mxu1 }
 0x1e6   : >> { %v10513_v47 = vpop.f32.mrf.mxu0  ;;  %v2379_v11 = vadd.f32 %v12325_v61, %v2058_v43  ;;  %v2795_v37 = vadd.f32 %v12327_v29, %v2375_v41  ;;  %v2793_v56 = vadd.f32 %v12328_v10, %v2373_v16  ;;  %v3015_v15 = vadd.f32 %v12329_v27, %v2790_v55  ;;  %v12330_v43 = vld [vmem:[#allocation31_spill] sm:$0xff]  ;;  %v12332_v41 = vld [vmem:[#allocation32_spill] sm:$0xff]  ;;  %v12333_v29 = vld [vmem:[#allocation33_spill] sm:$0xff] }
 0x1e7   : >> { %v2060_v16 = vadd.f32 %v12332_v41, %v10449_v45  ;;  %v2796_v20 = vadd.f32 %v10350_v36, %v2376_v23  ;;  %v2986_v45 = vpop.f32.mrf.mxu1 }
 0x1e8   : >> { %v10531_v54 = vpop.f32.mrf.mxu0 }
 0x1ea   : >> { %v8068_v21 = vpop.f32.mrf.mxu0 }
 0x1eb   : >> { %v3337_v39 = vadd.f32 %v8068_v21, %v3016_v4  ;;  %v12326_v21 = vld [vmem:[#allocation28_spill] sm:$0xff] }
 0x1ec   : >> { %v3272_v60 = vpop.f32.mrf.mxu0  ;;  %v2057_v18 = vadd.f32 %v12326_v21, %v10406_v9  ;;  %v12331_v9 = vld [vmem:[#allocation30_spill] sm:$0xff] }
 0x1ed   : >> { %v3359_v4 = vmul.f32 %v10549_v22, %v3337_v39  ;;  %v3335_v30 = vadd.f32 %v3272_v60, %v3014_v17  ;;  %v2377_v60 = vadd.f32 %v12330_v43, %v2056_v14  ;;  %v2062_v40 = vadd.f32 %v12331_v9, %v10445_v7  ;;  %v12335_v43 = vld [vmem:[#allocation35_spill] sm:$0xff] }
 0x1ee   : >> { %v8069_v44 = vpop.f32.mrf.mxu0  ;;  %v3020_v14 = vadd.f32 %v10366_v28, %v2795_v37  ;;  %v2794_v7 = vadd.f32 %v10379_v32, %v2374_v2  ;;  %v2799_v28 = vadd.f32 %v10387_v19, %v2379_v11  ;;  %v2378_v9 = vadd.f32 %v12335_v43, %v2057_v18 }
 0x1ef   : >> { %v3381_v33 = vadd.f32 %v10573_v13, %v3359_v4  ;;  %v3357_v17 = vmul.f32 %v10549_v22, %v3335_v30  ;;  %v3338_v39 = vadd.f32 %v8069_v44, %v3017_v46  ;;  %v2380_v44 = vadd.f32 %v12333_v29, %v2059_v48 }
 0x1f0   : >> { %v3275_v61 = vpop.f32.mrf.mxu0  ;;  %v3018_v46 = vadd.f32 %v10393_v25, %v2793_v56  ;;  %v3021_v48 = vadd.f32 %v10435_v50, %v2796_v20  ;;  %v3019_v19 = vadd.f32 %v10480_v63, %v2794_v7  ;;  %v8048_v20 = vpop.f32.mrf.mxu1  ;;  %v3024_v18 = vadd.f32 %v10521_v26, %v2799_v28 }
 0x1f1   : >> { %v3397_v21 = vmax.f32 %v3381_v33, 0.0  ;;  %v3379_v27 = vadd.f32 %v10573_v13, %v3357_v17  ;;  %v3360_v55 = vmul.f32 %v10549_v22, %v3338_v39  ;;  %v3336_v4 = vadd.f32 %v3275_v61, %v3015_v15  ;;  %v12334_v17 = vld [vmem:[#allocation34_spill] sm:$0xff] }
 0x1f2   : >> { %v8072_v30 = vpop.f32.mrf.mxu0  ;;  %v10606_v15 = vadd.f32 %v12334_v17, %v10458_v3  ;;  %v12336_v3 = vld [vmem:[#allocation36_spill] sm:$0xff]  ;;  %v2800_v29 = vadd.f32 %v10429_v0, %v2380_v44  ;;  %v2999_v17 = vpop.f32.mrf.mxu1 }
 0x1f3   : >> { %v7458_v10 = vpack.c.bf16 %v3397_v21, %v3397_v21  ;;  %v3395_v36 = vmax.f32 %v3379_v27, 0.0  ;;  %v3382_v23 = vadd.f32 %v10573_v13, %v3360_v55  ;;  %v3358_v33 = vmul.f32 %v10549_v22, %v3336_v4 }
 0x1f4   : >> { %v3341_v37 = vadd.f32 %v8072_v30, %v3020_v14  ;;  %v3288_v25 = vpop.f32.mrf.mxu0  ;;  %v2061_v50 = vadd.f32 %v12336_v3, %v10473_v52  ;;  %v2797_v4 = vadd.f32 %v10408_v42, %v2377_v60  ;;  %v2798_v42 = vadd.f32 %v10453_v58, %v2378_v9 }
 0x1f5   : >> { %7120 = vst [vmem:[%s10611_s29 + $0x24] sm:$0xf] %v7458_v10  ;;  %v7456_v32 = vpack.c.bf16 %v3395_v36, %v3395_v36  ;;  %v3398_v2 = vmax.f32 %v3382_v23, 0.0  ;;  %v3380_v56 = vadd.f32 %v10573_v13, %v3358_v33  ;;  %v3339_v39 = vadd.f32 %v3288_v25, %v3018_v46  ;;  %v12337_v10 = vld [vmem:[#allocation37_spill] sm:$0xff]  ;;  %v12338_v23 = vld [vmem:[#allocation38_spill] sm:$0xff] }
 0x1f6   : >> { %v3363_v11 = vmul.f32 %v10549_v22, %v3341_v37  ;;  %v8073_v41 = vpop.f32.mrf.mxu0  ;;  %v2383_v36 = vadd.f32 %v12337_v10, %v2062_v40  ;;  %v2381_v33 = vadd.f32 %v12338_v23, %v2060_v16  ;;  %v3022_v37 = vadd.f32 %v10561_v57, %v2797_v4 }
 0x1f7   : >> { %7118 = vst [vmem:[%s10611_s29 + $0x14] sm:$0xf] %v7456_v32  ;;  %v7459_v61 = vpack.c.bf16 %v3398_v2, %v3398_v2  ;;  %v3396_v21 = vmax.f32 %v3380_v56, 0.0  ;;  %v3361_v27 = vmul.f32 %v10549_v22, %v3339_v39  ;;  %v3342_v55 = vadd.f32 %v8073_v41, %v3021_v48 }
 0x1f8   : >> { %v3385_v52 = vadd.f32 %v10573_v13, %v3363_v11  ;;  %v3291_v63 = vpop.f32.mrf.mxu0  ;;  %v3025_v40 = vadd.f32 %v10586_v53, %v2800_v29  ;;  %v2803_v16 = vadd.f32 %v10478_v31, %v2383_v36  ;;  %v3023_v43 = vadd.f32 %v2986_v45, %v2798_v42  ;;  %v8049_v11 = vpop.f32.mrf.mxu1  ;;  %v12341_v45 = vld [vmem:[#allocation41_spill] sm:$0xff] }
 0x1f9   : >> { %7121 = vst [vmem:[%s10611_s29 + $0x28] sm:$0xf] %v7459_v61  ;;  %v7457_v14 = vpack.c.bf16 %v3396_v21, %v3396_v21  ;;  %v3383_v46 = vadd.f32 %v10573_v13, %v3361_v27  ;;  %v3364_v7 = vmul.f32 %v10549_v22, %v3342_v55  ;;  %v3340_v30 = vadd.f32 %v3291_v63, %v3019_v19  ;;  %v12340_v27 = vld [vmem:[#allocation39_spill] sm:$0xff] }
 0x1fa   : >> { %v3401_v60 = vmax.f32 %v3385_v52, 0.0  ;;  %v8076_v26 = vpop.f32.mrf.mxu0  ;;  %v2801_v9 = vadd.f32 %v10492_v1, %v2381_v33  ;;  %v12339_v19 = vshrl.u32 %v10470_v38, 16  ;;  %v2384_v55 = vadd.f32 %v12340_v27, %v10606_v15 }
 0x1fb   : >> { %7119 = vst [vmem:[%s10611_s29 + $0x18] sm:$0xf] %v7457_v14  ;;  %v3399_v0 = vmax.f32 %v3383_v46, 0.0  ;;  %v3386_v44 = vadd.f32 %v10573_v13, %v3364_v7  ;;  %v3362_v48 = vmul.f32 %v10549_v22, %v3340_v30  ;;  %v3345_v28 = vadd.f32 %v8076_v26, %v3024_v18 }
 0x1fc   : >> { %v7462_v25 = vpack.c.bf16 %v3401_v60, %v3401_v60  ;;  %v3304_v58 = vpop.f32.mrf.mxu0  ;;  %v3657_v53 = vrot.slane %v12339_v19, 7  ;;  %v2382_v1 = vadd.f32 %v12341_v45, %v2061_v50  ;;  %v3028_v4 = vadd.f32 %v8048_v20, %v2803_v16  ;;  %v3002_v20 = vpop.f32.mrf.mxu1 }
 0x1fd   : >> { %v7460_v32 = vpack.c.bf16 %v3399_v0, %v3399_v0  ;;  %v3402_v2 = vmax.f32 %v3386_v44, 0.0  ;;  %v3384_v56 = vadd.f32 %v10573_v13, %v3362_v48  ;;  %v3367_v39 = vmul.f32 %v10549_v22, %v3345_v28 }
 0x1fe   : >> { %7124 = vst [vmem:[%s10611_s29 + $0x44] sm:$0xf] %v7462_v25  ;;  %v3343_v3 = vadd.f32 %v3304_v58, %v3022_v37  ;;  %v8077_v57 = vpop.f32.mrf.mxu0  ;;  %v2804_v7 = vadd.f32 %v10513_v47, %v2384_v55  ;;  %v3026_v30 = vadd.f32 %v2999_v17, %v2801_v9  ;;  %v2802_v15 = vadd.f32 %v10531_v54, %v2382_v1 }
 0x1ff   : >> { %7122 = vst [vmem:[%s10611_s29 + $0x34] sm:$0xf] %v7460_v32  ;;  %v7463_v31 = vpack.c.bf16 %v3402_v2, %v3402_v2  ;;  %v3400_v41 = vmax.f32 %v3384_v56, 0.0  ;;  %v3389_v61 = vadd.f32 %v10573_v13, %v3367_v39  ;;  %v3346_v21 = vadd.f32 %v8077_v57, %v3025_v40 }
 0x200   : >> { %v3365_v18 = vmul.f32 %v10549_v22, %v3343_v3  ;;  %v3307_v29 = vpop.f32.mrf.mxu0  ;;  %v12342_v17 = vshll.u32 %v10467_v6, 16  ;;  %v3653_v0 = vrot.slane %v10555_v24, 4  ;;  %v12198_v44 = vshll.u32 %v10470_v38, 16 }
 0x201   : >> { %7125 = vst [vmem:[%s10611_s29 + $0x48] sm:$0xf] %v7463_v31  ;;  %v7461_v52 = vpack.c.bf16 %v3400_v41, %v3400_v41  ;;  %v3405_v63 = vmax.f32 %v3389_v61, 0.0  ;;  %v3368_v14 = vmul.f32 %v10549_v22, %v3346_v21  ;;  %v3344_v46 = vadd.f32 %v3307_v29, %v3023_v43 }
 0x202   : >> { %v3387_v10 = vadd.f32 %v10573_v13, %v3365_v18  ;;  %v8080_v50 = vpop.f32.mrf.mxu0  ;;  %v10664_v54 = vor.u32 %v12342_v17, %v10555_v24  ;;  %v3029_v25 = vadd.f32 %v8049_v11, %v2804_v7  ;;  %v3027_v58 = vadd.f32 %v3002_v20, %v2802_v15 }
 0x203   : >> { %7123 = vst [vmem:[%s10611_s29 + $0x38] sm:$0xf] %v7461_v52  ;;  %v7466_v36 = vpack.c.bf16 %v3405_v63, %v3405_v63  ;;  %v3390_v23 = vadd.f32 %v10573_v13, %v3368_v14  ;;  %v3366_v33 = vmul.f32 %v10549_v22, %v3344_v46  ;;  %v3349_v42 = vadd.f32 %v8080_v50, %v3028_v4 }
 0x204   : >> { %v3403_v26 = vmax.f32 %v3387_v10, 0.0  ;;  %v3320_v47 = vpop.f32.mrf.mxu0  ;;  %v3660_v31 = vor.u32 %v12198_v44, %v3657_v53  ;;  %v12343_v61 = vshrl.u32 %v10506_v34, 16  ;;  %v12197_v18 = vshll.u32 %v10506_v34, 16 }
 0x205   : >> { %v3406_v48 = vmax.f32 %v3390_v23, 0.0  ;;  %v3388_v28 = vadd.f32 %v10573_v13, %v3366_v33  ;;  %v3371_v37 = vmul.f32 %v10549_v22, %v3349_v42  ;;  %v3347_v40 = vadd.f32 %v3320_v47, %v3026_v30 }
 0x206   : >> { %v7464_v32 = vpack.c.bf16 %v3403_v26, %v3403_v26  ;;  %v8081_v2 = vpop.f32.mrf.mxu0  ;;  %v3670_v21 = vrot.slane %v12343_v61, 7  ;;  %v12344_v53 = vshrl.u32 %v10509_v51, 16  ;;  %v12196_v52 = vshll.u32 %v10509_v51, 16 }
 0x207   : >> { %v7467_v39 = vpack.c.bf16 %v3406_v48, %v3406_v48  ;;  %v3404_v43 = vmax.f32 %v3388_v28, 0.0  ;;  %v3393_v9 = vadd.f32 %v10573_v13, %v3371_v37  ;;  %v3369_v3 = vmul.f32 %v10549_v22, %v3347_v40 }
 0x208   : >> { %v3350_v57 = vadd.f32 %v8081_v2, %v3029_v25  ;;  %v3323_v19 = vpop.f32.mrf.mxu0  ;;  %v3679_v29 = vrot.slane %v12344_v53, 7  ;;  %v12345_v50 = vshrl.u32 %v10260_v8, 16  ;;  %v12348_v47 = vshrl.u32 %v10263_v12, 16 }
 0x209   : >> { %v7465_v27 = vpack.c.bf16 %v3404_v43, %v3404_v43  ;;  %v3409_v55 = vmax.f32 %v3393_v9, 0.0  ;;  %v3391_v45 = vadd.f32 %v10573_v13, %v3369_v3  ;;  %v3348_v1 = vadd.f32 %v3323_v19, %v3027_v58 }
 0x20a   : >> { %v10659_v60 = vld [vmem:[%s9085_s20 + $0xf4] sm:$0xf]  ;;  %v3372_v4 = vmul.f32 %v10549_v22, %v3350_v57  ;;  %v4122_v20 = vrot.slane %v12345_v50, 4  ;;  %v4128_v17 = vrot.slane %v12348_v47, 4  ;;  %v3673_v28 = vor.u32 %v12197_v18, %v3670_v21 }
 0x20b   : >> { %7128 = vst [vmem:[%s10611_s29 + $0x64] sm:$0xf] %v7466_v36  ;;  %v12195_v56 = vshrl.u32 %v10659_v60, 16  ;;  %v7470_v63 = vpack.c.bf16 %v3409_v55, %v3409_v55  ;;  %v3407_v14 = vmax.f32 %v3391_v45, 0.0  ;;  %v3370_v46 = vmul.f32 %v10549_v22, %v3348_v1  ;;  %v12350_v45 = vld [vmem:[#allocation17_spill] sm:$0xff] }
 0x20c   : >> { %v3394_v30 = vadd.f32 %v10573_v13, %v3372_v4  ;;  %v12346_v36 = vshll.u32 %v10260_v8, 16  ;;  %v12347_v22 = vshll.u32 %v10263_v12, 16  ;;  %v3675_v37 = vrot.slane %v3670_v21, 4 }
 0x20d   : >> { %v7468_v33 = vpack.c.bf16 %v3407_v14, %v3407_v14  ;;  %v3392_v42 = vadd.f32 %v10573_v13, %v3370_v46  ;;  %v3682_v40 = vor.u32 %v12196_v52, %v3679_v29  ;;  %v3692_v58 = vrot.slane %v12195_v56, 7  ;;  %v12362_v52 = vld [vmem:[#allocation14_spill] sm:$0xff] }
 0x20e   : >> { %v4123_v23 = vrot.slane %v12346_v36, 5  ;;  %v10703_v26 = vrot.slane %v12347_v22, 5  ;;  %v3410_v48 = vmax.f32 %v3394_v30, 0.0  ;;  %v3630_v19 = vsel %vm9103_vm2, %v10517_v59, %v10526_v5 }
 0x20f   : >> { %v3408_v13 = vmax.f32 %v3392_v42, 0.0  ;;  %v3652_v1 = vsel %vm9103_vm2, %v12350_v45, %v10664_v54  ;;  %v3661_v5 = vsel %vm9103_vm2, %v3653_v0, %v3660_v31  ;;  %v3697_v0 = vrot.slane %v3692_v58, 4  ;;  %v8589_v45 = vld [vmem:[%s9067_s16 + $0xb0] sm:$0xff]  }
 0x210   : >> { %v4124_v3 = vor.u32 %v4123_v23, %v4122_v20  ;;  %v10780_v23 = vcombine.low %v3652_v1, %v3661_v5  ;;  %v12355_v5 = vld [vmem:[#allocation45_spill] sm:$0xff] }
 0x211   : >> { %v7469_v57 = vpack.c.bf16 %v3408_v13, %v3408_v13 }
 0x212   : >> { %v7159_v16 = vld [vmem:[%s9085_s20 + $0xe0] sm:$0xf]  ;;  %v10762_v29 = vrot.slane %v4124_v3, 4 }
 0x213   : >> { %7126 = vst [vmem:[%s10611_s29 + $0x54] sm:$0xf] %v7464_v32  ;;  %v3663_v41 = vshrl.u32 %v7159_v16, 16  ;;  %v12194_v32 = vshll.u32 %v10659_v60, 16 }
 0x215   : >> { %v7173_v15 = vrot.slane %v3663_v41, 11  ;;  %v4129_v41 = vor.u32 %v4128_v17, %v10703_v26  ;;  %v10752_v53 = vor.u32 %v12194_v32, %v3692_v58 }
 0x217   : >> { %v3674_v4 = vsel %vm9103_vm2, %v7173_v15, %v3673_v28  ;;  %v10767_v30 = vrot.slane %v4129_v41, 4 }
 0x21a   : >> { %v10679_v11 = vld [vmem:[%s9085_s20 + $0xf8] sm:$0xf] }
 0x21b   : >> { %7129 = vst [vmem:[%s10611_s29 + $0x68] sm:$0xf] %v7467_v39  ;;  %7127 = vst [vmem:[%s10611_s29 + $0x58] sm:$0xf] %v7465_v27  ;;  %v12192_v7 = vshrl.u32 %v10679_v11, 16  ;;  %v7471_v39 = vpack.c.bf16 %v3410_v48, %v3410_v48  ;;  %v12193_v9 = vshll.u32 %v10679_v11, 16 }
 0x21c   : >> { %v12349_v27 = vrot.slane %v10488_v35, 4  ;;  %v3683_v35 = vsel %vm9103_vm2, %v3675_v37, %v3682_v40 }
 0x21d   : >> { %v3701_v43 = vrot.slane %v12192_v7, 7 }
 0x21e   : >> { %v3639_v55 = vsel %vm9103_vm2, %v12349_v27, %v10535_v62 }
 0x21f   : >> { %v3704_v31 = vor.u32 %v12193_v9, %v3701_v43  ;;  %v12359_v9 = vld [vmem:[#allocation50_spill] sm:$0xff] }
 0x220   : >> { %v12360_v32 = vshrl.u32 %v12359_v9, 16 }
 0x221   : >> { %v10793_v17 = vsel %vm9103_vm2, %v3697_v0, %v3704_v31  ;;  %v12357_v0 = vshrl.u32 %v12355_v5, 16 }
 0x222   : >> { %v7163_v10 = vld [vmem:[%s9085_s20 + $0xf0] sm:$0xf]  ;;  %v4150_v56 = vrot.slane %v12360_v32, 4 }
 0x223   : >> { %7132 = vst [vmem:[%s10611_s29 + $0x84] sm:$0xf] %v7470_v63  ;;  %v3685_v25 = vshrl.u32 %v7163_v10, 16  ;;  %v10771_v10 = vcombine.low %v3630_v19, %v3639_v55  ;;  %v4142_v31 = vrot.slane %v12357_v0, 4 }
 0x225   : >> { %v10748_v62 = vrot.slane %v3685_v25, 11 }
 0x22a   : >> { %v7142_v16 = vld [vmem:[%s9085_s20 + $0x9c] sm:$0xf] }
 0x22b   : >> { %7130 = vst [vmem:[%s10611_s29 + $0x74] sm:$0xf] %v7468_v33  ;;  %v4132_v61 = vshll.u32 %v7142_v16, 16  ;;  %v10782_v33 = vcombine.low %v3674_v4, %v3683_v35  ;;  %v12356_v4 = vshll.u32 %v12355_v5, 16 }
 0x22d   : >> { %v10769_v15 = vrot.slane %v4132_v61, 5  ;;  %v10834_v35 = vrot.slane %v12356_v4, 5  ;;  %v12358_v4 = vcombine.low %v10260_v8, %v10263_v12  ;;  %v12364_v8 = vld [vmem:[#allocation51_spill] sm:$0xff] }
 0x22e   : >> { %v12365_v12 = vshll.u32 %v12364_v8, 16 }
 0x232   : >> { %v10717_v2 = vld [vmem:[%s9085_s20 + $0x94] sm:$0xf]  ;;  %v7224_v21 = vld [vmem:[%s9085_s20 + $0x90] sm:$0xf] }
 0x233   : >> { %7133 = vst [vmem:[%s10611_s29 + $0x88] sm:$0xf] %v7471_v39  ;;  %v12190_v59 = vshrl.u32 %v10717_v2, 16  ;;  %7131 = vst [vmem:[%s10611_s29 + $0x78] sm:$0xf] %v7469_v57  ;;  %v4465_v63 = vshrl.u32 %v7224_v21, 16 }
 0x234   : >> { %v12189_v36 = vshll.u32 %v10717_v2, 16  ;;  %v12352_v39 = vld [vmem:[#allocation44_spill] sm:$0xff] }
 0x235   : >> { %v10777_v20 = vrot.slane %v12190_v59, 7  ;;  %v10799_v37 = vrot.slane %v4465_v63, 11  ;;  %v12353_v43 = vshrl.u32 %v12352_v39, 16  ;;  %v12354_v57 = vshll.u32 %v12352_v39, 16 }
 0x236   : >> { %v12363_v44 = vcombine.low %v12352_v39, %v12355_v5 }
 0x237   : >> { %v4136_v3 = vrot.slane %v12353_v43, 4  ;;  %v4137_v19 = vrot.slane %v12354_v57, 5  ;;  %v10826_v27 = vor.u32 %v12189_v36, %v10777_v20 }
 0x239   : >> { %v4138_v7 = vor.u32 %v4137_v19, %v4136_v3  ;;  %v10857_v3 = vrot.slane %v12365_v12, 5  ;;  %v12366_v19 = vshrl.u32 %v12364_v8, 16 }
 0x23a   : >> { %v10755_v54 = vld [vmem:[%s9085_s20 + $0x98] sm:$0xf]  ;;  %v10758_v24 = vld [vmem:[%s9085_s20 + $0x84] sm:$0xf]  ;;  %v10805_v16 = vld [vmem:[%s9085_s20 + $0xa8] sm:$0xf] }
 0x23b   : >> { %v3536_v14 = vshrl.u32 %v10758_v24, 16  ;;  %v12191_v22 = vshrl.u32 %v10755_v54, 16  ;;  %v10802_v40 = vld [vmem:[%s9085_s20 + $0xa4] sm:$0xf]  ;;  %v10808_v13 = vld [vmem:[%s9085_s20 + $0x88] sm:$0xf] }
 0x23c   : >> { %v12202_v58 = vshll.u32 %v10755_v54, 16  ;;  %v12201_v41 = vshll.u32 %v10758_v24, 16  ;;  %v3545_v61 = vshrl.u32 %v10808_v13, 16  ;;  %v7175_v21 = vcombine.low %v10758_v24, %v10808_v13  ;;  %v7146_v55 = vld [vmem:[%s9085_s20 + $0xac] sm:$0xf] }
 0x23d   : >> { %v3538_v47 = vrot.slane %v3536_v14, 7  ;;  %v4481_v1 = vrot.slane %v12191_v22, 7  ;;  %v12199_v63 = vshrl.u32 %v10802_v40, 16  ;;  %v3548_v57 = vshll.u32 %v10808_v13, 16  ;;  %v7228_v59 = vld [vmem:[%s9085_s20 + $0xa0] sm:$0xf] }
 0x23e   : >> { %v3547_v43 = vrot.slane %v3545_v61, 7  ;;  %8098 = vmatprep.mubr.bf16.mxu1 %v7175_v21  ;;  %v12200_v22 = vshrl.u32 %v10805_v16, 16  ;;  %v4146_v0 = vshll.u32 %v7146_v55, 16  ;;  %v12361_v13 = vshll.u32 %v12359_v9, 16  ;;  %v10862_v32 = vld [vmem:[%s9085_s20 + $0xb4] sm:$0xf] }
 0x23f   : >> { %v3541_v36 = vor.u32 %v12201_v41, %v3538_v47  ;;  %8099 = vmatmul.mubr.bf16.vlgmr.msra.gmra.mxu1 %v12358_v4  ;;  %v3543_v18 = vrot.slane %v3538_v47, 4  ;;  %v4156_v55 = vrot.slane %v12366_v19, 4  ;;  %v8593_v4 = vld [vmem:[%s9067_s16 + $0xa8] sm:$0xff]   ;;  %v4487_v47 = vshrl.u32 %v7228_v59, 16  ;;  %v7150_v5 = vld [vmem:[%s9085_s20 + $0xbc] sm:$0xf] }
 0x240   : >> { %v4151_v21 = vrot.slane %v12361_v13, 5  ;;  %8147 = vmatpush3.bf16.msra.mxu1 %v12362_v52  ;;  %v3550_v50 = vor.u32 %v3548_v57, %v3547_v43  ;;  %8102 = vmatprep.mubr.bf16.mxu1 %v12363_v44  ;;  %v4143_v52 = vor.u32 %v4142_v31, %v10834_v35  ;;  %v4494_v39 = vrot.slane %v12199_v63, 7  ;;  %v12367_v43 = vld [vmem:[#allocation53_spill] sm:$0xff]  ;;  %v7232_v25 = vld [vmem:[%s9085_s20 + $0xb0] sm:$0xf]  ;;  %v8595_v41 = vld [vmem:[%s9067_s16 + $0xa0] sm:$0xff]  }
 0x241   : >> { %8148 = vmatprep.subr.bf16.mxu1 %v8589_v45  ;;  %v4495_v44 = vshll.u32 %v10802_v40, 16  ;;  %v3542_v13 = vsel %vm9103_vm2, %v12367_v43, %v3541_v36  ;;  %v4503_v19 = vrot.slane %v12200_v22, 7  ;;  %v4504_v31 = vshll.u32 %v10805_v16, 16  ;;  %v10879_v59 = vld [vmem:[%s9085_s20 + $0xb8] sm:$0xf]  ;;  %v8594_v43 = vld [vmem:[%s9067_s16 + $0xf0] sm:$0xff]  }
 0x242   : >> { %v3551_v12 = vsel %vm9103_vm2, %v3543_v18, %v3550_v50  ;;  %v4477_v63 = vrot.slane %v10777_v20, 4  ;;  %v4484_v28 = vor.u32 %v12202_v58, %v4481_v1  ;;  %v12203_v36 = vshrl.u32 %v10862_v32, 16  ;;  %v12368_v58 = vld [vmem:[#allocation56_spill] sm:$0xff] }
 0x243   : >> { %v7191_v46 = vcombine.low %v3542_v13, %v3551_v12  ;;  %v10887_v18 = vrot.slane %v4138_v7, 4  ;;  %v4152_v50 = vor.u32 %v4151_v21, %v4150_v56  ;;  %v4157_v22 = vor.u32 %v4156_v55, %v10857_v3 }
 0x244   : >> { %8149 = vmatpush3.bf16.msra.mxu1 %v8589_v45  ;;  %v4160_v42 = vshll.u32 %v7150_v5, 16  ;;  %v4144_v13 = vrot.slane %v4143_v52, 4  ;;  %v4148_v12 = vrot.slane %v4146_v0, 5  ;;  %v7257_v20 = vrot.slane %v4487_v47, 11  ;;  %v12370_v0 = vld [vmem:[#allocation15_spill] sm:$0xff] }
 0x245   : >> { %8130 = vmatprep.mubr.bf16.mxu0 %v7191_v46  ;;  %8150 = vmatprep.subr.bf16.mxu1 %v8593_v4  ;;  %v12205_v1 = vshrl.u32 %v10879_v59, 16  ;;  %v4497_v45 = vor.u32 %v4495_v44, %v4494_v39  ;;  %v4499_v7 = vrot.slane %v4494_v39, 4  ;;  %v4506_v56 = vor.u32 %v4504_v31, %v4503_v19  ;;  %v8597_v39 = vld [vmem:[%s9067_s16 + $0xe8] sm:$0xff]  }
 0x246   : >> { %8131 = vmatmul.mubr.bf16.vlgmr.msra.gmra.mxu0 %v12368_v58  ;;  %v4509_v21 = vshrl.u32 %v7232_v25, 16  ;;  %v4114_v55 = vrot.slane %v3545_v61, 4  ;;  %v12369_v46 = vcombine.low %v12359_v9, %v12364_v8  ;;  %v10901_v52 = vrot.slane %v3548_v57, 5 }
 0x247   : >> { %8179 = vmatpush3.bf16.msra.mxu0 %v12370_v0  ;;  %v10905_v58 = vrot.slane %v12203_v36, 7  ;;  %v4517_v47 = vshll.u32 %v10862_v32, 16  ;;  %v4476_v9 = vsel %vm9103_vm2, %v10799_v37, %v10826_v27  ;;  %v4153_v25 = vrot.slane %v4152_v50, 4  ;;  %v12373_v37 = vld [vmem:[#allocation54_spill] sm:$0xff]  ;;  %v12374_v27 = vld [vmem:[#allocation57_spill] sm:$0xff] }
 0x248   : >> { %8103 = vmatmul.mubr.bf16.gmra.mxu1 %v12369_v46  ;;  %8180 = vmatprep.subr.bf16.mxu0 %v8594_v43  ;;  %v4158_v61 = vrot.slane %v4157_v22, 4  ;;  %v4162_v8 = vrot.slane %v4160_v42, 5  ;;  %v4108_v57 = vrot.slane %v3536_v14, 4  ;;  %v12371_v5 = vshll.u32 %v10758_v24, 16  ;;  %v12372_v46 = vld [vmem:[#allocation58_spill] sm:$0xff] }
 0x249   : >> { %8151 = vmatpush3.bf16.msra.mxu1 %v8593_v4  ;;  %8134 = vmatprep.mubr.bf16.mxu0 %v12372_v46  ;;  %v8599_v4 = vld [vmem:[%s9067_s16 + $0x98] sm:$0xff]   ;;  %v4525_v0 = vrot.slane %v12205_v1, 7  ;;  %v12206_v36 = vshll.u32 %v10879_v59, 16  ;;  %v12375_v22 = vcombine.low %v12373_v37, %v12374_v27  ;;  %v4485_v14 = vsel %vm9103_vm2, %v4477_v63, %v4484_v28  ;;  %v8600_v63 = vld [vmem:[%s9067_s16 + $0xe0] sm:$0xff]  }
 0x24a   : >> { %v4109_v19 = vrot.slane %v12371_v5, 5  ;;  %8152 = vmatprep.subr.bf16.mxu1 %v8595_v41  ;;  %v4141_v24 = vsel %vm9286_vm5, %v10887_v18, %v10834_v35  ;;  %v4149_v42 = vsel %vm9286_vm5, %v4144_v13, %v4148_v12  ;;  %v4498_v50 = vsel %vm9103_vm2, %v7257_v20, %v4497_v45 }
 0x24b   : >> { %8106 = vmatprep.mubr.bf16.mxu1 %v12375_v22  ;;  %8181 = vmatpush3.bf16.msra.mxu0 %v8594_v43  ;;  %v4115_v5 = vor.u32 %v4114_v55, %v10901_v52  ;;  %v4507_v46 = vsel %vm9103_vm2, %v4499_v7, %v4506_v56  ;;  %v10938_v28 = vrot.slane %v4509_v21, 11  ;;  %v10943_v35 = vor.u32 %v4517_v47, %v10905_v58  ;;  %v8601_v7 = vld [vmem:[%s9067_s16 + $0x90] sm:$0xff]   ;;  %v11009_v22 = vld [vmem:[%s9085_s20 + $0xc0] sm:$0xf] }
 0x24c   : >> { %8182 = vmatprep.subr.bf16.mxu0 %v8597_v39  ;;  %v4155_v43 = vsel %vm9286_vm5, %v4153_v25, %v10857_v3  ;;  %v4163_v18 = vsel %vm9286_vm5, %v4158_v61, %v4162_v8  ;;  %v12376_v13 = vshrl.u32 %v12373_v37, 16  ;;  %v12377_v20 = vshll.u32 %v12373_v37, 16  ;;  %v10968_v25 = vld [vmem:[%s9085_s20 + $0xc4] sm:$0xf]  ;;  %v12379_v61 = vld [vmem:[#allocation16_spill] sm:$0xff] }
 0x24d   : >> { %8153 = vmatpush3.bf16.msra.mxu1 %v8595_v41  ;;  %v4110_v41 = vor.u32 %v4109_v19, %v4108_v57  ;;  %v12378_v3 = vsel %vm9103_vm2, %v10748_v62, %v10752_v53  ;;  %v4521_v21 = vrot.slane %v10905_v58, 4  ;;  %v4528_v55 = vor.u32 %v12206_v36, %v4525_v0  ;;  %v10992_v0 = vld [vmem:[%s9085_s20 + $0xcc] sm:$0xf]  ;;  %v10995_v37 = vld [vmem:[%s9085_s20 + $0xc8] sm:$0xf] }
 0x24e   : >> { %v4164_v12 = vrot.slane %v12376_v13, 4  ;;  %v4165_v45 = vrot.slane %v12377_v20, 5  ;;  %8154 = vmatprep.subr.bf16.mxu1 %v8599_v4  ;;  %v10962_v56 = vcombine.low %v12378_v3, %v10793_v17  ;;  %8135 = vmatmul.mubr.bf16.gmra.mxu0 %v12379_v61  ;;  %v12380_v8 = vsel %vm9286_vm5, %v10767_v30, %v10769_v15  ;;  %v7158_v3 = vld [vmem:[%s9085_s20 + $0xdc] sm:$0xf] }
 0x24f   : >> { %v12381_v62 = vsel %vm9286_vm5, %v10762_v29, %v10703_v26  ;;  %v10983_v17 = vcombine.low %v4476_v9, %v4485_v14  ;;  %v10985_v58 = vcombine.low %v4141_v24, %v4149_v42  ;;  %v12382_v57 = vshrl.u32 %v10802_v40, 16  ;;  %8183 = vmatpush3.bf16.msra.mxu0 %v8597_v39  ;;  %v11012_v14 = vld [vmem:[%s9085_s20 + $0xd4] sm:$0xf]  ;;  %v8603_v24 = vld [vmem:[%s9067_s16 + $0xd8] sm:$0xff]   ;;  %8138 = vmatprep.mubr.bf16.mxu0 %v10771_v10 }
 0x250   : >> { %v10981_v53 = vcombine.low %v12381_v62, %v12380_v8  ;;  %v12383_v30 = vcombine.low %v10467_v6, %v10470_v38  ;;  %v4116_v26 = vrot.slane %v4115_v5, 4  ;;  %v11000_v29 = vcombine.low %v4498_v50, %v4507_v46  ;;  %8184 = vmatprep.subr.bf16.mxu0 %v8600_v63 }
 0x251   : >> { %v10989_v19 = vrot.slane %v12382_v57, 4  ;;  %v11002_v15 = vcombine.low %v4155_v43, %v4163_v18  ;;  %v4520_v9 = vsel %vm9103_vm2, %v10938_v28, %v10943_v35  ;;  %8155 = vmatpush3.bf16.msra.mxu1 %v8599_v4  ;;  %v4166_v39 = vor.u32 %v4165_v45, %v4164_v12  ;;  %v11023_v18 = vld [vmem:[%s9085_s20 + $0xd8] sm:$0xf]  ;;  %v8605_v4 = vld [vmem:[%s9067_s16 + $0x88] sm:$0xff]   ;;  %v8614_v28 = vld [vmem:[%s9067_s16 + $0x170] sm:$0xff]  }
 0x252   : >> { %8107 = vmatmul.mubr.bf16.gmra.mxu1 %v12383_v30  ;;  %v12384_v42 = vshll.u32 %v12374_v27, 16  ;;  %v12385_v5 = vshrl.u32 %v12374_v27, 16  ;;  %v12204_v43 = vshrl.u32 %v10968_v25, 16  ;;  %8156 = vmatprep.subr.bf16.mxu1 %v8601_v7  ;;  %v4111_v13 = vrot.slane %v4110_v41, 4 }
 0x253   : >> { %v11029_v12 = vsel %vm9103_vm2, %v4521_v21, %v4528_v55  ;;  %v4174_v20 = vshll.u32 %v10992_v0, 16  ;;  %v12209_v45 = vshrl.u32 %v10995_v37, 16  ;;  %v12386_v27 = vcombine.low %v10506_v34, %v10509_v51  ;;  %8185 = vmatpush3.bf16.msra.mxu0 %v8600_v63  ;;  %v12391_v0 = vld [vmem:[#allocation55_spill] sm:$0xff] }
 0x254   : >> { %v11017_v50 = vrot.slane %v12384_v42, 5  ;;  %v4170_v46 = vrot.slane %v12385_v5, 4  ;;  %v12387_v61 = vshrl.u32 %v10467_v6, 16  ;;  %v12388_v10 = vshll.u32 %v10467_v6, 16  ;;  %v7240_v5 = vld [vmem:[%s9085_s20 + $0xd0] sm:$0xf]  ;;  %8186 = vmatprep.subr.bf16.mxu0 %v8603_v24 }
 0x255   : >> { %8110 = vmatprep.mubr.bf16.mxu1 %v12386_v27  ;;  %v12389_v41 = vshll.u32 %v10470_v38, 16  ;;  %v12390_v21 = vshrl.u32 %v10470_v38, 16  ;;  %v4121_v30 = vsel %vm9286_vm5, %v4116_v26, %v12391_v0  ;;  %v4531_v42 = vshrl.u32 %v11009_v22, 16  ;;  %8157 = vmatpush3.bf16.msra.mxu1 %v8601_v7  ;;  %v8606_v22 = vld [vmem:[%s9067_s16 + $0xd0] sm:$0xff]  }
 0x256   : >> { %v4178_v8 = vrot.slane %v12387_v61, 4  ;;  %v4179_v62 = vrot.slane %v12388_v10, 5  ;;  %v12208_v6 = vshrl.u32 %v11012_v14, 16  ;;  %v12207_v27 = vshrl.u32 %v11023_v18, 16  ;;  %8158 = vmatprep.subr.bf16.mxu1 %v8605_v4  ;;  %8139 = vmatmul.mubr.bf16.gmra.mxu0 %v10780_v23 }
 0x257   : >> { %v11043_v57 = vrot.slane %v12389_v41, 5  ;;  %v4184_v55 = vrot.slane %v12390_v21, 4  ;;  %v11054_v61 = vrot.slane %v4166_v39, 4  ;;  %v4171_v38 = vor.u32 %v4170_v46, %v11017_v50  ;;  %v8607_v41 = vld [vmem:[%s9067_s16 + $0x80] sm:$0xff]   ;;  %8187 = vmatpush3.bf16.msra.mxu0 %v8603_v24  ;;  %8142 = vmatprep.mubr.bf16.mxu0 %v10782_v33 }
 0x258   : >> { %v11059_v63 = vrot.slane %v12204_v43, 7  ;;  %v4539_v10 = vshll.u32 %v10968_v25, 16  ;;  %v4113_v26 = vsel %vm9286_vm5, %v4111_v13, %v10901_v52  ;;  %v4547_v7 = vrot.slane %v12209_v45, 7  ;;  %8188 = vmatprep.subr.bf16.mxu0 %v8606_v22 }
 0x259   : >> { %v4548_v39 = vshll.u32 %v10995_v37, 16  ;;  %v4188_v46 = vshll.u32 %v7158_v3, 16  ;;  %v7207_v21 = vcombine.low %v4113_v26, %v4121_v30  ;;  %v4180_v0 = vor.u32 %v4179_v62, %v4178_v8  ;;  %8159 = vmatpush3.bf16.msra.mxu1 %v8605_v4  ;;  %v8608_v8 = vld [vmem:[%s9067_s16 + $0xc8] sm:$0xff]   ;;  %v8609_v4 = vld [vmem:[%s9067_s16 + $0x138] sm:$0xff]  }
 0x25a   : >> { %v4185_v43 = vor.u32 %v4184_v55, %v11043_v57  ;;  %v4553_v1 = vshrl.u32 %v7240_v5, 16  ;;  %v12392_v36 = vcombine.low %v10659_v60, %v10679_v11  ;;  %v11077_v52 = vrot.slane %v12208_v6, 7  ;;  %8160 = vmatprep.subr.bf16.mxu1 %v8607_v41 }
 0x25b   : >> { %v12211_v13 = vshll.u32 %v11012_v14, 16  ;;  %v4569_v23 = vrot.slane %v12207_v27, 7  ;;  %v12210_v3 = vshll.u32 %v11023_v18, 16  ;;  %v12393_v62 = vshrl.u32 %v10506_v34, 16  ;;  %8189 = vmatpush3.bf16.msra.mxu0 %v8606_v22 }
 0x25c   : >> { %8111 = vmatmul.mubr.bf16.gmra.mxu1 %v12392_v36  ;;  %v12394_v36 = vshll.u32 %v10506_v34, 16  ;;  %v12395_v30 = vshll.u32 %v10509_v51, 16  ;;  %v12396_v26 = vshrl.u32 %v10509_v51, 16  ;;  %v11097_v6 = vrot.slane %v4174_v20, 5  ;;  %8190 = vmatprep.subr.bf16.mxu0 %v8608_v8 }
 0x25d   : >> { %8162 = vmatprep.mubr.bf16.mxu1 %v7207_v21  ;;  %v4192_v55 = vrot.slane %v12393_v62, 4  ;;  %v11095_v21 = vrot.slane %v4171_v38, 4  ;;  %v11099_v62 = vrot.slane %v4531_v42, 11  ;;  %v11104_v34 = vor.u32 %v4539_v10, %v11059_v63  ;;  %8161 = vmatpush3.bf16.msra.mxu1 %v8607_v41 }
 0x25e   : >> { %v4193_v24 = vrot.slane %v12394_v36, 5  ;;  %v11090_v5 = vrot.slane %v12395_v30, 5  ;;  %v4198_v27 = vrot.slane %v12396_v26, 4  ;;  %v4169_v51 = vsel %vm9286_vm5, %v11054_v61, %v11017_v50  ;;  %v7162_v36 = vld [vmem:[%s9085_s20 + $0xec] sm:$0xf]  ;;  %8210 = vmatprep.subr.bf16.mxu1 %v8609_v4  ;;  %8143 = vmatmul.mubr.bf16.gmra.mxu0 %v10962_v56 }
 0x25f   : >> { %v4543_v38 = vrot.slane %v11059_v63, 4  ;;  %v4550_v20 = vor.u32 %v4548_v39, %v4547_v7  ;;  %v11114_v42 = vrot.slane %v4188_v46, 5  ;;  %v11118_v30 = vld [vmem:[%s9085_s20 + $0xe4] sm:$0xf]  ;;  %v11120_v26 = vrot.slane %v4180_v0, 4  ;;  %8191 = vmatpush3.bf16.msra.mxu0 %v8608_v8  ;;  %8194 = vmatprep.mubr.bf16.mxu0 %v10983_v17 }
 0x260   : >> { %v4186_v33 = vrot.slane %v4185_v43, 4  ;;  %v7260_v45 = vrot.slane %v4553_v1, 11  ;;  %v4563_v50 = vor.u32 %v12211_v13, %v11077_v52  ;;  %v11126_v61 = vld [vmem:[%s9085_s20 + $0xe8] sm:$0xf]  ;;  %v8610_v63 = vld [vmem:[%s9067_s16 + $0xc0] sm:$0xff]   ;;  %v4565_v7 = vrot.slane %v11077_v52, 4 }
 0x261   : >> { %v4572_v46 = vor.u32 %v12210_v3, %v4569_v23  ;;  %v4194_v22 = vor.u32 %v4193_v24, %v4192_v55  ;;  %v4199_v43 = vor.u32 %v4198_v27, %v11090_v5  ;;  %v8611_v1 = vld [vmem:[%s9067_s16 + $0x130] sm:$0xff]   ;;  %v4177_v0 = vsel %vm9286_vm5, %v11095_v21, %v11097_v6  ;;  %v7244_v55 = vld [vmem:[%s9085_s20 + $0xe0] sm:$0xf]  ;;  %8192 = vmatprep.subr.bf16.mxu0 %v8610_v63 }
 0x262   : >> { %v4542_v41 = vsel %vm9103_vm2, %v11099_v62, %v11104_v34  ;;  %v4202_v52 = vshll.u32 %v7162_v36, 16  ;;  %v4580_v23 = vshrl.u32 %v11118_v30, 16  ;;  %v4551_v27 = vsel %vm9103_vm2, %v4543_v38, %v4550_v20  ;;  %v8612_v62 = vld [vmem:[%s9067_s16 + $0x178] sm:$0xff]   ;;  %v8613_v34 = vld [vmem:[%s9067_s16 + $0x128] sm:$0xff]  }
 0x263   : >> { %v12214_v24 = vshrl.u32 %v11126_v61, 16  ;;  %v12397_v3 = vshrl.u32 %v10659_v60, 16  ;;  %v12398_v6 = vshll.u32 %v10659_v60, 16  ;;  %v4183_v56 = vsel %vm9286_vm5, %v11120_v26, %v11043_v57  ;;  %8193 = vmatpush3.bf16.msra.mxu0 %v8610_v63 }
 0x264   : >> { %8163 = vmatmul.mubr.bf16.vlgmr.msra.gmra.mxu1 %v10981_v53  ;;  %v4191_v38 = vsel %vm9286_vm5, %v4186_v33, %v11114_v42  ;;  %v12400_v20 = vshrl.u32 %v10679_v11, 16  ;;  %v4564_v8 = vsel %vm9103_vm2, %v7260_v45, %v4563_v50  ;;  %v4573_v57 = vsel %vm9103_vm2, %v4565_v7, %v4572_v46  ;;  %v7166_v42 = vld [vmem:[%s9085_s20 + $0xfc] sm:$0xf]  ;;  %v11178_v33 = vld [vmem:[%s9085_s20 + $0xf4] sm:$0xf]  ;;  %8242 = vmatprep.subr.bf16.mxu0 %v8612_v62 }
 0x265   : >> { %v4206_v13 = vrot.slane %v12397_v3, 4  ;;  %v4207_v21 = vrot.slane %v12398_v6, 5  ;;  %v12399_v3 = vshll.u32 %v10679_v11, 16  ;;  %8211 = vmatpush3.bf16.msra.mxu1 %v8609_v4  ;;  %v11172_v36 = vrot.slane %v4194_v22, 4  ;;  %v11187_v7 = vld [vmem:[%s9085_s20 + $0xf8] sm:$0xf]  ;;  %8166 = vmatprep.mubr.bf16.mxu1 %v10985_v58 }
 0x266   : >> { %v4212_v53 = vrot.slane %v12400_v20, 4  ;;  %v11174_v26 = vrot.slane %v4199_v43, 4  ;;  %8212 = vmatprep.subr.bf16.mxu1 %v8611_v1  ;;  %v11181_v11 = vrot.slane %v4202_v52, 5  ;;  %v4575_v4 = vshrl.u32 %v7244_v55, 16  ;;  %v7248_v58 = vld [vmem:[%s9085_s20 + $0xf0] sm:$0xf]  ;;  %8195 = vmatmul.mubr.bf16.vlgmr.msra.gmra.mxu0 %v11000_v29 }
 0x267   : >> { %v11164_v60 = vrot.slane %v12399_v3, 5  ;;  %v4582_v45 = vrot.slane %v4580_v23, 7  ;;  %v4583_v50 = vshll.u32 %v11118_v30, 16  ;;  %v7266_v17 = vcombine.low %v4520_v9, %v11029_v12  ;;  %8243 = vmatpush3.bf16.msra.mxu0 %v8612_v62 }
 0x268   : >> { %v4591_v46 = vrot.slane %v12214_v24, 7  ;;  %v4592_v22 = vshll.u32 %v11126_v61, 16  ;;  %v4208_v43 = vor.u32 %v4207_v21, %v4206_v13  ;;  %v7211_v52 = vcombine.low %v4169_v51, %v4177_v0  ;;  %v8615_v51 = vld [vmem:[%s9067_s16 + $0x120] sm:$0xff]   ;;  %v11227_v21 = vld [vmem:[%s9085_s20 + $0x108] sm:$0xf]  ;;  %8244 = vmatprep.subr.bf16.mxu0 %v8614_v28 }
 0x269   : >> { %v4213_v55 = vor.u32 %v4212_v53, %v11164_v60  ;;  %v4216_v6 = vshll.u32 %v7166_v42, 16  ;;  %v12213_v3 = vshrl.u32 %v11178_v33, 16  ;;  %8213 = vmatpush3.bf16.msra.mxu1 %v8611_v1  ;;  %v11203_v35 = vcombine.low %v4542_v41, %v4551_v27  ;;  %v11224_v27 = vld [vmem:[%s9085_s20 + $0x104] sm:$0xf]  ;;  %v8616_v53 = vld [vmem:[%s9067_s16 + $0x168] sm:$0xff]   ;;  %8198 = vmatprep.mubr.bf16.mxu0 %v7266_v17 }
 0x26a   : >> { %v11205_v9 = vcombine.low %v4183_v56, %v4191_v38  ;;  %v11207_v12 = vcombine.low %v4564_v8, %v4573_v57  ;;  %v12212_v13 = vshrl.u32 %v11187_v7, 16  ;;  %8214 = vmatprep.subr.bf16.mxu1 %v8613_v34  ;;  %v4197_v63 = vsel %vm9286_vm5, %v11172_v36, %v11090_v5 }
 0x26b   : >> { %v4205_v1 = vsel %vm9286_vm5, %v11174_v26, %v11181_v11  ;;  %v11219_v0 = vrot.slane %v4575_v4, 11  ;;  %v4585_v41 = vor.u32 %v4583_v50, %v4582_v45  ;;  %v4587_v56 = vrot.slane %v4582_v45, 4  ;;  %v7252_v11 = vld [vmem:[%s9085_s20 + $0x100] sm:$0xf]  ;;  %v8617_v4 = vld [vmem:[%s9067_s16 + $0x118] sm:$0xff]   ;;  %8245 = vmatpush3.bf16.msra.mxu0 %v8614_v28 }
 0x26c   : >> { %v4594_v5 = vor.u32 %v4592_v22, %v4591_v46  ;;  %v4209_v38 = vrot.slane %v4208_v43, 4  ;;  %v4597_v20 = vshrl.u32 %v7248_v58, 16  ;;  %8167 = vmatmul.mubr.bf16.gmra.mxu1 %v11002_v15  ;;  %v4214_v8 = vrot.slane %v4213_v55, 4  ;;  %8246 = vmatprep.subr.bf16.mxu0 %v8616_v53 }
 0x26d   : >> { %v4218_v57 = vrot.slane %v4216_v6, 5  ;;  %v4604_v36 = vrot.slane %v12213_v3, 7  ;;  %v4605_v26 = vshll.u32 %v11178_v33, 16  ;;  %8215 = vmatpush3.bf16.msra.mxu1 %v8613_v34  ;;  %v4613_v29 = vrot.slane %v12212_v13, 7  ;;  %8170 = vmatprep.mubr.bf16.mxu1 %v7211_v52 }
 0x26e   : >> { %v12216_v42 = vshll.u32 %v11187_v7, 16  ;;  %v12215_v15 = vshrl.u32 %v11224_v27, 16  ;;  %v4633_v62 = vshrl.u32 %v11227_v21, 16  ;;  %8216 = vmatprep.subr.bf16.mxu1 %v8615_v51  ;;  %v12401_v45 = vshrl.u32 %v10717_v2, 16  ;;  %8199 = vmatmul.mubr.bf16.gmra.mxu0 %v11203_v35 }
 0x26f   : >> { %v12402_v34 = vshll.u32 %v10717_v2, 16  ;;  %v12403_v55 = vshll.u32 %v10755_v54, 16  ;;  %v12404_v58 = vshrl.u32 %v10755_v54, 16  ;;  %v4586_v17 = vsel %vm9103_vm2, %v11219_v0, %v4585_v41  ;;  %v8618_v41 = vld [vmem:[%s9067_s16 + $0x160] sm:$0xff]   ;;  %8247 = vmatpush3.bf16.msra.mxu0 %v8616_v53  ;;  %8202 = vmatprep.mubr.bf16.mxu0 %v11207_v12 }
 0x270   : >> { %v5074_v46 = vrot.slane %v12401_v45, 4  ;;  %v4595_v3 = vsel %vm9103_vm2, %v4587_v56, %v4594_v5  ;;  %v4211_v45 = vsel %vm9286_vm5, %v4209_v38, %v11164_v60  ;;  %v4607_v52 = vor.u32 %v4605_v26, %v4604_v36  ;;  %v8619_v38 = vld [vmem:[%s9067_s16 + $0x110] sm:$0xff]   ;;  %8248 = vmatprep.subr.bf16.mxu0 %v8618_v41 }
 0x271   : >> { %v5075_v43 = vrot.slane %v12402_v34, 5  ;;  %v11250_v6 = vrot.slane %v12403_v55, 5  ;;  %v5080_v13 = vrot.slane %v12404_v58, 4  ;;  %v11262_v34 = vrot.slane %v4597_v20, 11  ;;  %v7227_v55 = vld [vmem:[%s9085_s20 + $0x9c] sm:$0xf]  ;;  %8217 = vmatpush3.bf16.msra.mxu1 %v8615_v51 }
 0x272   : >> { %v4219_v58 = vsel %vm9286_vm5, %v4214_v8, %v4218_v57  ;;  %v4609_v24 = vrot.slane %v4604_v36, 4  ;;  %v4619_v0 = vshrl.u32 %v7252_v11, 16  ;;  %v4616_v56 = vor.u32 %v12216_v42, %v4613_v29  ;;  %8218 = vmatprep.subr.bf16.mxu1 %v8617_v4 }
 0x273   : >> { %v4626_v60 = vrot.slane %v12215_v15, 7  ;;  %v4627_v5 = vshll.u32 %v11224_v27, 16  ;;  %v4636_v28 = vshll.u32 %v11227_v21, 16  ;;  %v4635_v20 = vrot.slane %v4633_v62, 7  ;;  %8249 = vmatpush3.bf16.msra.mxu0 %v8618_v41 }
 0x274   : >> { %v5076_v8 = vor.u32 %v5075_v43, %v5074_v46  ;;  %v5081_v51 = vor.u32 %v5080_v13, %v11250_v6  ;;  %v5084_v57 = vshll.u32 %v7227_v55, 16  ;;  %v5089_v36 = vrot.slane %v4495_v44, 5  ;;  %8171 = vmatmul.mubr.bf16.gmra.mxu1 %v11205_v9  ;;  %v8620_v55 = vld [vmem:[%s9067_s16 + $0x158] sm:$0xff]  }
 0x275   : >> { %v11284_v29 = vrot.slane %v4504_v31, 5  ;;  %v12405_v11 = vshrl.u32 %v10805_v16, 16  ;;  %v7213_v42 = vcombine.low %v4197_v63, %v4205_v1  ;;  %v11291_v46 = vrot.slane %v4539_v10, 5  ;;  %v7231_v31 = vld [vmem:[%s9085_s20 + $0xac] sm:$0xf]  ;;  %8219 = vmatpush3.bf16.msra.mxu1 %v8617_v4  ;;  %8250 = vmatprep.subr.bf16.mxu0 %v8620_v55 }
 0x276   : >> { %v7269_v13 = vcombine.low %v4586_v17, %v4595_v3  ;;  %v7214_v44 = vcombine.low %v4211_v45, %v4219_v58  ;;  %v11294_v43 = vrot.slane %v4619_v0, 11  ;;  %v4608_v35 = vsel %vm9103_vm2, %v11262_v34, %v4607_v52  ;;  %8220 = vmatprep.subr.bf16.mxu1 %v8619_v38  ;;  %v8621_v3 = vld [vmem:[%s9067_s16 + $0x108] sm:$0xff]  }
 0x277   : >> { %v5094_v15 = vrot.slane %v12405_v11, 4  ;;  %v4617_v10 = vsel %vm9103_vm2, %v4609_v24, %v4616_v56  ;;  %v4629_v63 = vor.u32 %v4627_v5, %v4626_v60  ;;  %v4631_v9 = vrot.slane %v4626_v60, 4  ;;  %8174 = vmatprep.mubr.bf16.mxu1 %v7213_v42  ;;  %8251 = vmatpush3.bf16.msra.mxu0 %v8620_v55 }
 0x278   : >> { %v4638_v1 = vor.u32 %v4636_v28, %v4635_v20  ;;  %v5077_v53 = vrot.slane %v5076_v8, 4  ;;  %v5082_v4 = vrot.slane %v5081_v51, 4  ;;  %v5086_v17 = vrot.slane %v5084_v57, 5  ;;  %v8622_v20 = vld [vmem:[%s9067_s16 + $0x150] sm:$0xff]   ;;  %v7235_v8 = vld [vmem:[%s9085_s20 + $0xbc] sm:$0xf]  ;;  %8203 = vmatmul.mubr.bf16.gmra.mxu0 %v7269_v13 }
 0x279   : >> { %v5090_v45 = vor.u32 %v5089_v36, %v10989_v19  ;;  %v5095_v24 = vor.u32 %v5094_v15, %v11284_v29  ;;  %v5098_v34 = vshll.u32 %v7231_v31, 16  ;;  %v12406_v58 = vshrl.u32 %v10862_v32, 16  ;;  %8221 = vmatpush3.bf16.msra.mxu1 %v8619_v38  ;;  %v8623_v36 = vld [vmem:[%s9067_s16 + $0x100] sm:$0xff]   ;;  %8252 = vmatprep.subr.bf16.mxu0 %v8622_v20 }
 0x27a   : >> { %v5103_v12 = vrot.slane %v4517_v47, 5  ;;  %v12407_v0 = vshll.u32 %v10879_v59, 16  ;;  %v12408_v60 = vshrl.u32 %v10879_v59, 16  ;;  %v12409_v19 = vshrl.u32 %v10968_v25, 16  ;;  %8222 = vmatprep.subr.bf16.mxu1 %v8621_v3 }
 0x27b   : >> { %v5102_v52 = vrot.slane %v12406_v58, 4  ;;  %v7280_v41 = vcombine.low %v10717_v2, %v10755_v54  ;;  %v11329_v47 = vrot.slane %v4548_v39, 5  ;;  %v12410_v51 = vshrl.u32 %v10995_v37, 16  ;;  %v7239_v54 = vld [vmem:[%s9085_s20 + $0xcc] sm:$0xf]  ;;  %8253 = vmatpush3.bf16.msra.mxu0 %v8622_v20 }
 0x27c   : >> { %v11317_v56 = vrot.slane %v12407_v0, 5  ;;  %v5108_v42 = vrot.slane %v12408_v60, 4  ;;  %v5116_v15 = vrot.slane %v12409_v19, 4  ;;  %v7270_v11 = vcombine.low %v4608_v35, %v4617_v10  ;;  %8175 = vmatmul.mubr.bf16.gmra.mxu1 %v7214_v44 }
 0x27d   : >> { %v5122_v57 = vrot.slane %v12410_v51, 4  ;;  %v4630_v38 = vsel %vm9103_vm2, %v11294_v43, %v4629_v63  ;;  %v4639_v31 = vsel %vm9103_vm2, %v4631_v9, %v4638_v1  ;;  %v5079_v2 = vsel %vm9286_vm5, %v5077_v53, %v11250_v6  ;;  %8223 = vmatpush3.bf16.msra.mxu1 %v8621_v3  ;;  %v8625_v6 = vld [vmem:[%s9067_s16 + $0x148] sm:$0xff]   ;;  %v8627_v3 = vld [vmem:[%s9067_s16 + $0x1b8] sm:$0xff]   ;;  %8226 = vmatprep.mubr.bf16.mxu1 %v7280_v41  ;;  %v8628_v51 = vld [vmem:[%s9067_s16 + $0x140] sm:$0xff]  }
 0x27e   : >> { %v5087_v39 = vsel %vm9286_vm5, %v5082_v4, %v5086_v17  ;;  %v5091_v58 = vrot.slane %v5090_v45, 4  ;;  %v5096_v0 = vrot.slane %v5095_v24, 4  ;;  %v5100_v35 = vrot.slane %v5098_v34, 5  ;;  %8224 = vmatprep.subr.bf16.mxu1 %v8623_v36  ;;  %8206 = vmatprep.mubr.bf16.mxu0 %v7270_v11  ;;  %v7243_v45 = vld [vmem:[%s9085_s20 + $0xdc] sm:$0xf] }
 0x27f   : >> { %v5104_v43 = vor.u32 %v5103_v12, %v5102_v52  ;;  %v5109_v10 = vor.u32 %v5108_v42, %v11317_v56  ;;  %v5112_v63 = vshll.u32 %v7235_v8, 16  ;;  %v5118_v9 = vor.u32 %v11291_v46, %v5116_v15  ;;  %8254 = vmatprep.subr.bf16.mxu0 %v8625_v6 }
 0x280   : >> { %v5123_v13 = vor.u32 %v5122_v57, %v11329_v47  ;;  %v5126_v1 = vshll.u32 %v7239_v54, 16  ;;  %v12411_v53 = vshrl.u32 %v11012_v14, 16  ;;  %v12412_v44 = vshll.u32 %v11012_v14, 16  ;;  %8255 = vmatpush3.bf16.msra.mxu0 %v8625_v6 }
 0x281   : >> { %v11355_v17 = vrot.slane %v4583_v50, 5  ;;  %v7281_v46 = vcombine.low %v10802_v40, %v10805_v16  ;;  %v12413_v24 = vshll.u32 %v11023_v18, 16  ;;  %v12414_v52 = vshrl.u32 %v11023_v18, 16  ;;  %8225 = vmatpush3.bf16.msra.mxu1 %v8623_v36  ;;  %8256 = vmatprep.subr.bf16.mxu0 %v8628_v51 }
 0x282   : >> { %v5130_v4 = vrot.slane %v12411_v53, 4  ;;  %v5131_v55 = vrot.slane %v12412_v44, 5  ;;  %v7271_v60 = vcombine.low %v4630_v38, %v4639_v31  ;;  %v7296_v42 = vcombine.low %v5079_v2, %v5087_v39  ;;  %8274 = vmatprep.subr.bf16.mxu1 %v8627_v3  ;;  %v8629_v31 = vld [vmem:[%s9067_s16 + $0x1b0] sm:$0xff]   ;;  %v11411_v53 = vld [vmem:[%s9085_s20 + $0xa4] sm:$0xf] }
 0x283   : >> { %v11363_v34 = vrot.slane %v12413_v24, 5  ;;  %v5136_v12 = vrot.slane %v12414_v52, 4  ;;  %v5093_v50 = vsel %vm9286_vm5, %v5091_v58, %v11284_v29  ;;  %v5101_v40 = vsel %vm9286_vm5, %v5096_v0, %v5100_v35  ;;  %v7247_v35 = vld [vmem:[%s9085_s20 + $0xec] sm:$0xf]  ;;  %v8634_v24 = vld [vmem:[%s9067_s16 + $0x1f0] sm:$0xff]  }
 0x284   : >> { %v5105_v16 = vrot.slane %v5104_v43, 4  ;;  %v5110_v19 = vrot.slane %v5109_v10, 4  ;;  %v5114_v15 = vrot.slane %v5112_v63, 5  ;;  %v5119_v8 = vrot.slane %v5118_v9, 4  ;;  %8207 = vmatmul.mubr.bf16.gmra.mxu0 %v7271_v60  ;;  %8227 = vmatmul.mubr.bf16.vlgmr.msra.gmra.mxu1 %v7281_v46 }
 0x285   : >> { %v5124_v57 = vrot.slane %v5123_v13, 4  ;;  %v5128_v41 = vrot.slane %v5126_v1, 5  ;;  %v5132_v11 = vor.u32 %v5131_v55, %v5130_v4  ;;  %v5140_v38 = vshll.u32 %v7243_v45, 16  ;;  %8275 = vmatpush3.bf16.msra.mxu1 %v8627_v3  ;;  %8258 = vmatprep.mubr.bf16.mxu0 %v7296_v42  ;;  %v11414_v4 = vld [vmem:[%s9085_s20 + $0xa8] sm:$0xf] }
 0x286   : >> { %v5137_v29 = vor.u32 %v5136_v12, %v11363_v34  ;;  %v5144_v2 = vrot.slane %v4580_v23, 4  ;;  %v11379_v20 = vrot.slane %v4592_v22, 5  ;;  %v12415_v36 = vshrl.u32 %v11126_v61, 16  ;;  %8276 = vmatprep.subr.bf16.mxu1 %v8629_v31  ;;  %8257 = vmatpush3.bf16.msra.mxu0 %v8628_v51  ;;  %v7251_v12 = vld [vmem:[%s9085_s20 + $0xfc] sm:$0xf] }
 0x287   : >> { %v7282_v39 = vcombine.low %v10862_v32, %v10879_v59  ;;  %v7297_v58 = vcombine.low %v5093_v50, %v5101_v40  ;;  %v7283_v0 = vcombine.low %v10968_v25, %v10995_v37  ;;  %v7284_v23 = vcombine.low %v11012_v14, %v11023_v18  ;;  %v8631_v25 = vld [vmem:[%s9067_s16 + $0x1f8] sm:$0xff]   ;;  %v8633_v37 = vld [vmem:[%s9067_s16 + $0x1a8] sm:$0xff]   ;;  %v8640_v14 = vld [vmem:[%s9067_s16 + $0x1e0] sm:$0xff]  }
 0x288   : >> { %v5150_v54 = vrot.slane %v12415_v36, 4  ;;  %v11392_v22 = vrot.slane %v4627_v5, 5  ;;  %v5107_v43 = vsel %vm9286_vm5, %v5105_v16, %v11317_v56  ;;  %v5115_v32 = vsel %vm9286_vm5, %v5110_v19, %v5114_v15  ;;  %8306 = vmatprep.subr.bf16.mxu0 %v8631_v25  ;;  %v7255_v19 = vld [vmem:[%s9085_s20 + $0x10c] sm:$0xf]  ;;  %v7313_v15 = vld [vmem:[%s9085_s20 + $0xa0] sm:$0xf] }
 0x289   : >> { %v7285_v59 = vcombine.low %v11118_v30, %v11126_v61  ;;  %v5121_v5 = vsel %vm9286_vm5, %v5119_v8, %v11329_v47  ;;  %v5129_v10 = vsel %vm9286_vm5, %v5124_v57, %v5128_v41  ;;  %v5133_v56 = vrot.slane %v5132_v11, 4  ;;  %8230 = vmatprep.mubr.bf16.mxu1 %v7282_v39  ;;  %8277 = vmatpush3.bf16.msra.mxu1 %v8629_v31  ;;  %v11452_v36 = vld [vmem:[%s9085_s20 + $0xb4] sm:$0xf]  ;;  %v8645_v30 = vld [vmem:[%s9067_s16 + $0x188] sm:$0xff]  }
 0x28a   : >> { %v5142_v63 = vrot.slane %v5140_v38, 5  ;;  %v5138_v9 = vrot.slane %v5137_v29, 4  ;;  %v5146_v6 = vor.u32 %v11355_v17, %v5144_v2  ;;  %v5151_v13 = vor.u32 %v5150_v54, %v11379_v20  ;;  %8278 = vmatprep.subr.bf16.mxu1 %v8633_v37  ;;  %v11455_v54 = vld [vmem:[%s9085_s20 + $0xb8] sm:$0xf]  ;;  %v8641_v18 = vld [vmem:[%s9067_s16 + $0x190] sm:$0xff]  }
 0x28b   : >> { %v5154_v1 = vshll.u32 %v7247_v35, 16  ;;  %v12416_v47 = vshrl.u32 %v11178_v33, 16  ;;  %v5159_v55 = vrot.slane %v4605_v26, 5  ;;  %v12417_v46 = vshll.u32 %v11187_v7, 16 }
 0x28c   : >> { %v12418_v17 = vshrl.u32 %v11187_v7, 16  ;;  %v7298_v52 = vcombine.low %v5107_v43, %v5115_v32  ;;  %v12419_v60 = vshrl.u32 %v11224_v27, 16  ;;  %v11432_v50 = vrot.slane %v4636_v28, 5  ;;  %v8635_v28 = vld [vmem:[%s9067_s16 + $0x1a0] sm:$0xff]   ;;  %8259 = vmatmul.mubr.bf16.vlgmr.msra.gmra.mxu0 %v7297_v58  ;;  %8231 = vmatmul.mubr.bf16.gmra.mxu1 %v7283_v0  ;;  %v8637_v58 = vld [vmem:[%s9067_s16 + $0x1e8] sm:$0xff]  }
 0x28d   : >> { %v5158_v44 = vrot.slane %v12416_v47, 4  ;;  %v11422_v3 = vrot.slane %v12417_v46, 5  ;;  %v5178_v26 = vrot.slane %v4633_v62, 4  ;;  %v11436_v40 = vcombine.low %v5121_v5, %v5129_v10  ;;  %8307 = vmatpush3.bf16.msra.mxu0 %v8631_v25  ;;  %8279 = vmatpush3.bf16.msra.mxu1 %v8633_v37 }
 0x28e   : >> { %v5164_v45 = vrot.slane %v12418_v17, 4  ;;  %v5172_v42 = vrot.slane %v12419_v60, 4  ;;  %v7286_v16 = vcombine.low %v11178_v33, %v11187_v7  ;;  %v5436_v8 = vshrl.u32 %v11411_v53, 16  ;;  %8308 = vmatprep.subr.bf16.mxu0 %v8634_v24  ;;  %8280 = vmatprep.subr.bf16.mxu1 %v8635_v28 }
 0x28f   : >> { %v5445_v51 = vshrl.u32 %v11414_v4, 16  ;;  %v5135_v62 = vsel %vm9286_vm5, %v5133_v56, %v11363_v34  ;;  %v5143_v57 = vsel %vm9286_vm5, %v5138_v9, %v5142_v63  ;;  %v5147_v41 = vrot.slane %v5146_v6, 4  ;;  %8262 = vmatprep.mubr.bf16.mxu0 %v7298_v52  ;;  %v7317_v56 = vld [vmem:[%s9085_s20 + $0xb0] sm:$0xf]  ;;  %8234 = vmatprep.mubr.bf16.mxu1 %v7284_v23 }
 0x290   : >> { %v5156_v11 = vrot.slane %v5154_v1, 5  ;;  %v5152_v38 = vrot.slane %v5151_v13, 4  ;;  %v5160_v31 = vor.u32 %v5159_v55, %v5158_v44  ;;  %v5165_v29 = vor.u32 %v5164_v45, %v11422_v3  ;;  %v11479_v44 = vld [vmem:[%s9085_s20 + $0xc4] sm:$0xf]  ;;  %v11482_v45 = vld [vmem:[%s9085_s20 + $0xc8] sm:$0xf] }
 0x291   : >> { %v5168_v2 = vshll.u32 %v7251_v12, 16  ;;  %v5174_v34 = vor.u32 %v11392_v22, %v5172_v42  ;;  %v5179_v39 = vor.u32 %v5178_v26, %v11432_v50  ;;  %v5182_v35 = vshll.u32 %v7255_v19, 16  ;;  %v8639_v22 = vld [vmem:[%s9067_s16 + $0x198] sm:$0xff]   ;;  %8309 = vmatpush3.bf16.msra.mxu0 %v8634_v24  ;;  %8281 = vmatpush3.bf16.msra.mxu1 %v8635_v28 }
 0x292   : >> { %v5431_v43 = vshrl.u32 %v7313_v15, 16  ;;  %v5438_v32 = vrot.slane %v5436_v8, 7  ;;  %v5439_v5 = vshll.u32 %v11411_v53, 16  ;;  %v5447_v0 = vrot.slane %v5445_v51, 7  ;;  %8310 = vmatprep.subr.bf16.mxu0 %v8637_v58  ;;  %8282 = vmatprep.subr.bf16.mxu1 %v8639_v22  ;;  %v7321_v15 = vld [vmem:[%s9085_s20 + $0xc0] sm:$0xf] }
 0x293   : >> { %v5448_v25 = vshll.u32 %v11414_v4, 16  ;;  %v7300_v10 = vcombine.low %v5135_v62, %v5143_v57  ;;  %v5149_v37 = vsel %vm9286_vm5, %v5147_v41, %v11379_v20  ;;  %v5458_v63 = vshrl.u32 %v11452_v36, 16 }
 0x294   : >> { %v5467_v9 = vshrl.u32 %v11455_v54, 16  ;;  %v5157_v6 = vsel %vm9286_vm5, %v5152_v38, %v5156_v11  ;;  %v5161_v13 = vrot.slane %v5160_v31, 4  ;;  %v5166_v1 = vrot.slane %v5165_v29, 4  ;;  %8263 = vmatmul.mubr.bf16.gmra.mxu0 %v11436_v40  ;;  %8235 = vmatmul.mubr.bf16.gmra.mxu1 %v7285_v59  ;;  %v11514_v38 = vld [vmem:[%s9085_s20 + $0xd4] sm:$0xf]  ;;  %v8643_v31 = vld [vmem:[%s9067_s16 + $0x1d8] sm:$0xff]  }
 0x295   : >> { %v5170_v47 = vrot.slane %v5168_v2, 5  ;;  %v5175_v20 = vrot.slane %v5174_v34, 4  ;;  %v5180_v55 = vrot.slane %v5179_v39, 4  ;;  %v5184_v46 = vrot.slane %v5182_v35, 5  ;;  %8311 = vmatpush3.bf16.msra.mxu0 %v8637_v58  ;;  %8283 = vmatpush3.bf16.msra.mxu1 %v8639_v22  ;;  %v11523_v2 = vld [vmem:[%s9085_s20 + $0xd8] sm:$0xf] }
 0x296   : >> { %v7345_v17 = vrot.slane %v5431_v43, 11  ;;  %v5441_v23 = vor.u32 %v5439_v5, %v5438_v32  ;;  %v5443_v52 = vrot.slane %v5438_v32, 4  ;;  %v5450_v12 = vor.u32 %v5448_v25, %v5447_v0  ;;  %8312 = vmatprep.subr.bf16.mxu0 %v8640_v14  ;;  %8284 = vmatprep.subr.bf16.mxu1 %v8641_v18  ;;  %v11531_v58 = vld [vmem:[%s9085_s20 + $0xe4] sm:$0xf]  ;;  %v11534_v32 = vld [vmem:[%s9085_s20 + $0xe8] sm:$0xf] }
 0x297   : >> { %v5453_v60 = vshrl.u32 %v7317_v56, 16  ;;  %v5460_v24 = vrot.slane %v5458_v63, 7  ;;  %v5461_v42 = vshll.u32 %v11452_v36, 16  ;;  %v5469_v26 = vrot.slane %v5467_v9, 7  ;;  %8266 = vmatprep.mubr.bf16.mxu0 %v7300_v10  ;;  %8238 = vmatprep.mubr.bf16.mxu1 %v7286_v16  ;;  %v11552_v16 = vld [vmem:[%s9085_s20 + $0xf4] sm:$0xf] }
 0x298   : >> { %v5470_v19 = vshll.u32 %v11455_v54, 16  ;;  %v7301_v28 = vcombine.low %v5149_v37, %v5157_v6  ;;  %v5163_v62 = vsel %vm9286_vm5, %v5161_v13, %v11422_v3  ;;  %v5480_v57 = vshrl.u32 %v11479_v44, 16  ;;  %v7325_v37 = vld [vmem:[%s9085_s20 + $0xd0] sm:$0xf] }
 0x299   : >> { %v5489_v41 = vshrl.u32 %v11482_v45, 16  ;;  %v5171_v11 = vsel %vm9286_vm5, %v5166_v1, %v5170_v47  ;;  %v5177_v40 = vsel %vm9286_vm5, %v5175_v20, %v11432_v50  ;;  %v5185_v3 = vsel %vm9286_vm5, %v5180_v55, %v5184_v46  ;;  %8313 = vmatpush3.bf16.msra.mxu0 %v8640_v14  ;;  %8285 = vmatpush3.bf16.msra.mxu1 %v8641_v18  ;;  %v8646_v1 = vld [vmem:[%s9067_s16 + $0x1d0] sm:$0xff]   ;;  %v7329_v55 = vld [vmem:[%s9085_s20 + $0xe0] sm:$0xf] }
 0x29a   : >> { %v5442_v61 = vsel %vm9103_vm2, %v7345_v17, %v5441_v23  ;;  %v5451_v59 = vsel %vm9103_vm2, %v5443_v52, %v5450_v12  ;;  %v7346_v29 = vrot.slane %v5453_v60, 11  ;;  %v5475_v50 = vshrl.u32 %v7321_v15, 16  ;;  %8314 = vmatprep.subr.bf16.mxu0 %v8643_v31  ;;  %8286 = vmatprep.subr.bf16.mxu1 %v8645_v30  ;;  %v8648_v15 = vld [vmem:[%s9067_s16 + $0x1c8] sm:$0xff]  }
 0x29b   : >> { %v5463_v34 = vor.u32 %v5461_v42, %v5460_v24  ;;  %v5465_v39 = vrot.slane %v5460_v24, 4  ;;  %v5472_v35 = vor.u32 %v5470_v19, %v5469_v26  ;;  %v5483_v43 = vshll.u32 %v11479_v44, 16  ;;  %v11573_v26 = vld [vmem:[%s9085_s20 + $0xf8] sm:$0xf] }
 0x29c   : >> { %v5482_v0 = vrot.slane %v5480_v57, 7  ;;  %v5491_v22 = vrot.slane %v5489_v41, 7  ;;  %v5492_v10 = vshll.u32 %v11482_v45, 16  ;;  %v5502_v56 = vshrl.u32 %v11514_v38, 16  ;;  %8267 = vmatmul.mubr.bf16.gmra.mxu0 %v7301_v28 }
 0x29d   : >> { %v7287_v6 = vcombine.low %v11224_v27, %v11227_v21  ;;  %v7302_v13 = vcombine.low %v5163_v62, %v5171_v11  ;;  %v11548_v33 = vcombine.low %v5177_v40, %v5185_v3  ;;  %v5511_v7 = vshrl.u32 %v11523_v2, 16  ;;  %v8647_v21 = vld [vmem:[%s9067_s16 + $0x180] sm:$0xff]   ;;  %8315 = vmatpush3.bf16.msra.mxu0 %v8643_v31  ;;  %8287 = vmatpush3.bf16.msra.mxu1 %v8645_v30 }
 0x29e   : >> { %v7353_v47 = vcombine.low %v5442_v61, %v5451_v59  ;;  %v11555_v20 = vrot.slane %v5475_v50, 11  ;;  %v12222_v46 = vshrl.u32 %v11531_v58, 16  ;;  %v12218_v27 = vshrl.u32 %v11534_v32, 16  ;;  %8316 = vmatprep.subr.bf16.mxu0 %v8646_v1  ;;  %8288 = vmatprep.subr.bf16.mxu1 %v8647_v21 }
 0x29f   : >> { %v5464_v17 = vsel %vm9103_vm2, %v7346_v29, %v5463_v34  ;;  %v5473_v14 = vsel %vm9103_vm2, %v5465_v39, %v5472_v35  ;;  %v5497_v18 = vshrl.u32 %v7325_v37, 16  ;;  %v5505_v23 = vshll.u32 %v11514_v38, 16  ;;  %8239 = vmatmul.mubr.bf16.gmra.mxu1 %v7287_v6  ;;  %v7333_v29 = vld [vmem:[%s9085_s20 + $0xf0] sm:$0xf]  ;;  %8270 = vmatprep.mubr.bf16.mxu0 %v7302_v13  ;;  %v8649_v34 = vld [vmem:[%s9067_s16 + $0x238] sm:$0xff]  }
 0x2a0   : >> { %v5485_v52 = vor.u32 %v5483_v43, %v5482_v0  ;;  %v5487_v12 = vrot.slane %v5482_v0, 4  ;;  %v5494_v60 = vor.u32 %v5492_v10, %v5491_v22  ;;  %v5504_v24 = vrot.slane %v5502_v56, 7  ;;  %8290 = vmatprep.mubr.bf16.mxu1 %v7353_v47  ;;  %v11599_v13 = vld [vmem:[%s9085_s20 + $0x104] sm:$0xf] }
 0x2a1   : >> { %v5513_v28 = vrot.slane %v5511_v7, 7  ;;  %v5514_v62 = vshll.u32 %v11523_v2, 16  ;;  %v5519_v11 = vshrl.u32 %v7329_v55, 16  ;;  %v12217_v40 = vshrl.u32 %v11552_v16, 16  ;;  %v11602_v55 = vld [vmem:[%s9085_s20 + $0x108] sm:$0xf]  ;;  %8317 = vmatpush3.bf16.msra.mxu0 %v8646_v1  ;;  %8289 = vmatpush3.bf16.msra.mxu1 %v8647_v21 }
 0x2a2   : >> { %v5526_v3 = vrot.slane %v12222_v46, 7  ;;  %v12221_v61 = vshll.u32 %v11531_v58, 16  ;;  %v5535_v31 = vrot.slane %v12218_v27, 7  ;;  %v12220_v59 = vshll.u32 %v11534_v32, 16  ;;  %8318 = vmatprep.subr.bf16.mxu0 %v8648_v15  ;;  %8338 = vmatprep.subr.bf16.mxu1 %v8649_v34 }
 0x2a3   : >> { %v7354_v50 = vcombine.low %v5464_v17, %v5473_v14  ;;  %v7369_v30 = vcombine.low %v11411_v53, %v11414_v4  ;;  %v7348_v39 = vrot.slane %v5497_v18, 11  ;;  %v12219_v35 = vshrl.u32 %v11573_v26, 16  ;;  %v8650_v18 = vld [vmem:[%s9067_s16 + $0x1c0] sm:$0xff]  }
 0x2a4   : >> { %v5486_v0 = vsel %vm9103_vm2, %v11555_v20, %v5485_v52  ;;  %v5495_v22 = vsel %vm9103_vm2, %v5487_v12, %v5494_v60  ;;  %v5507_v37 = vor.u32 %v5505_v23, %v5504_v24  ;;  %v5509_v6 = vrot.slane %v5504_v24, 4  ;;  %v7337_v24 = vld [vmem:[%s9085_s20 + $0x100] sm:$0xf]  ;;  %8271 = vmatmul.mubr.bf16.gmra.mxu0 %v11548_v33  ;;  %v11631_v33 = vld [vmem:[%s9085_s20 + $0x114] sm:$0xf] }
 0x2a5   : >> { %v5516_v47 = vor.u32 %v5514_v62, %v5513_v28  ;;  %v5541_v17 = vshrl.u32 %v7333_v29, 16  ;;  %v5548_v20 = vrot.slane %v12217_v40, 7  ;;  %v5549_v14 = vshll.u32 %v11552_v16, 16  ;;  %v8651_v28 = vld [vmem:[%s9067_s16 + $0x230] sm:$0xff]   ;;  %8319 = vmatpush3.bf16.msra.mxu0 %v8648_v15  ;;  %8322 = vmatprep.mubr.bf16.mxu0 %v7369_v30 }
 0x2a6   : >> { %v7349_v52 = vrot.slane %v5519_v11, 11  ;;  %v5529_v12 = vor.u32 %v12221_v61, %v5526_v3  ;;  %v5531_v60 = vrot.slane %v5526_v3, 4  ;;  %v5538_v1 = vor.u32 %v12220_v59, %v5535_v31  ;;  %8320 = vmatprep.subr.bf16.mxu0 %v8650_v18 }
 0x2a7   : >> { %v5557_v29 = vrot.slane %v12219_v35, 7  ;;  %v5558_v21 = vshll.u32 %v11573_v26, 16  ;;  %v5568_v40 = vshrl.u32 %v11599_v13, 16  ;;  %v12223_v11 = vshrl.u32 %v11602_v55, 16  ;;  %8291 = vmatmul.mubr.bf16.vlgmr.msra.gmra.mxu1 %v7354_v50 }
 0x2a8   : >> { %v7355_v3 = vcombine.low %v5486_v0, %v5495_v22  ;;  %v7370_v31 = vcombine.low %v11452_v36, %v11455_v54  ;;  %v5508_v27 = vsel %vm9103_vm2, %v7348_v39, %v5507_v37  ;;  %v5517_v35 = vsel %vm9103_vm2, %v5509_v6, %v5516_v47  ;;  %v11634_v0 = vld [vmem:[%s9085_s20 + $0x118] sm:$0xf]  ;;  %8339 = vmatpush3.bf16.msra.mxu1 %v8649_v34  ;;  %v7341_v37 = vld [vmem:[%s9085_s20 + $0x110] sm:$0xf]  ;;  %v8654_v6 = vld [vmem:[%s9067_s16 + $0x228] sm:$0xff]  }
 0x2a9   : >> { %v7350_v59 = vrot.slane %v5541_v17, 11  ;;  %v5551_v61 = vor.u32 %v5549_v14, %v5548_v20  ;;  %v5563_v46 = vshrl.u32 %v7337_v24, 16  ;;  %v5530_v39 = vsel %vm9103_vm2, %v7349_v52, %v5529_v12  ;;  %8340 = vmatprep.subr.bf16.mxu1 %v8651_v28  ;;  %8321 = vmatpush3.bf16.msra.mxu0 %v8650_v18 }
 0x2aa   : >> { %v5539_v15 = vsel %vm9103_vm2, %v5531_v60, %v5538_v1  ;;  %v5553_v50 = vrot.slane %v5548_v20, 4  ;;  %v5571_v22 = vshll.u32 %v11599_v13, 16  ;;  %v5560_v47 = vor.u32 %v5558_v21, %v5557_v29  ;;  %8294 = vmatprep.mubr.bf16.mxu1 %v7355_v3 }
 0x2ab   : >> { %v5570_v34 = vrot.slane %v5568_v40, 7  ;;  %v5579_v17 = vrot.slane %v12223_v11, 7  ;;  %v5580_v52 = vshll.u32 %v11602_v55, 16  ;;  %v7356_v20 = vcombine.low %v5508_v27, %v5517_v35 }
 0x2ac   : >> { %v7371_v12 = vcombine.low %v11479_v44, %v11482_v45  ;;  %v5590_v30 = vshrl.u32 %v11631_v33, 16  ;;  %v5599_v60 = vshrl.u32 %v11634_v0, 16  ;;  %v7357_v1 = vcombine.low %v5530_v39, %v5539_v15  ;;  %8341 = vmatpush3.bf16.msra.mxu1 %v8651_v28  ;;  %v8655_v39 = vld [vmem:[%s9067_s16 + $0x220] sm:$0xff]   ;;  %8323 = vmatmul.mubr.bf16.vlgmr.msra.gmra.mxu0 %v7370_v31 }
 0x2ad   : >> { %v5552_v24 = vsel %vm9103_vm2, %v7350_v59, %v5551_v61  ;;  %v7351_v29 = vrot.slane %v5563_v46, 11  ;;  %v5585_v11 = vshrl.u32 %v7341_v37, 16  ;;  %v6040_v3 = vrot.slane %v5436_v8, 4  ;;  %8342 = vmatprep.subr.bf16.mxu1 %v8654_v6  ;;  %v7316_v8 = vld [vmem:[%s9085_s20 + $0xac] sm:$0xf] }
 0x2ae   : >> { %v6041_v27 = vrot.slane %v5439_v5, 5  ;;  %v11662_v35 = vrot.slane %v5448_v25, 5  ;;  %v6046_v18 = vrot.slane %v5445_v51, 4  ;;  %v5561_v46 = vsel %vm9103_vm2, %v5553_v50, %v5560_v47  ;;  %8326 = vmatprep.mubr.bf16.mxu0 %v7371_v12  ;;  %v8658_v47 = vld [vmem:[%s9067_s16 + $0x218] sm:$0xff]  }
 0x2af   : >> { %v5573_v61 = vor.u32 %v5571_v22, %v5570_v34  ;;  %v5575_v59 = vrot.slane %v5570_v34, 4  ;;  %v5582_v53 = vor.u32 %v5580_v52, %v5579_v17  ;;  %v5592_v5 = vrot.slane %v5590_v30, 7  ;;  %8295 = vmatmul.mubr.bf16.gmra.mxu1 %v7356_v20 }
 0x2b0   : >> { %v5593_v4 = vshll.u32 %v11631_v33, 16  ;;  %v5601_v51 = vrot.slane %v5599_v60, 7  ;;  %v5602_v25 = vshll.u32 %v11634_v0, 16  ;;  %8343 = vmatpush3.bf16.msra.mxu1 %v8654_v6  ;;  %8298 = vmatprep.mubr.bf16.mxu1 %v7357_v1  ;;  %v7372_v28 = vcombine.low %v11514_v38, %v11523_v2 }
 0x2b1   : >> { %v6042_v15 = vor.u32 %v6041_v27, %v6040_v3  ;;  %v6047_v31 = vor.u32 %v6046_v18, %v11662_v35  ;;  %v6050_v50 = vshll.u32 %v7316_v8, 16  ;;  %8344 = vmatprep.subr.bf16.mxu1 %v8655_v39  ;;  %v7358_v37 = vcombine.low %v5552_v24, %v5561_v46  ;;  %v8659_v8 = vld [vmem:[%s9067_s16 + $0x210] sm:$0xff]  }
 0x2b2   : >> { %v7373_v34 = vcombine.low %v11531_v58, %v11534_v32  ;;  %v5574_v17 = vsel %vm9103_vm2, %v7351_v29, %v5573_v61  ;;  %v5583_v6 = vsel %vm9103_vm2, %v5575_v59, %v5582_v53  ;;  %v7352_v20 = vrot.slane %v5585_v11, 11  ;;  %v7320_v53 = vld [vmem:[%s9085_s20 + $0xbc] sm:$0xf] }
 0x2b3   : >> { %v5595_v12 = vor.u32 %v5593_v4, %v5592_v5  ;;  %v5597_v1 = vrot.slane %v5592_v5, 4  ;;  %v5604_v24 = vor.u32 %v5602_v25, %v5601_v51  ;;  %v6054_v3 = vrot.slane %v5458_v63, 4  ;;  %v8662_v51 = vld [vmem:[%s9067_s16 + $0x208] sm:$0xff]  }
 0x2b4   : >> { %v6055_v27 = vrot.slane %v5461_v42, 5  ;;  %v11700_v29 = vrot.slane %v5470_v19, 5  ;;  %v6060_v11 = vrot.slane %v5467_v9, 4  ;;  %8345 = vmatpush3.bf16.msra.mxu1 %v8655_v39  ;;  %v7359_v18 = vcombine.low %v5574_v17, %v5583_v6  ;;  %8327 = vmatmul.mubr.bf16.gmra.mxu0 %v7372_v28  ;;  %v7324_v39 = vld [vmem:[%s9085_s20 + $0xcc] sm:$0xf] }
 0x2b5   : >> { %v6043_v46 = vrot.slane %v6042_v15, 4  ;;  %v6048_v61 = vrot.slane %v6047_v31, 4  ;;  %v6052_v59 = vrot.slane %v6050_v50, 5  ;;  %8346 = vmatprep.subr.bf16.mxu1 %v8658_v47  ;;  %v6068_v36 = vrot.slane %v5480_v57, 4  ;;  %8330 = vmatprep.mubr.bf16.mxu0 %v7373_v34 }
 0x2b6   : >> { %v6069_v63 = vrot.slane %v5483_v43, 5  ;;  %v11712_v42 = vrot.slane %v5492_v10, 5  ;;  %v6074_v54 = vrot.slane %v5489_v41, 4  ;;  %v5596_v9 = vsel %vm9103_vm2, %v7352_v20, %v5595_v12  ;;  %v7328_v12 = vld [vmem:[%s9085_s20 + $0xdc] sm:$0xf] }
 0x2b7   : >> { %v5605_v19 = vsel %vm9103_vm2, %v5597_v1, %v5604_v24  ;;  %8299 = vmatmul.mubr.bf16.gmra.mxu1 %v7358_v37  ;;  %v7374_v44 = vcombine.low %v11552_v16, %v11573_v26  ;;  %v6056_v57 = vor.u32 %v6055_v27, %v6054_v3  ;;  %v6061_v43 = vor.u32 %v6060_v11, %v11700_v29 }
 0x2b8   : >> { %v6064_v10 = vshll.u32 %v7320_v53, 16  ;;  %8347 = vmatpush3.bf16.msra.mxu1 %v8658_v47  ;;  %8302 = vmatprep.mubr.bf16.mxu1 %v7359_v18  ;;  %v7375_v45 = vcombine.low %v11599_v13, %v11602_v55  ;;  %v6045_v49 = vsel %vm9286_vm5, %v6043_v46, %v11662_v35  ;;  %v6053_v41 = vsel %vm9286_vm5, %v6048_v61, %v6052_v59  ;;  %v7332_v46 = vld [vmem:[%s9085_s20 + $0xec] sm:$0xf] }
 0x2b9   : >> { %8348 = vmatprep.subr.bf16.mxu1 %v8659_v8  ;;  %v7360_v5 = vcombine.low %v5596_v9, %v5605_v19  ;;  %v6070_v28 = vor.u32 %v6069_v63, %v6068_v36  ;;  %v6075_v15 = vor.u32 %v6074_v54, %v11712_v42  ;;  %v6078_v31 = vshll.u32 %v7324_v39, 16 }
 0x2ba   : >> { %v6082_v50 = vrot.slane %v5502_v56, 4  ;;  %v6083_v37 = vrot.slane %v5505_v23, 5  ;;  %v11739_v35 = vrot.slane %v5514_v62, 5  ;;  %v6088_v47 = vrot.slane %v5511_v7, 4  ;;  %v8663_v7 = vld [vmem:[%s9067_s16 + $0x200] sm:$0xff]  }
 0x2bb   : >> { %v7385_v34 = vcombine.low %v6045_v49, %v6053_v41  ;;  %v6057_v17 = vrot.slane %v6056_v57, 4  ;;  %v6062_v6 = vrot.slane %v6061_v43, 4  ;;  %v6066_v20 = vrot.slane %v6064_v10, 5 }
 0x2bc   : >> { %8349 = vmatpush3.bf16.msra.mxu1 %v8659_v8  ;;  %v12420_v1 = vshrl.u32 %v11531_v58, 16  ;;  %v12421_v38 = vshll.u32 %v11531_v58, 16  ;;  %v12422_v24 = vshll.u32 %v11534_v32, 16  ;;  %v12423_v3 = vshrl.u32 %v11534_v32, 16  ;;  %8331 = vmatmul.mubr.bf16.gmra.mxu0 %v7374_v44 }
 0x2bd   : >> { %8350 = vmatprep.subr.bf16.mxu1 %v8662_v51  ;;  %v6071_v27 = vrot.slane %v6070_v28, 4  ;;  %v6076_v11 = vrot.slane %v6075_v15, 4  ;;  %v6080_v18 = vrot.slane %v6078_v31, 5  ;;  %v6084_v61 = vor.u32 %v6083_v37, %v6082_v50  ;;  %8334 = vmatprep.mubr.bf16.mxu0 %v7375_v45  ;;  %v7336_v31 = vld [vmem:[%s9085_s20 + $0xfc] sm:$0xf] }
 0x2be   : >> { %v6096_v56 = vrot.slane %v12420_v1, 4  ;;  %v6097_v23 = vrot.slane %v12421_v38, 5  ;;  %v6100_v62 = vrot.slane %v12422_v24, 5  ;;  %v6102_v2 = vrot.slane %v12423_v3, 4 }
 0x2bf   : >> { %v6089_v59 = vor.u32 %v6088_v47, %v11739_v35  ;;  %v6092_v53 = vshll.u32 %v7328_v12, 16  ;;  %8303 = vmatmul.mubr.bf16.gmra.mxu1 %v7360_v5  ;;  %v6059_v58 = vsel %vm9286_vm5, %v6057_v17, %v11700_v29  ;;  %v6067_v32 = vsel %vm9286_vm5, %v6062_v6, %v6066_v20  ;;  %v7340_v47 = vld [vmem:[%s9085_s20 + $0x10c] sm:$0xf] }
 0x2c0   : >> { %8351 = vmatpush3.bf16.msra.mxu1 %v8662_v51  ;;  %8354 = vmatprep.mubr.bf16.mxu1 %v7385_v34  ;;  %v6098_v8 = vor.u32 %v6097_v23, %v6096_v56  ;;  %v6103_v36 = vor.u32 %v6102_v2, %v6100_v62  ;;  %v6106_v63 = vshll.u32 %v7332_v46, 16  ;;  %v7376_v54 = vcombine.low %v11631_v33, %v11634_v0 }
 0x2c1   : >> { %8352 = vmatprep.subr.bf16.mxu1 %v8663_v7  ;;  %v6073_v9 = vsel %vm9286_vm5, %v6071_v27, %v11712_v42  ;;  %v6081_v29 = vsel %vm9286_vm5, %v6076_v11, %v6080_v18  ;;  %v7386_v19 = vcombine.low %v6059_v58, %v6067_v32  ;;  %v6085_v39 = vrot.slane %v6084_v61, 4  ;;  %v7344_v11 = vld [vmem:[%s9085_s20 + $0x11c] sm:$0xf] }
 0x2c2   : >> { %v6090_v44 = vrot.slane %v6089_v59, 4  ;;  %v6094_v57 = vrot.slane %v6092_v53, 5  ;;  %v12424_v43 = vshrl.u32 %v11552_v16, 16  ;;  %v6111_v45 = vrot.slane %v5549_v14, 5 }
 0x2c3   : >> { %v6114_v49 = vrot.slane %v5558_v21, 5  ;;  %v12425_v41 = vshrl.u32 %v11573_v26, 16  ;;  %v7387_v5 = vcombine.low %v6073_v9, %v6081_v29  ;;  %v6099_v51 = vrot.slane %v6098_v8, 4 }
 0x2c4   : >> { %v6110_v10 = vrot.slane %v12424_v43, 4  ;;  %8353 = vmatpush3.bf16.msra.mxu1 %v8663_v7  ;;  %v6104_v28 = vrot.slane %v6103_v36, 4  ;;  %v6108_v15 = vrot.slane %v6106_v63, 5  ;;  %v6124_v50 = vrot.slane %v5568_v40, 4  ;;  %8335 = vmatmul.mubr.bf16.gmra.mxu0 %v7376_v54 }
 0x2c5   : >> { %v6116_v42 = vrot.slane %v12425_v41, 4  ;;  %v6125_v16 = vrot.slane %v5571_v22, 5  ;;  %v6128_v14 = vrot.slane %v5580_v52, 5  ;;  %v12426_v21 = vshrl.u32 %v11602_v55, 16 }
 0x2c6   : >> { %v6087_v26 = vsel %vm9286_vm5, %v6085_v39, %v11739_v35  ;;  %v6095_v34 = vsel %vm9286_vm5, %v6090_v44, %v6094_v57  ;;  %v6112_v40 = vor.u32 %v6111_v45, %v6110_v10  ;;  %v6120_v13 = vshll.u32 %v7336_v31, 16 }
 0x2c7   : >> { %v6130_v37 = vrot.slane %v12426_v21, 4  ;;  %8355 = vmatmul.mubr.bf16.vlgmr.msra.gmra.mxu1 %v7386_v19  ;;  %v6117_v17 = vor.u32 %v6116_v42, %v6114_v49  ;;  %v6101_v22 = vsel %vm9286_vm5, %v6099_v51, %v6100_v62  ;;  %v6109_v55 = vsel %vm9286_vm5, %v6104_v28, %v6108_v15 }
 0x2c8   : >> { %8358 = vmatprep.mubr.bf16.mxu1 %v7387_v5  ;;  %v6126_v52 = vor.u32 %v6125_v16, %v6124_v50  ;;  %v6134_v20 = vshll.u32 %v7340_v47, 16  ;;  %v7388_v35 = vcombine.low %v6087_v26, %v6095_v34  ;;  %v7389_v12 = vcombine.low %v6101_v22, %v6109_v55 }
 0x2c9   : >> { %v6131_v6 = vor.u32 %v6130_v37, %v6128_v14  ;;  %v6113_v1 = vrot.slane %v6112_v40, 4  ;;  %v6118_v56 = vrot.slane %v6117_v17, 4  ;;  %v6122_v38 = vrot.slane %v6120_v13, 5 }
 0x2ca   : >> { %v6138_v23 = vrot.slane %v5590_v30, 4  ;;  %v6139_v24 = vrot.slane %v5593_v4, 5  ;;  %v6142_v62 = vrot.slane %v5602_v25, 5  ;;  %v6144_v3 = vrot.slane %v5599_v60, 4 }
 0x2cb   : >> { %v6127_v2 = vrot.slane %v6126_v52, 4  ;;  %v6132_v7 = vrot.slane %v6131_v6, 4  ;;  %v6136_v27 = vrot.slane %v6134_v20, 5  ;;  %v6115_v18 = vsel %vm9286_vm5, %v6113_v1, %v6114_v49 }
 0x2cc   : >> { %v6123_v30 = vsel %vm9286_vm5, %v6118_v56, %v6122_v38  ;;  %v6140_v33 = vor.u32 %v6139_v24, %v6138_v23  ;;  %v6145_v4 = vor.u32 %v6144_v3, %v6142_v62  ;;  %v6148_v46 = vshll.u32 %v7344_v11, 16 }
 0x2cd   : >> { %v6129_v25 = vsel %vm9286_vm5, %v6127_v2, %v6128_v14  ;;  %v6137_v0 = vsel %vm9286_vm5, %v6132_v7, %v6136_v27  ;;  %v7390_v60 = vcombine.low %v6115_v18, %v6123_v30 }
 0x2ce   : >> { %v7391_v61 = vcombine.low %v6129_v25, %v6137_v0  ;;  %v6141_v59 = vrot.slane %v6140_v33, 4  ;;  %v6146_v53 = vrot.slane %v6145_v4, 4  ;;  %v6150_v58 = vrot.slane %v6148_v46, 5 }
 0x2cf   : >> { %8359 = vmatmul.mubr.bf16.gmra.mxu1 %v7388_v35 }
 0x2d0   : >> { %8362 = vmatprep.mubr.bf16.mxu1 %v7389_v12  ;;  %v6143_v32 = vsel %vm9286_vm5, %v6141_v59, %v6142_v62  ;;  %v6151_v8 = vsel %vm9286_vm5, %v6146_v53, %v6150_v58 }
 0x2d1   : >> { %v7392_v36 = vcombine.low %v6143_v32, %v6151_v8 }
 0x2d7   : >> { %8363 = vmatmul.mubr.bf16.gmra.mxu1 %v7390_v60 }
 0x2d8   : >> { %8366 = vmatprep.mubr.bf16.mxu1 %v7391_v61 }
 0x2df   : >> { %8367 = vmatmul.mubr.bf16.gmra.mxu1 %v7392_v36 }
 0x2ff   : >> { %v8100_v63 = vpop.f32.mrf.mxu1 }
 0x301   : >> { %v3868_v54 = vpop.f32.mrf.mxu1 }
 0x303   : >> { %v8101_v9 = vpop.f32.mrf.mxu1 }
 0x305   : >> { %v3871_v29 = vpop.f32.mrf.mxu1 }
 0x306   : >> { %v8132_v19 = vpop.f32.mrf.mxu0 }
 0x307   : >> { %v4054_v39 = vadd.f32 %v8132_v19, %v8100_v63 }
 0x308   : >> { %v8104_v44 = vpop.f32.mrf.mxu1  ;;  %v4045_v57 = vpop.f32.mrf.mxu0 }
 0x309   : >> { %v4046_v43 = vadd.f32 %v4045_v57, %v3868_v54 }
 0x30a   : >> { %v3884_v10 = vpop.f32.mrf.mxu1  ;;  %v8133_v45 = vpop.f32.mrf.mxu0 }
 0x30b   : >> { %v4057_v49 = vadd.f32 %v8133_v45, %v8101_v9 }
 0x30c   : >> { %v8105_v41 = vpop.f32.mrf.mxu1  ;;  %v4048_v42 = vpop.f32.mrf.mxu0 }
 0x30d   : >> { %v4049_v5 = vadd.f32 %v4048_v42, %v3871_v29 }
 0x30e   : >> { %v3887_v51 = vpop.f32.mrf.mxu1  ;;  %v8136_v48 = vpop.f32.mrf.mxu0 }
 0x30f   : >> { %v4070_v28 = vadd.f32 %v8136_v48, %v8104_v44 }
 0x310   : >> { %v4061_v31 = vpop.f32.mrf.mxu0 }
 0x311   : >> { %v4062_v50 = vadd.f32 %v4061_v31, %v3884_v10 }
 0x312   : >> { %v8108_v15 = vpop.f32.mrf.mxu1  ;;  %v8137_v14 = vpop.f32.mrf.mxu0 }
 0x313   : >> { %v4073_v21 = vadd.f32 %v8137_v14, %v8105_v41 }
 0x314   : >> { %v3900_v16 = vpop.f32.mrf.mxu1  ;;  %v4064_v26 = vpop.f32.mrf.mxu0 }
 0x315   : >> { %v4065_v47 = vadd.f32 %v4064_v26, %v3887_v51 }
 0x316   : >> { %v8109_v37 = vpop.f32.mrf.mxu1  ;;  %v8140_v40 = vpop.f32.mrf.mxu0 }
 0x317   : >> { %v4086_v17 = vadd.f32 %v8140_v40, %v8108_v15 }
 0x318   : >> { %v3903_v34 = vpop.f32.mrf.mxu1  ;;  %v4077_v22 = vpop.f32.mrf.mxu0 }
 0x319   : >> { %v4078_v55 = vadd.f32 %v4077_v22, %v3900_v16 }
 0x31a   : >> { %v8141_v6 = vpop.f32.mrf.mxu0 }
 0x31b   : >> { %v4089_v20 = vadd.f32 %v8141_v6, %v8109_v37 }
 0x31c   : >> { %v8112_v13 = vpop.f32.mrf.mxu1  ;;  %v4080_v12 = vpop.f32.mrf.mxu0 }
 0x31d   : >> { %v4081_v1 = vadd.f32 %v4080_v12, %v3903_v34 }
 0x31e   : >> { %v3916_v52 = vpop.f32.mrf.mxu1  ;;  %v8144_v38 = vpop.f32.mrf.mxu0 }
 0x31f   : >> { %v4102_v23 = vadd.f32 %v8144_v38, %v8112_v13 }
 0x320   : >> { %v8113_v35 = vpop.f32.mrf.mxu1  ;;  %v4093_v3 = vpop.f32.mrf.mxu0 }
 0x321   : >> { %v4094_v2 = vadd.f32 %v4093_v3, %v3916_v52 }
 0x322   : >> { %v3919_v56 = vpop.f32.mrf.mxu1  ;;  %v8145_v11 = vpop.f32.mrf.mxu0 }
 0x323   : >> { %v4105_v18 = vadd.f32 %v8145_v11, %v8113_v35 }
 0x324   : >> { %v8164_v24 = vpop.f32.mrf.mxu1  ;;  %v4096_v4 = vpop.f32.mrf.mxu0 }
 0x325   : >> { %v11815_v62 = vadd.f32 %v8164_v24, %v4054_v39  ;;  %v4097_v46 = vadd.f32 %v4096_v4, %v3919_v56 }
 0x326   : >> { %v4350_v7 = vpop.f32.mrf.mxu1  ;;  %v11823_v60 = vpop.f32.mrf.mxu0 }
 0x327   : >> { %v11817_v27 = vadd.f32 %v4350_v7, %v4046_v43 }
 0x328   : >> { %v8165_v30 = vpop.f32.mrf.mxu1  ;;  %v11827_v53 = vpop.f32.mrf.mxu0 }
 0x329   : >> { %v11819_v33 = vadd.f32 %v8165_v30, %v4057_v49 }
 0x32a   : >> { %v4353_v25 = vpop.f32.mrf.mxu1  ;;  %v11831_v8 = vpop.f32.mrf.mxu0 }
 0x32b   : >> { %v11821_v0 = vadd.f32 %v4353_v25, %v4049_v5 }
 0x32c   : >> { %v8168_v61 = vpop.f32.mrf.mxu1  ;;  %v11835_v54 = vpop.f32.mrf.mxu0 }
 0x32d   : >> { %v11825_v59 = vadd.f32 %v8168_v61, %v4070_v28 }
 0x32e   : >> { %v4366_v58 = vpop.f32.mrf.mxu1  ;;  %v11839_v19 = vpop.f32.mrf.mxu0 }
 0x32f   : >> { %v11829_v32 = vadd.f32 %v4366_v58, %v4062_v50 }
 0x330   : >> { %v8169_v36 = vpop.f32.mrf.mxu1  ;;  %v11843_v57 = vpop.f32.mrf.mxu0 }
 0x331   : >> { %v11833_v63 = vadd.f32 %v8169_v36, %v4073_v21 }
 0x332   : >> { %v4369_v9 = vpop.f32.mrf.mxu1  ;;  %v11847_v45 = vpop.f32.mrf.mxu0 }
 0x333   : >> { %v11837_v29 = vadd.f32 %v4369_v9, %v4065_v47 }
 0x334   : >> { %v8172_v39 = vpop.f32.mrf.mxu1  ;;  %v11851_v42 = vpop.f32.mrf.mxu0 }
 0x335   : >> { %v11841_v44 = vadd.f32 %v8172_v39, %v4086_v17 }
 0x336   : >> { %v4382_v43 = vpop.f32.mrf.mxu1 }
 0x337   : >> { %v11845_v10 = vadd.f32 %v4382_v43, %v4078_v55 }
 0x338   : >> { %v8173_v49 = vpop.f32.mrf.mxu1  ;;  %v11855_v48 = vpop.f32.mrf.mxu0 }
 0x339   : >> { %v11849_v41 = vadd.f32 %v8173_v49, %v4089_v20 }
 0x33a   : >> { %v4385_v5 = vpop.f32.mrf.mxu1  ;;  %v11859_v31 = vpop.f32.mrf.mxu0 }
 0x33b   : >> { %v11853_v51 = vadd.f32 %v4385_v5, %v4081_v1 }
 0x33c   : >> { %v8176_v28 = vpop.f32.mrf.mxu1  ;;  %v11863_v14 = vpop.f32.mrf.mxu0 }
 0x33d   : >> { %v11857_v15 = vadd.f32 %v8176_v28, %v4102_v23 }
 0x33e   : >> { %v4398_v50 = vpop.f32.mrf.mxu1  ;;  %v11867_v26 = vpop.f32.mrf.mxu0 }
 0x33f   : >> { %v11861_v16 = vadd.f32 %v4398_v50, %v4094_v2 }
 0x340   : >> { %v8177_v21 = vpop.f32.mrf.mxu1 }
 0x341   : >> { %v11865_v37 = vadd.f32 %v8177_v21, %v4105_v18 }
 0x342   : >> { %v4401_v47 = vpop.f32.mrf.mxu1 }
 0x343   : >> { %v11869_v34 = vadd.f32 %v4401_v47, %v4097_v46 }
 0x344   : >> { %v11871_v40 = vpop.f32.mrf.mxu0  ;;  %v8228_v17 = vpop.f32.mrf.mxu1 }
 0x346   : >> { %v11873_v13 = vpop.f32.mrf.mxu0  ;;  %v11875_v22 = vpop.f32.mrf.mxu1 }
 0x348   : >> { %v11877_v55 = vpop.f32.mrf.mxu0  ;;  %v11879_v52 = vpop.f32.mrf.mxu1 }
 0x34a   : >> { %v11881_v6 = vpop.f32.mrf.mxu0  ;;  %v11883_v20 = vpop.f32.mrf.mxu1 }
 0x34c   : >> { %v8260_v35 = vpop.f32.mrf.mxu0  ;;  %v11885_v12 = vpop.f32.mrf.mxu1 }
 0x34e   : >> { %v11887_v1 = vpop.f32.mrf.mxu0  ;;  %v11889_v56 = vpop.f32.mrf.mxu1 }
 0x350   : >> { %v11891_v38 = vpop.f32.mrf.mxu0  ;;  %v11893_v23 = vpop.f32.mrf.mxu1 }
 0x352   : >> { %v11895_v24 = vpop.f32.mrf.mxu0  ;;  %v11897_v3 = vpop.f32.mrf.mxu1 }
 0x354   : >> { %v11899_v2 = vpop.f32.mrf.mxu0  ;;  %v11901_v7 = vpop.f32.mrf.mxu1 }
 0x356   : >> { %v11903_v11 = vpop.f32.mrf.mxu0  ;;  %v11905_v18 = vpop.f32.mrf.mxu1 }
 0x358   : >> { %v11907_v30 = vpop.f32.mrf.mxu0  ;;  %v11909_v4 = vpop.f32.mrf.mxu1 }
 0x359   : >> { %12427 = vst [vmem:[#allocation40_spill] sm:$0xff] %v11907_v30  ;;  %12428 = vst [vmem:[#allocation18_spill] sm:$0xff] %v11909_v4 }
 0x35a   : >> { %v11911_v46 = vpop.f32.mrf.mxu0  ;;  %v11913_v25 = vpop.f32.mrf.mxu1 }
 0x35b   : >> { %12429 = vst [vmem:[#allocation19_spill] sm:$0xff] %v11911_v46  ;;  %12430 = vst [vmem:[#allocation20_spill] sm:$0xff] %v11913_v25 }
 0x35c   : >> { %v11915_v61 = vpop.f32.mrf.mxu0 }
 0x35d   : >> { %12431 = vst [vmem:[#allocation43_spill] sm:$0xff] %v11915_v61 }
 0x35e   : >> { %v11919_v36 = vpop.f32.mrf.mxu0 }
 0x35f   : >> { %v11917_v58 = vpop.f32.mrf.mxu1  ;;  %12433 = vst [vmem:[#allocation22_spill] sm:$0xff] %v11919_v36 }
 0x360   : >> { %12432 = vst [vmem:[#allocation42_spill] sm:$0xff] %v11917_v58  ;;  %v11923_v39 = vpop.f32.mrf.mxu0 }
 0x361   : >> { %v11921_v9 = vpop.f32.mrf.mxu1  ;;  %12435 = vst [vmem:[#allocation46_spill] sm:$0xff] %v11923_v39 }
 0x362   : >> { %12434 = vst [vmem:[#allocation21_spill] sm:$0xff] %v11921_v9  ;;  %v11927_v49 = vpop.f32.mrf.mxu0 }
 0x363   : >> { %v11925_v43 = vpop.f32.mrf.mxu1  ;;  %12437 = vst [vmem:[#allocation25_spill] sm:$0xff] %v11927_v49 }
 0x364   : >> { %12436 = vst [vmem:[#allocation23_spill] sm:$0xff] %v11925_v43  ;;  %v11931_v28 = vpop.f32.mrf.mxu0 }
 0x365   : >> { %v11929_v5 = vpop.f32.mrf.mxu1  ;;  %12439 = vst [vmem:[#allocation26_spill] sm:$0xff] %v11931_v28 }
 0x366   : >> { %12438 = vst [vmem:[#allocation24_spill] sm:$0xff] %v11929_v5  ;;  %v11933_v21 = vpop.f32.mrf.mxu0 }
 0x367   : >> { %v8292_v50 = vpop.f32.mrf.mxu1  ;;  %12440 = vst [vmem:[#allocation27_spill] sm:$0xff] %v11933_v21 }
 0x368   : >> { %v11935_v61 = vpop.f32.mrf.mxu0 }
 0x369   : >> { %v5736_v47 = vpop.f32.mrf.mxu1  ;;  %12441 = vst [vmem:[#allocation48_spill] sm:$0xff] %v11935_v61 }
 0x36a   : >> { %v11937_v36 = vpop.f32.mrf.mxu0 }
 0x36b   : >> { %v8293_v58 = vpop.f32.mrf.mxu1  ;;  %12442 = vst [vmem:[#allocation29_spill] sm:$0xff] %v11937_v36 }
 0x36c   : >> { %v8324_v39 = vpop.f32.mrf.mxu0 }
 0x36d   : >> { %v11939_v9 = vpop.f32.mrf.mxu1 }
 0x36e   : >> { %12443 = vst [vmem:[#allocation28_spill] sm:$0xff] %v11939_v9  ;;  %v5961_v43 = vpop.f32.mrf.mxu0 }
 0x36f   : >> { %v11941_v25 = vpop.f32.mrf.mxu1 }
 0x370   : >> { %12444 = vst [vmem:[#allocation47_spill] sm:$0xff] %v11941_v25  ;;  %v8325_v5 = vpop.f32.mrf.mxu0 }
 0x371   : >> { %v11943_v49 = vpop.f32.mrf.mxu1 }
 0x372   : >> { %12445 = vst [vmem:[#allocation49_spill] sm:$0xff] %v11943_v49  ;;  %v11947_v28 = vpop.f32.mrf.mxu0 }
 0x373   : >> { %v11945_v46 = vpop.f32.mrf.mxu1  ;;  %12447 = vst [vmem:[#allocation31_spill] sm:$0xff] %v11947_v28 }
 0x374   : >> { %12446 = vst [vmem:[#allocation52_spill] sm:$0xff] %v11945_v46  ;;  %v11951_v4 = vpop.f32.mrf.mxu0  ;;  %v4835_v46 = vadd.f32 %v11823_v60, %v11815_v62  ;;  %v4837_v62 = vadd.f32 %v11843_v57, %v11829_v32  ;;  %v4842_v32 = vadd.f32 %v11867_v26, %v11853_v51  ;;  %v12015_v51 = vadd.f32 %v11881_v6, %v11869_v34 }
 0x375   : >> { %v11949_v21 = vpop.f32.mrf.mxu1  ;;  %12449 = vst [vmem:[#allocation32_spill] sm:$0xff] %v11951_v4 }
 0x376   : >> { %12448 = vst [vmem:[#allocation30_spill] sm:$0xff] %v11949_v21  ;;  %v11955_v36 = vpop.f32.mrf.mxu0  ;;  %v4833_v21 = vadd.f32 %v11827_v53, %v11817_v27  ;;  %v5060_v4 = vadd.f32 %v8228_v17, %v4835_v46  ;;  %v4840_v27 = vadd.f32 %v11847_v45, %v11833_v63  ;;  %v12008_v45 = vadd.f32 %v11877_v55, %v11865_v37 }
 0x377   : >> { %v11953_v61 = vpop.f32.mrf.mxu1 }
 0x378   : >> { %12450 = vst [vmem:[#allocation33_spill] sm:$0xff] %v11953_v61  ;;  %v11961_v25 = vpop.f32.mrf.mxu0  ;;  %v5058_v60 = vadd.f32 %v11875_v22, %v4833_v21  ;;  %v5381_v53 = vadd.f32 %v8260_v35, %v5060_v4  ;;  %v5065_v37 = vadd.f32 %v11893_v23, %v4840_v27  ;;  %v12032_v23 = vld [vmem:[%s472_s22] ss:$0 sm:$0xff] }
 0x379   : >> { %v11957_v30 = vpop.f32.mrf.mxu1  ;;  %12453 = vst [vmem:[#allocation36_spill] sm:$0xff] %v11961_v25 }
 0x37a   : >> { %12451 = vst [vmem:[#allocation34_spill] sm:$0xff] %v11957_v30  ;;  %v11971_v61 = vpop.f32.mrf.mxu0  ;;  %v4836_v30 = vadd.f32 %v11831_v8, %v11819_v33  ;;  %v4838_v33 = vadd.f32 %v11851_v42, %v11837_v29  ;;  %v4844_v8 = vadd.f32 %v11863_v14, %v11849_v41  ;;  %v5801_v57 = vadd.f32 %v8292_v50, %v5381_v53 }
 0x37b   : >> { %v11959_v9 = vpop.f32.mrf.mxu1 }
 0x37c   : >> { %12452 = vst [vmem:[#allocation35_spill] sm:$0xff] %v11959_v9  ;;  %v4834_v9 = vadd.f32 %v11835_v54, %v11821_v0  ;;  %v4843_v0 = vadd.f32 %v11855_v48, %v11841_v44  ;;  %v5061_v63 = vadd.f32 %v11879_v52, %v4836_v30  ;;  %v12000_v29 = vpop.f32.mrf.mxu0  ;;  %v4847_v44 = vadd.f32 %v11871_v40, %v11857_v15  ;;  %v12456_v30 = vld [vmem:[#allocation40_spill] sm:$0xff] }
 0x37d   : >> { %v11963_v49 = vpop.f32.mrf.mxu1  ;;  %v6026_v14 = vadd.f32 %v8324_v39, %v5801_v57  ;;  %v5063_v17 = vadd.f32 %v11897_v3, %v4838_v33  ;;  %v5386_v4 = vadd.f32 %v12456_v30, %v5065_v37  ;;  %v12463_v33 = vld [vmem:[#allocation47_spill] sm:$0xff] }
 0x37e   : >> { %12454 = vst [vmem:[#allocation37_spill] sm:$0xff] %v11963_v49  ;;  %v4839_v49 = vadd.f32 %v11839_v19, %v11825_v59  ;;  %v4841_v59 = vadd.f32 %v11859_v31, %v11845_v10  ;;  %v5379_v19 = vadd.f32 %v11887_v1, %v5058_v60  ;;  %v4845_v10 = vadd.f32 %v11873_v13, %v11861_v16  ;;  %v12023_v34 = vpop.f32.mrf.mxu0  ;;  %v12455_v1 = vld [vmem:[#allocation28_spill] sm:$0xff]  ;;  %v12462_v60 = vld [vmem:[#allocation42_spill] sm:$0xff] }
 0x37f   : >> { %v11967_v28 = vpop.f32.mrf.mxu1  ;;  %v5059_v41 = vadd.f32 %v11883_v20, %v4834_v9  ;;  %v5382_v48 = vadd.f32 %v11891_v38, %v5061_v63  ;;  %v5062_v16 = vadd.f32 %v11889_v56, %v4837_v62  ;;  %v5068_v6 = vadd.f32 %v11901_v7, %v4843_v0  ;;  %v12458_v7 = vld [vmem:[#allocation19_spill] sm:$0xff]  ;;  %v12459_v9 = vld [vmem:[#allocation20_spill] sm:$0xff] }
 0x380   : >> { %v5799_v31 = vadd.f32 %v5736_v47, %v5379_v19  ;;  %v5064_v15 = vadd.f32 %v11885_v12, %v4839_v49  ;;  %v5066_v35 = vadd.f32 %v11905_v18, %v4841_v59  ;;  %v12460_v18 = vld [vmem:[#allocation31_spill] sm:$0xff]  ;;  %v12040_v49 = vpop.f32.mrf.mxu0  ;;  %v5072_v53 = vadd.f32 %v12462_v60, %v4847_v44  ;;  %v12464_v59 = vld [vmem:[#allocation49_spill] sm:$0xff] }
 0x381   : >> { %v11979_v25 = vpop.f32.mrf.mxu1  ;;  %v5380_v26 = vadd.f32 %v11895_v24, %v5059_v41  ;;  %v5802_v13 = vadd.f32 %v8293_v58, %v5382_v48  ;;  %v5383_v20 = vadd.f32 %v11903_v11, %v5062_v16  ;;  %v5384_v58 = vadd.f32 %v12458_v7, %v5063_v17  ;;  %v12461_v62 = vld [vmem:[#allocation43_spill] sm:$0xff]  ;;  %v12465_v48 = vld [vmem:[#allocation22_spill] sm:$0xff]  ;;  %v12467_v16 = vld [vmem:[#allocation32_spill] sm:$0xff] }
 0x382   : >> { %v6024_v22 = vadd.f32 %v5961_v43, %v5799_v31  ;;  %v5385_v52 = vadd.f32 %v11899_v2, %v5064_v15  ;;  %v12457_v2 = vld [vmem:[#allocation18_spill] sm:$0xff]  ;;  %v5067_v11 = vadd.f32 %v12459_v9, %v4842_v32  ;;  %v5389_v27 = vadd.f32 %v12461_v62, %v5068_v6  ;;  %v12472_v7 = vld [vmem:[#allocation33_spill] sm:$0xff]  ;;  %v12473_v62 = vld [vmem:[#allocation23_spill] sm:$0xff] }
 0x383   : >> { %v11994_v54 = vpop.f32.mrf.mxu1  ;;  %v5800_v56 = vadd.f32 %v12455_v1, %v5380_v26  ;;  %v6027_v38 = vadd.f32 %v8325_v5, %v5802_v13  ;;  %v5069_v46 = vadd.f32 %v12457_v2, %v4844_v8  ;;  %v12044_v5 = vld [vmem:[%s474_s26] ss:$0 sm:$0xff]  ;;  %v5803_v8 = vadd.f32 %v12464_v59, %v5383_v20 }
 0x384   : >> { %v5805_v0 = vadd.f32 %v12463_v33, %v5385_v52  ;;  %v5387_v31 = vadd.f32 %v12465_v48, %v5066_v35  ;;  %v12468_v52 = vld [vmem:[#allocation21_spill] sm:$0xff]  ;;  %v12469_v20 = vld [vmem:[#allocation30_spill] sm:$0xff]  ;;  %v12470_v35 = vld [vmem:[#allocation36_spill] sm:$0xff]  ;;  %v5809_v9 = vadd.f32 %v12472_v7, %v5389_v27  ;;  %v5073_v60 = vadd.f32 %v12473_v62, %v12008_v45 }
 0x385   : >> { %v12011_v42 = vpop.f32.mrf.mxu1  ;;  %v6025_v43 = vadd.f32 %v12460_v18, %v5800_v56  ;;  %v6028_v44 = vadd.f32 %v11955_v36, %v5803_v8  ;;  %v5070_v6 = vadd.f32 %v12468_v52, %v4845_v10  ;;  %v12474_v33 = vld [vmem:[#allocation25_spill] sm:$0xff]  ;;  %v12477_v45 = vld [vmem:[#allocation35_spill] sm:$0xff]  ;;  %v12480_v7 = vld [vmem:[#allocation24_spill] sm:$0xff] }
 0x386   : >> { %v6030_v37 = vadd.f32 %v12467_v16, %v5805_v0  ;;  %v6034_v27 = vadd.f32 %v12000_v29, %v5809_v9  ;;  %v5071_v9 = vadd.f32 %v12480_v7, %v12015_v51  ;;  %v12482_v62 = vld [vmem:[#allocation29_spill] sm:$0xff] }
 0x387   : >> { %v8356_v40 = vpop.f32.mrf.mxu1 }
 0x388   : >> { %v6347_v55 = vadd.f32 %v8356_v40, %v6026_v14  ;;  %v12466_v14 = vld [vmem:[#allocation52_spill] sm:$0xff]  ;;  %v5996_v40 = vpop.f32.mrf.mxu0 }
 0x389   : >> { %v6282_v12 = vpop.f32.mrf.mxu1  ;;  %v5806_v15 = vadd.f32 %v12466_v14, %v5386_v4  ;;  %v12471_v4 = vld [vmem:[#allocation46_spill] sm:$0xff] }
 0x38a   : >> { %v6363_v24 = vmul.f32 %v12032_v23, %v6347_v55  ;;  %v6345_v3 = vadd.f32 %v6282_v12, %v6024_v22  ;;  %v5804_v12 = vadd.f32 %v12469_v20, %v5384_v58  ;;  %v5390_v2 = vadd.f32 %v12471_v4, %v5069_v46  ;;  %v8336_v18 = vpop.f32.mrf.mxu0 }
 0x38b   : >> { %v8357_v39 = vpop.f32.mrf.mxu1  ;;  %v6031_v1 = vadd.f32 %v12470_v35, %v5806_v15  ;;  %v5388_v46 = vadd.f32 %v12474_v33, %v5067_v11  ;;  %v5392_v33 = vadd.f32 %v12482_v62, %v5071_v9 }
 0x38c   : >> { %v6379_v50 = vadd.f32 %v12044_v5, %v6363_v24  ;;  %v6361_v21 = vmul.f32 %v12032_v23, %v6345_v3  ;;  %v6348_v47 = vadd.f32 %v8357_v39, %v6027_v38  ;;  %v6029_v10 = vadd.f32 %v11971_v61, %v5804_v12  ;;  %v6009_v16 = vpop.f32.mrf.mxu0 }
 0x38d   : >> { %v6285_v32 = vpop.f32.mrf.mxu1  ;;  %v5810_v14 = vadd.f32 %v12477_v45, %v5390_v2 }
 0x38e   : >> { %v6395_v63 = vmax.f32 %v6379_v50, 0.0  ;;  %v6377_v19 = vadd.f32 %v12044_v5, %v6361_v21  ;;  %v6364_v57 = vmul.f32 %v12032_v23, %v6348_v47  ;;  %v6346_v41 = vadd.f32 %v6285_v32, %v6025_v43 }
 0x38f   : >> { %v8360_v26 = vpop.f32.mrf.mxu1 }
 0x390   : >> { %v7474_v17 = vpack.c.bf16 %v6395_v63, %v6395_v63  ;;  %v6393_v13 = vmax.f32 %v6377_v19, 0.0  ;;  %v6380_v22 = vadd.f32 %v12044_v5, %v6364_v57  ;;  %v6362_v55 = vmul.f32 %v12032_v23, %v6346_v41  ;;  %v12475_v19 = vld [vmem:[#allocation26_spill] sm:$0xff] }
 0x391   : >> { %v6351_v56 = vadd.f32 %v8360_v26, %v6030_v37  ;;  %v6298_v38 = vpop.f32.mrf.mxu1  ;;  %v5393_v57 = vadd.f32 %v12475_v19, %v5072_v53  ;;  %v12476_v41 = vld [vmem:[#allocation34_spill] sm:$0xff] }
 0x392   : >> { %7420 = vst [vmem:[%s10611_s29 + $0xa4] sm:$0xf] %v7474_v17  ;;  %v7472_v24 = vpack.c.bf16 %v6393_v13, %v6393_v13  ;;  %v6396_v36 = vmax.f32 %v6380_v22, 0.0  ;;  %v6378_v3 = vadd.f32 %v12044_v5, %v6362_v55  ;;  %v6349_v30 = vadd.f32 %v6298_v38, %v6028_v44  ;;  %v12478_v17 = vld [vmem:[#allocation37_spill] sm:$0xff] }
 0x393   : >> { %v6367_v39 = vmul.f32 %v12032_v23, %v6351_v56  ;;  %v8361_v58 = vpop.f32.mrf.mxu1  ;;  %v5807_v48 = vadd.f32 %v12476_v41, %v5387_v31  ;;  %v5808_v13 = vadd.f32 %v12478_v17, %v5388_v46  ;;  %v6035_v31 = vadd.f32 %v12040_v49, %v5810_v14 }
 0x394   : >> { %7418 = vst [vmem:[%s10611_s29 + $0x94] sm:$0xf] %v7472_v24  ;;  %v7475_v43 = vpack.c.bf16 %v6396_v36, %v6396_v36  ;;  %v6394_v50 = vmax.f32 %v6378_v3, 0.0  ;;  %v6365_v21 = vmul.f32 %v12032_v23, %v6349_v30  ;;  %v6352_v47 = vadd.f32 %v8361_v58, %v6031_v1  ;;  %v12479_v1 = vld [vmem:[#allocation27_spill] sm:$0xff] }
 0x395   : >> { %v6383_v61 = vadd.f32 %v12044_v5, %v6367_v39  ;;  %v6301_v0 = vpop.f32.mrf.mxu1  ;;  %v6032_v53 = vadd.f32 %v12023_v34, %v5807_v48  ;;  %v5391_v56 = vadd.f32 %v12479_v1, %v5070_v6  ;;  %v5813_v38 = vadd.f32 %v11967_v28, %v5393_v57  ;;  %v8337_v34 = vpop.f32.mrf.mxu0 }
 0x396   : >> { %7421 = vst [vmem:[%s10611_s29 + $0xa8] sm:$0xf] %v7475_v43  ;;  %v7473_v59 = vpack.c.bf16 %v6394_v50, %v6394_v50  ;;  %v6381_v8 = vadd.f32 %v12044_v5, %v6365_v21  ;;  %v6368_v32 = vmul.f32 %v12032_v23, %v6352_v47  ;;  %v6350_v63 = vadd.f32 %v6301_v0, %v6029_v10  ;;  %v12481_v21 = vld [vmem:[#allocation48_spill] sm:$0xff] }
 0x397   : >> { %v6399_v15 = vmax.f32 %v6383_v61, 0.0  ;;  %v8364_v11 = vpop.f32.mrf.mxu1  ;;  %v6033_v24 = vadd.f32 %v5996_v40, %v5808_v13  ;;  %v5811_v6 = vadd.f32 %v11979_v25, %v5391_v56  ;;  %v6038_v10 = vadd.f32 %v8336_v18, %v5813_v38  ;;  %v6012_v25 = vpop.f32.mrf.mxu0 }
 0x398   : >> { %7419 = vst [vmem:[%s10611_s29 + $0x98] sm:$0xf] %v7473_v59  ;;  %v6397_v29 = vmax.f32 %v6381_v8, 0.0  ;;  %v6384_v37 = vadd.f32 %v12044_v5, %v6368_v32  ;;  %v6366_v44 = vmul.f32 %v12032_v23, %v6350_v63  ;;  %v6355_v26 = vadd.f32 %v8364_v11, %v6034_v27 }
 0x399   : >> { %v7478_v22 = vpack.c.bf16 %v6399_v15, %v6399_v15  ;;  %v6314_v55 = vpop.f32.mrf.mxu1  ;;  %v5394_v47 = vadd.f32 %v12481_v21, %v5073_v60  ;;  %v6036_v46 = vadd.f32 %v6009_v16, %v5811_v6  ;;  %v5812_v32 = vadd.f32 %v12011_v42, %v5392_v33  ;;  %v6492_v21 = vld [vmem:[#allocation5] sm:$0xf] (%p461_p5) }
 0x39a   : >> { %v7476_v52 = vpack.c.bf16 %v6397_v29, %v6397_v29  ;;  %v6400_v20 = vmax.f32 %v6384_v37, 0.0  ;;  %v6382_v12 = vadd.f32 %v12044_v5, %v6366_v44  ;;  %v6371_v35 = vmul.f32 %v12032_v23, %v6355_v26 }
 0x39b   : >> { %7424 = vst [vmem:[%s10611_s29 + $0xc4] sm:$0xf] %v7478_v22  ;;  %v6353_v36 = vadd.f32 %v6314_v55, %v6032_v53  ;;  %v8365_v3 = vpop.f32.mrf.mxu1  ;;  %v5814_v8 = vadd.f32 %v11994_v54, %v5394_v47  ;;  %v6037_v14 = vadd.f32 %v6012_v25, %v5812_v32 }
 0x39c   : >> { %7422 = vst [vmem:[%s10611_s29 + $0xb4] sm:$0xf] %v7476_v52  ;;  %v7479_v49 = vpack.c.bf16 %v6400_v20, %v6400_v20  ;;  %v6398_v30 = vmax.f32 %v6382_v12, 0.0  ;;  %v6387_v4 = vadd.f32 %v12044_v5, %v6371_v35  ;;  %v6356_v2 = vadd.f32 %v8365_v3, %v6035_v31 }
 0x39d   : >> { %v6369_v28 = vmul.f32 %v12032_v23, %v6353_v36  ;;  %v6317_v40 = vpop.f32.mrf.mxu1  ;;  %v6039_v45 = vadd.f32 %v8337_v34, %v5814_v8  ;;  %v12483_v36 = vmov (%p461_p5), 0   ;;  %v8826_v3 = vmov (%p461_p5), 0.0  }
 0x39e   : >> { %7425 = vst [vmem:[%s10611_s29 + $0xc8] sm:$0xf] %v7479_v49  ;;  %v7477_v39 = vpack.c.bf16 %v6398_v30, %v6398_v30  ;;  %v6403_v58 = vmax.f32 %v6387_v4, 0.0  ;;  %v6372_v43 = vmul.f32 %v12032_v23, %v6356_v2  ;;  %v6354_v50 = vadd.f32 %v6317_v40, %v6033_v24  ;;  %8668 = vset.pattern.permute.xlu0 (%p461_p5), %v12483_v36  ;;  %v6493_v2 = vld [vmem:[%s12141_s3] sm:$0xff] (%p461_p5) }
 0x39f   : >> { %v6385_v51 = vadd.f32 %v12044_v5, %v6369_v28  ;;  %v8368_v27 = vpop.f32.mrf.mxu1  ;;  %8370 = vmatprep.subr.bf16.mxu0 (%p461_p5), %v8826_v3  ;;  %8390 = vmatprep.subr.bf16.mxu1 (%p461_p5), %v8826_v3 }
 0x3a0   : >> { %7423 = vst [vmem:[%s10611_s29 + $0xb8] sm:$0xf] %v7477_v39  ;;  %v7482_v18 = vpack.c.bf16 %v6403_v58, %v6403_v58  ;;  %v6388_v61 = vadd.f32 %v12044_v5, %v6372_v43  ;;  %v6370_v0 = vmul.f32 %v12032_v23, %v6354_v50  ;;  %v6359_v59 = vadd.f32 %v8368_v27, %v6038_v10 }
 0x3a1   : >> { %v6401_v60 = vmax.f32 %v6385_v51, 0.0  ;;  %v6330_v63 = vpop.f32.mrf.mxu1  ;;  %8386 = vmatprep.mubr.msk.bf16.mxu0 (%p461_p5), %vm8827_vm6, %v8826_v3  ;;  %8406 = vmatprep.mubr.msk.bf16.mxu1 (%p461_p5), %vm8827_vm6, %v8826_v3 }
 0x3a2   : >> { %7428 = vst [vmem:[%s10611_s29 + $0xe4] sm:$0xf] %v7482_v18  ;;  %v6404_v19 = vmax.f32 %v6388_v61, 0.0  ;;  %v6386_v57 = vadd.f32 %v12044_v5, %v6370_v0  ;;  %v6375_v41 = vmul.f32 %v12032_v23, %v6359_v59  ;;  %v6357_v48 = vadd.f32 %v6330_v63, %v6036_v46  ;;  %6512 = vperm.xlu0 (%p461_p5), %8668, %v6493_v2  }
 0x3a3   : >> { %v7480_v15 = vpack.c.bf16 %v6401_v60, %v6401_v60  ;;  %v8369_v11 = vpop.f32.mrf.mxu1 }
 0x3a4   : >> { %v7483_v16 = vpack.c.bf16 %v6404_v19, %v6404_v19  ;;  %v6402_v54 = vmax.f32 %v6386_v57, 0.0  ;;  %v6391_v42 = vadd.f32 %v12044_v5, %v6375_v41  ;;  %v6373_v29 = vmul.f32 %v12032_v23, %v6357_v48 }
 0x3a5   : >> { %7426 = vst [vmem:[%s10611_s29 + $0xd4] sm:$0xf] %v7480_v15  ;;  %v6360_v37 = vadd.f32 %v8369_v11, %v6039_v45  ;;  %v6333_v44 = vpop.f32.mrf.mxu1 }
 0x3a6   : >> { %7429 = vst [vmem:[%s10611_s29 + $0xe8] sm:$0xf] %v7483_v16  ;;  %v7481_v26 = vpack.c.bf16 %v6402_v54, %v6402_v54  ;;  %v6407_v17 = vmax.f32 %v6391_v42, 0.0  ;;  %v6389_v13 = vadd.f32 %v12044_v5, %v6373_v29  ;;  %v6358_v53 = vadd.f32 %v6333_v44, %v6037_v14 }
 0x3a7   : >> { %v6376_v31 = vmul.f32 %v12032_v23, %v6360_v37 }
 0x3a8   : >> { %7427 = vst [vmem:[%s10611_s29 + $0xd8] sm:$0xf] %v7481_v26  ;;  %v7486_v22 = vpack.c.bf16 %v6407_v17, %v6407_v17  ;;  %v6405_v55 = vmax.f32 %v6389_v13, 0.0  ;;  %v6374_v52 = vmul.f32 %v12032_v23, %v6358_v53 }
 0x3a9   : >> { %v6392_v20 = vadd.f32 %v12044_v5, %v6376_v31 }
 0x3aa   : >> { %7432 = vst [vmem:[%s10611_s29 + $0x104] sm:$0xf] %v7486_v22  ;;  %v7484_v12 = vpack.c.bf16 %v6405_v55, %v6405_v55  ;;  %v6390_v35 = vadd.f32 %v12044_v5, %v6374_v52 }
 0x3ab   : >> { %v6408_v1 = vmax.f32 %v6392_v20, 0.0 }
 0x3ac   : >> { %7430 = vst [vmem:[%s10611_s29 + $0xf4] sm:$0xf] %v7484_v12  ;;  %v6406_v56 = vmax.f32 %v6390_v35, 0.0  ;;  %463 = sbr.rel (!%p461_p5) target bundleno = 119 (0x77), region = 115 }
 0x3ad   : >> { %v7487_v38 = vpack.c.bf16 %v6408_v1, %v6408_v1 }
 0x3ae   : >> { %v7485_v24 = vpack.c.bf16 %v6406_v56, %v6406_v56 }
 0x3af   : >> { %7433 = vst [vmem:[%s10611_s29 + $0x108] sm:$0xf] %v7487_v38 }
 0x3b0   : >> { %7431 = vst [vmem:[%s10611_s29 + $0xf8] sm:$0xf] %v7485_v24 }
 0x3b7   : > { %v8669_v23 = vld [vmem:[#allocation2 + $0x1a4] sm:$0xff]   ;;  %v8671_v34 = vld [vmem:[#allocation2 + $0x194] sm:$0xff]  }
 0x3b8   : > { %v8670_v5 = vld [vmem:[#allocation2 + $0x224] sm:$0xff]   ;;  %8371 = vmatpush3.bf16.xpose.msra.mxu0 %v8669_v23  ;;  %v8672_v49 = vld [vmem:[#allocation2 + $0x214] sm:$0xff]  }
 0x3b9   : > { %8391 = vmatpush3.bf16.xpose.msra.mxu1 %v8670_v5  ;;  %8372 = vmatprep.subr.bf16.mxu0 %v8826_v3  ;;  %v8673_v30 = vld [vmem:[#allocation2 + $0x184] sm:$0xff]   ;;  %v8675_v7 = vld [vmem:[#allocation2 + $0x174] sm:$0xff]  }
 0x3ba   : > { %8392 = vmatprep.subr.bf16.mxu1 %v8826_v3  ;;  %v8674_v4 = vld [vmem:[#allocation2 + $0x204] sm:$0xff]   ;;  %v8676_v9 = vld [vmem:[#allocation2 + $0x1f4] sm:$0xff]  }
 0x3bb   : > { %v8677_v6 = vld [vmem:[#allocation2 + $0x164] sm:$0xff]   ;;  %v8679_v28 = vld [vmem:[#allocation2 + $0x154] sm:$0xff]  }
 0x3bc   : > { %v8678_v10 = vld [vmem:[#allocation2 + $0x1e4] sm:$0xff]   ;;  %v8680_v40 = vld [vmem:[#allocation2 + $0x1d4] sm:$0xff]  }
 0x3bd   : > { %v8681_v39 = vld [vmem:[#allocation2 + $0x144] sm:$0xff]   ;;  %v8683_v43 = vld [vmem:[#allocation2 + $0x134] sm:$0xff]  }
 0x3be   : > { %v8682_v58 = vld [vmem:[#allocation2 + $0x1c4] sm:$0xff]   ;;  %v8684_v50 = vld [vmem:[#allocation2 + $0x1b4] sm:$0xff]  }
 0x3c0   : > { %8373 = vmatpush3.bf16.xpose.msra.mxu0 %v8671_v34 }
 0x3c1   : > { %8393 = vmatpush3.bf16.xpose.msra.mxu1 %v8672_v49  ;;  %8374 = vmatprep.subr.bf16.mxu0 %v8826_v3 }
 0x3c2   : > { %8394 = vmatprep.subr.bf16.mxu1 %v8826_v3 }
 0x3c8   : > { %8375 = vmatpush3.bf16.xpose.msra.mxu0 %v8673_v30 }
 0x3c9   : > { %8395 = vmatpush3.bf16.xpose.msra.mxu1 %v8674_v4  ;;  %8376 = vmatprep.subr.bf16.mxu0 %v8826_v3 }
 0x3ca   : > { %8396 = vmatprep.subr.bf16.mxu1 %v8826_v3 }
 0x3d0   : > { %8377 = vmatpush3.bf16.xpose.msra.mxu0 %v8675_v7 }
 0x3d1   : > { %8397 = vmatpush3.bf16.xpose.msra.mxu1 %v8676_v9  ;;  %8378 = vmatprep.subr.bf16.mxu0 %v8826_v3 }
 0x3d2   : > { %8398 = vmatprep.subr.bf16.mxu1 %v8826_v3 }
 0x3d8   : > { %8379 = vmatpush3.bf16.xpose.msra.mxu0 %v8677_v6 }
 0x3d9   : > { %8399 = vmatpush3.bf16.xpose.msra.mxu1 %v8678_v10  ;;  %8380 = vmatprep.subr.bf16.mxu0 %v8826_v3 }
 0x3da   : > { %8400 = vmatprep.subr.bf16.mxu1 %v8826_v3 }
 0x3e0   : > { %8381 = vmatpush3.bf16.xpose.msra.mxu0 %v8679_v28 }
 0x3e1   : > { %8401 = vmatpush3.bf16.xpose.msra.mxu1 %v8680_v40  ;;  %8382 = vmatprep.subr.bf16.mxu0 %v8826_v3 }
 0x3e2   : > { %8402 = vmatprep.subr.bf16.mxu1 %v8826_v3 }
 0x3e8   : > { %8383 = vmatpush3.bf16.xpose.msra.mxu0 %v8681_v39 }
 0x3e9   : > { %8403 = vmatpush3.bf16.xpose.msra.mxu1 %v8682_v58  ;;  %8384 = vmatprep.subr.bf16.mxu0 %v8826_v3 }
 0x3ea   : > { %8404 = vmatprep.subr.bf16.mxu1 %v8826_v3 }
 0x3f0   : > { %8385 = vmatpush3.bf16.xpose.msra.mxu0 %v8683_v43 }
 0x3f1   : > { %8405 = vmatpush3.bf16.xpose.msra.mxu1 %v8684_v50 }
 0x3f7   : > { %8387 = vmatmul.mubr.bf16.vlgmr.msra.gmra.mxu0 %v6492_v21 }
 0x3f8   : > { %8407 = vmatmul.mubr.bf16.vlgmr.msra.gmra.mxu1 %v6492_v21 }
 0x41d   : > { %v6513_v47 = vpop.permute.xlu0 %6512 }
 0x4b7   : > { %v6597_v62 = vpop.f32.mrf.mxu0 }
 0x4b8   : > { %v6598_v33 = vadd.f32 %v6597_v62, %v6513_v47  ;;  %v6703_v46 = vpop.f32.mrf.mxu1 }
 0x4b9   : > { %v6704_v51 = vadd.f32 %v6703_v46, %v6513_v47  ;;  %v8388_v27 = vpop.f32.mrf.mxu0 }
 0x4ba   : > { %6603 = vst [vmem:[%s9041_s12] sm:$0xff] %v6598_v33  ;;  %v8408_v25 = vpop.f32.mrf.mxu1 }
 0x4bb   : > { %6709 = vst [vmem:[%s9041_s12 + $0x8] sm:$0xff] %v6704_v51  ;;  %v6600_v18 = vpop.f32.mrf.mxu0 }
 0x4bc   : > { %v6706_v61 = vpop.f32.mrf.mxu1 }
 0x4bd   : > { %v8389_v0 = vpop.f32.mrf.mxu0 }
 0x4be   : > { %v8409_v59 = vpop.f32.mrf.mxu1 }
 0x4bf PF: > { %s19_s21 = sadd.s32 1, %s8811_s21  }
 0x4c0   : > { %p16_p6 = scmp.ge.s32.totalorder %s19_s21, 4  }
 0x4c2   :  { %18 = sbr.rel (!%p16_p6) target bundleno = 3 (0x3), region = 126 }
 0x4c7   :  { %6731 = vsyncpa [#allocation4], 1 }
 0x4c8   :  { %6733 = vsyncpa [#allocation4 + $0x1], 1 }
 0x4c9   :  { %6734 = vsyncpa [#allocation6], 1 }
 0x4ca   :  { %6735 = vsyncpa [#allocation9], 1 }

</bundles_post_ra>
